<compile_context>
chip_gen: v5e
topology: v5e:2x2
jax: 0.10.0
libtpu: 0.0.40
codegen_flags: <defaults>
</compile_context>

<pallas_src>
import math

import jax
import jax.numpy as jnp
from jax.experimental import pallas as pl
from jax.experimental.pallas import tpu as pltpu

# ---------------- small model config (consistent with the torch module) -----
VOCAB = 512           # original: 64003
HIDDEN = 128          # original: 512
NUM_HEADS = 4         # original: 8
DEPTH = HIDDEN // NUM_HEADS
DFF = 256             # FFN filter size
NUM_LAYERS = 2        # original: 6
NEG_INF = -1.0e9      # _NEG_INF_FP32
EOS_ID = 2
MAX_DECODE_LEN = 20   # matches `targets.shape[1] < 20`
LN_EPS = 1e-6


# ============================ in-kernel helpers ==============================

def _layernorm(x, g, b, eps=LN_EPS):
    mean = jnp.mean(x, axis=-1, keepdims=True)
    var = jnp.mean((x - mean) ** 2, axis=-1, keepdims=True)
    return g * ((x - mean) * jax.lax.rsqrt(var + eps)) + b


def _mha(q, k, v, bias):
    """Multi-head attention for one batch element.

    q: [F, HIDDEN] f32, k/v: [T, HIDDEN] (f32 or bf16), bias: [F or 1, T] f32.
    The 1/sqrt(depth) scale is already folded into the Q projection weights.
    Returns [F, HIDDEN] f32 with heads concatenated along lanes.
    """
    f, t = q.shape[0], k.shape[0]
    bias_full = jnp.broadcast_to(bias, (f, t))   # hoisted: one broadcast total
    qb = q.astype(jnp.bfloat16)
    kb = k.astype(jnp.bfloat16)
    vb = v.astype(jnp.bfloat16)
    heads = []
    # TODO(synk): heads stay as static 32-lane slices; a head-batched
    # dot_general would need an in-kernel [F,H]->[NH,F,D] relayout that Mosaic
    # lowers back into a per-head MXU loop at DEPTH=32 anyway.
    for h in range(NUM_HEADS):
        sl = slice(h * DEPTH, (h + 1) * DEPTH)
        s = jax.lax.dot_general(qb[:, sl], kb[:, sl],       # q @ k^T  [F, T]
                                (((1,), (1,)), ((), ())),
                                preferred_element_type=jnp.float32)
        s = s + bias_full
        m = jnp.max(s, axis=-1, keepdims=True)
        e = jnp.exp(s - m)
        w = e * pl.reciprocal(jnp.sum(e, axis=-1, keepdims=True), approx=True)
        heads.append(jnp.dot(w.astype(jnp.bfloat16), vb[:, sl],
                             preferred_element_type=jnp.float32))
    return jnp.concatenate(heads, axis=-1)


def _full_spec(shape):
    nd = len(shape)
    return pl.BlockSpec(shape, lambda *_, _n=nd: (0,) * _n)


# ============================ Pallas kernels =================================

def _encoder_layer_kernel(x_ref, pad_ref, ln_ref, wqkv_ref, wo_ref,
                          w1_ref, b1_ref, w2_ref, b2_ref, o_ref):
    """Fused encoder layer for one batch element:
    pre-LN self-attention + residual, then pre-LN FFN + residual."""
    x = x_ref[0]                                            # [T, H] f32
    bias = pad_ref[0]                                       # [1, T] padding

    y = _layernorm(x, ln_ref[0:1, :], ln_ref[1:2, :])
    qkv = jnp.dot(y.astype(jnp.bfloat16), wqkv_ref[...],    # fused Q/K/V
                  preferred_element_type=jnp.float32)       # [T, 3H]
    attn = _mha(qkv[:, :HIDDEN], qkv[:, HIDDEN:2 * HIDDEN],
                qkv[:, 2 * HIDDEN:], bias)
    x = x + jnp.dot(attn.astype(jnp.bfloat16), wo_ref[...],
                    preferred_element_type=jnp.float32)

    y = _layernorm(x, ln_ref[2:3, :], ln_ref[3:4, :])
    h = jnp.maximum(
        jnp.dot(y.astype(jnp.bfloat16), w1_ref[...],
                preferred_element_type=jnp.float32) + b1_ref[...], 0.0)
    x = x + jnp.dot(h.astype(jnp.bfloat16), w2_ref[...],
                    preferred_element_type=jnp.float32) + b2_ref[...]
    o_ref[0] = x


def pl_encoder_layer(x, pad_bias, lp):
    """x: [B, T, H] f32, pad_bias: [B, 1, T] f32 -> [B, T, H] f32."""
    b, t, d = x.shape
    return pl.pallas_call(
        _encoder_layer_kernel,
        out_shape=jax.ShapeDtypeStruct((b, t, d), jnp.float32),
        grid=(b,),
        in_specs=[
            pl.BlockSpec((1, t, d), lambda i: (i, 0, 0)),
            pl.BlockSpec((1, 1, t), lambda i: (i, 0, 0)),
            _full_spec(lp['ln'].shape), _full_spec(lp['wqkv'].shape),
            _full_spec(lp['wo'].shape),
            _full_spec(lp['w1'].shape), _full_spec(lp['b1'].shape),
            _full_spec(lp['w2'].shape), _full_spec(lp['b2'].shape),
        ],
        out_specs=pl.BlockSpec((1, t, d), lambda i: (i, 0, 0)),
        compiler_params=pltpu.CompilerParams(
            dimension_semantics=("parallel",)),
    )(x, pad_bias, lp['ln'], lp['wqkv'], lp['wo'],
      lp['w1'], lp['b1'], lp['w2'], lp['b2'])


def _cross_kv_kernel(x_ref, ln_ref, wkv_ref, o_ref):
    """Final encoder LayerNorm fused with the per-layer enc-dec K/V
    projections, computed once and reused by every decode step."""
    y = _layernorm(x_ref[0], ln_ref[0:1, :], ln_ref[1:2, :])   # enc_out
    yb = y.astype(jnp.bfloat16)
    for l in range(NUM_LAYERS):                                # static unroll
        o_ref[l, 0] = jnp.dot(yb, wkv_ref[l],
                              preferred_element_type=jnp.float32
                              ).astype(jnp.bfloat16)


def pl_cross_kv(x_pre_ln, enc_ln, ed_wkv):
    """x_pre_ln: [B, T, H] -> cross K/V [NL, B, T, 2H] bf16."""
    b, t, d = x_pre_ln.shape
    nl = ed_wkv.shape[0]
    return pl.pallas_call(
        _cross_kv_kernel,
        out_shape=jax.ShapeDtypeStruct((nl, b, t, 2 * HIDDEN), jnp.bfloat16),
        grid=(b,),
        in_specs=[
            pl.BlockSpec((1, t, d), lambda i: (i, 0, 0)),
            _full_spec(enc_ln.shape), _full_spec(ed_wkv.shape),
        ],
        out_specs=pl.BlockSpec((nl, 1, t, 2 * HIDDEN),
                               lambda i: (0, i, 0, 0)),
        compiler_params=pltpu.CompilerParams(
            dimension_semantics=("parallel",)),
    )(x_pre_ln, enc_ln, ed_wkv)


def _decode_step_kernel(pos_ref, x_ref, cb_ref, ckv_ref, cache_in_ref,
                        ln_ref, sa_wqkv_ref, sa_wo_ref, ed_wq_ref, ed_wo_ref,
                        ff_w1_ref, ff_b1_ref, ff_w2_ref, ff_b2_ref,
                        fin_ln_ref, emb_t_ref,
                        cache_out_ref, tok_ref):
    """One fused greedy-decode step for one batch element:

      NUM_LAYERS x (pre-LN self-attn with KV cache + pre-LN enc-dec attn
                    + pre-LN FFN, all with residuals)
      + final LayerNorm + vocab logits + argmax -> next-token id.

    The KV-cache block is aliased in/out; row `pos` is rewritten with this
    token's K/V via a select, all other rows are carried through unchanged.
    """
    pos = pos_ref[0]
    x = x_ref[0]                                            # [1, H] f32

    col = jax.lax.broadcasted_iota(jnp.int32, (1, MAX_DECODE_LEN), 1)
    self_bias = jnp.where(col > pos, NEG_INF, 0.0)          # causal mask
    cross_bias = cb_ref[0]                                  # [1, T_enc] padding
    row_is_pos = (jax.lax.broadcasted_iota(
        jnp.int32, (MAX_DECODE_LEN, 1), 0) == pos)

    for l in range(NUM_LAYERS):                             # static unroll
        # ---- self-attention sub-layer (KV cache) ----
        y = _layernorm(x, ln_ref[l, 0:1, :], ln_ref[l, 1:2, :])
        qkv = jnp.dot(y.astype(jnp.bfloat16), sa_wqkv_ref[l],
                      preferred_element_type=jnp.float32)   # [1, 3H]
        kv_new = jnp.where(row_is_pos, qkv[:, HIDDEN:],
                           cache_in_ref[l, 0].astype(jnp.float32)
                           ).astype(jnp.bfloat16)           # [T_dec, 2H]
        cache_out_ref[l, 0] = kv_new                        # in-place update
        attn = _mha(qkv[:, :HIDDEN], kv_new[:, :HIDDEN], kv_new[:, HIDDEN:],
                    self_bias)
        x = x + jnp.dot(attn.astype(jnp.bfloat16), sa_wo_ref[l],
                        preferred_element_type=jnp.float32)

        # ---- encoder-decoder attention (precomputed K/V) ----
        y = _layernorm(x, ln_ref[l, 2:3, :], ln_ref[l, 3:4, :])
        qc = jnp.dot(y.astype(jnp.bfloat16), ed_wq_ref[l],
                     preferred_element_type=jnp.float32)
        attn = _mha(qc, ckv_ref[l, 0, :, :HIDDEN], ckv_ref[l, 0, :, HIDDEN:],
                    cross_bias)
        x = x + jnp.dot(attn.astype(jnp.bfloat16), ed_wo_ref[l],
                        preferred_element_type=jnp.float32)

        # ---- feed-forward ----
        y = _layernorm(x, ln_ref[l, 4:5, :], ln_ref[l, 5:6, :])
        h = jnp.maximum(
            jnp.dot(y.astype(jnp.bfloat16), ff_w1_ref[l],
                    preferred_element_type=jnp.float32) + ff_b1_ref[l], 0.0)
        x = x + jnp.dot(h.astype(jnp.bfloat16), ff_w2_ref[l],
                        preferred_element_type=jnp.float32) + ff_b2_ref[l]

    # ---- final LN + vocab logits + greedy argmax (all fused) ----
    y = _layernorm(x, fin_ln_ref[0:1, :], fin_ln_ref[1:2, :])
    # TODO(synk): at the original config (VOCAB=64003, HIDDEN=512) emb_t must
    # be tiled over the vocab axis with a grid + vmem_limit_bytes instead of a
    # single resident block (it would exceed v7x's 64 MiB VMEM).
    logits = jnp.dot(y.astype(jnp.bfloat16), emb_t_ref[...],
                     preferred_element_type=jnp.float32)    # [1, VOCAB]
    m = jnp.max(logits, axis=-1, keepdims=True)
    vcol = jax.lax.broadcasted_iota(jnp.int32, logits.shape, 1)
    idx = jnp.min(jnp.where(logits >= m, vcol, jnp.int32(VOCAB)),
                  axis=-1, keepdims=True)                   # first-max argmax
    tok_ref[0] = jnp.broadcast_to(idx, (1, 128))


def pl_decode_step(x_tok, pos, cache, cross_kv, pad_bias, dp):
    """One fused decode step.

    x_tok: [B, 1, H] f32 embedded current token, pos: scalar int32,
    cache: [NL, B, T_dec, 2H] bf16 (aliased in/out),
    cross_kv: [NL, B, T_enc, 2H] bf16, pad_bias: [B, 1, T_enc] f32.
    Returns (updated cache, next-token ids [B, 1, 128] int32).
    """
    b = x_tok.shape[0]
    t_enc = pad_bias.shape[-1]
    nl = NUM_LAYERS
    pos_arr = jnp.reshape(pos, (1,)).astype(jnp.int32)

    return pl.pallas_call(
        _decode_step_kernel,
        out_shape=(jax.ShapeDtypeStruct(cache.shape, cache.dtype),
                   jax.ShapeDtypeStruct((b, 1, 128), jnp.int32)),
        grid=(b,),
        in_specs=[
            pl.BlockSpec(memory_space=pltpu.MemorySpace.SMEM),        # pos
            pl.BlockSpec((1, 1, HIDDEN), lambda i: (i, 0, 0)),        # x_tok
            pl.BlockSpec((1, 1, t_enc), lambda i: (i, 0, 0)),         # pad bias
            pl.BlockSpec((nl, 1, t_enc, 2 * HIDDEN),
                         lambda i: (0, i, 0, 0)),                     # cross K/V
            pl.BlockSpec((nl, 1, MAX_DECODE_LEN, 2 * HIDDEN),
                         lambda i: (0, i, 0, 0)),                     # KV cache
            _full_spec(dp['ln'].shape),
            _full_spec(dp['sa_wqkv'].shape), _full_spec(dp['sa_wo'].shape),
            _full_spec(dp['ed_wq'].shape), _full_spec(dp['ed_wo'].shape),
            _full_spec(dp['ff_w1'].shape), _full_spec(dp['ff_b1'].shape),
            _full_spec(dp['ff_w2'].shape), _full_spec(dp['ff_b2'].shape),
            _full_spec(dp['fin_ln'].shape), _full_spec(dp['emb_t'].shape),
        ],
        out_specs=(
            pl.BlockSpec((nl, 1, MAX_DECODE_LEN, 2 * HIDDEN),
                         lambda i: (0, i, 0, 0)),
            pl.BlockSpec((1, 1, 128), lambda i: (i, 0, 0)),
        ),
        input_output_aliases={4: 0},                        # cache in-place
        compiler_params=pltpu.CompilerParams(
            dimension_semantics=("parallel",)),             # v7x: 2 TCs
    )(pos_arr, x_tok, pad_bias, cross_kv, cache,
      dp['ln'], dp['sa_wqkv'], dp['sa_wo'], dp['ed_wq'], dp['ed_wo'],
      dp['ff_w1'], dp['ff_b1'], dp['ff_w2'], dp['ff_b2'],
      dp['fin_ln'], dp['emb_t'])


# ============================ glue (plain JAX, inside jit) ===================

def get_position_encoding(length, hidden_size, min_timescale=1.0,
                          max_timescale=10000.0):
    position = jnp.arange(length, dtype=jnp.float32)
    num_timescales = hidden_size // 2
    log_timescale_increment = (math.log(float(max_timescale) /
                                        float(min_timescale)) /
                               (num_timescales - 1))
    inv_timescales = min_timescale * jnp.exp(
        jnp.arange(num_timescales, dtype=jnp.float32)
        * -log_timescale_increment)
    scaled_time = position[:, None] * inv_timescales[None, :]
    return jnp.concatenate([jnp.sin(scaled_time), jnp.cos(scaled_time)],
                           axis=1)


def embed(weights, ids):
    # TODO(synk): data-dependent embedding gather kept in plain-JAX glue
    # (a one-hot matmul or manual-DMA gather kernel would be the alternative).
    return jnp.take(weights, ids, axis=0) * (float(HIDDEN) ** 0.5)


@jax.jit
def _run_inference(params, inputs, targets_init):
    """Encoder once + cross-attention K/V precompute + KV-cached greedy decode.

    The greedy loop is a device-side lax.while_loop; each step launches ONE
    fused Pallas kernel that runs the whole decoder stack for the single new
    token, updates the self-attention KV cache in place, and emits the next
    token id (final LN + logits + argmax fused in-kernel).
    """
    b, t_in = inputs.shape
    pad_bias = ((inputs == 0).astype(jnp.float32) * NEG_INF)[:, None, :]

    # ---- encoder (runs once): one fused kernel per layer ----
    x = (embed(params['embedding'], inputs)
         + get_position_encoding(t_in, HIDDEN)[None])
    for lp in params['encoder']:
        x = pl_encoder_layer(x, pad_bias, lp)
    # final encoder LN fused with the per-layer enc-dec K/V projections
    cross_kv = pl_cross_kv(x, params['enc_ln'], params['dec']['ed_wkv'])

    # ---- greedy decode with per-layer self-attention KV cache ----
    dec = params['dec']
    pos_table = get_position_encoding(MAX_DECODE_LEN, HIDDEN)
    l0 = targets_init.shape[1]

    buf = jnp.zeros((b, MAX_DECODE_LEN), jnp.int32)
    buf = jax.lax.dynamic_update_slice(buf, targets_init.astype(jnp.int32),
                                       (0, 0))
    cache = jnp.zeros((NUM_LAYERS, b, MAX_DECODE_LEN, 2 * HIDDEN),
                      jnp.bfloat16)

    def step(tbuf, pos, kv_cache):
        tok = jax.lax.dynamic_slice_in_dim(tbuf, pos, 1, axis=1)      # [B, 1]
        x_tok = (embed(params['embedding'], tok)
                 + jax.lax.dynamic_slice_in_dim(pos_table, pos, 1,
                                                axis=0)[None])        # [B,1,H]
        return pl_decode_step(x_tok, pos, kv_cache, cross_kv, pad_bias, dec)

    # prefill the cache for any initial target tokens before the last one
    # (no-op for the usual single start token)
    for p in range(l0 - 1):
        cache, _ = step(buf, jnp.int32(p), cache)

    def cond(carry):
        tbuf, clen, _ = carry
        # NOTE: mirrors the reference exactly — only batch row 0 gates the loop.
        last = jax.lax.dynamic_index_in_dim(tbuf[0], clen - 1, keepdims=False)
        return jnp.logical_and(clen < MAX_DECODE_LEN, last != EOS_ID)

    def body(carry):
        tbuf, clen, kv_cache = carry
        kv_cache, nxt = step(tbuf, clen - 1, kv_cache)      # nxt [B, 1, 128]
        tbuf = jax.lax.dynamic_update_slice(tbuf, nxt[:, :, 0], (0, clen))
        return tbuf, clen + 1, kv_cache

    buf, cur_len, _ = jax.lax.while_loop(cond, body,
                                         (buf, jnp.int32(l0), cache))
    return buf, cur_len


def infer_transformer(params, inputs, targets):
    buf, cur_len = jax.block_until_ready(
        _run_inference(params, inputs, targets))
    return buf[:, :int(cur_len)]            # single host sync, at the very end


# ============================ parameter init =================================

def init_params(key):
    keys = iter(jax.random.split(key, 64))

    def w(shape, scale=0.05):
        return scale * jax.random.normal(next(keys), shape, dtype=jnp.float32)

    q_scale = float(DEPTH) ** -0.5          # folded into the Q projections
    ones = jnp.ones((HIDDEN,), jnp.float32)
    zeros = jnp.zeros((HIDDEN,), jnp.float32)

    def enc_layer():
        wqkv = jnp.concatenate(
            [w((HIDDEN, HIDDEN)) * q_scale, w((HIDDEN, HIDDEN)),
             w((HIDDEN, HIDDEN))], axis=1)
        return dict(
            ln=jnp.stack([ones, zeros, ones, zeros]),        # [4, H]
            wqkv=wqkv.astype(jnp.bfloat16),                  # [H, 3H]
            wo=w((HIDDEN, HIDDEN)).astype(jnp.bfloat16),
            w1=w((HIDDEN, DFF)).astype(jnp.bfloat16),
            b1=jnp.zeros((1, DFF), jnp.float32),
            w2=w((DFF, HIDDEN)).astype(jnp.bfloat16),
            b2=jnp.zeros((1, HIDDEN), jnp.float32),
        )

    sa_wqkv, sa_wo, ed_wq, ed_wkv, ed_wo = [], [], [], [], []
    ff_w1, ff_w2, lns = [], [], []
    for _ in range(NUM_LAYERS):
        sa_wqkv.append(jnp.concatenate(
            [w((HIDDEN, HIDDEN)) * q_scale, w((HIDDEN, HIDDEN)),
             w((HIDDEN, HIDDEN))], axis=1))
        sa_wo.append(w((HIDDEN, HIDDEN)))
        ed_wq.append(w((HIDDEN, HIDDEN)) * q_scale)
        ed_wkv.append(jnp.concatenate(
            [w((HIDDEN, HIDDEN)), w((HIDDEN, HIDDEN))], axis=1))
        ed_wo.append(w((HIDDEN, HIDDEN)))
        ff_w1.append(w((HIDDEN, DFF)))
        ff_w2.append(w((DFF, HIDDEN)))
        lns.append(jnp.stack([ones, zeros] * 3))             # [6, H]

    embedding = w((VOCAB, HIDDEN))
    dec = dict(
        ln=jnp.stack(lns),                                   # [NL, 6, H]
        sa_wqkv=jnp.stack(sa_wqkv).astype(jnp.bfloat16),     # [NL, H, 3H]
        sa_wo=jnp.stack(sa_wo).astype(jnp.bfloat16),
        ed_wq=jnp.stack(ed_wq).astype(jnp.bfloat16),
        ed_wkv=jnp.stack(ed_wkv).astype(jnp.bfloat16),       # [NL, H, 2H]
        ed_wo=jnp.stack(ed_wo).astype(jnp.bfloat16),
        ff_w1=jnp.stack(ff_w1).astype(jnp.bfloat16),
        ff_b1=jnp.zeros((NUM_LAYERS, 1, DFF), jnp.float32),
        ff_w2=jnp.stack(ff_w2).astype(jnp.bfloat16),
        ff_b2=jnp.zeros((NUM_LAYERS, 1, HIDDEN), jnp.float32),
        fin_ln=jnp.stack([ones, zeros]),                     # [2, H]
        emb_t=embedding.T.astype(jnp.bfloat16),              # [H, VOCAB]
    )
    return dict(
        embedding=embedding,                                 # f32 gather table
        encoder=[enc_layer() for _ in range(NUM_LAYERS)],
        enc_ln=jnp.stack([ones, zeros]),                     # [2, H]
        dec=dec,
    )


if __name__ == "__main__":
    key = jax.random.PRNGKey(0)
    pkey, ikey = jax.random.split(key)
    params = init_params(pkey)

    B, T_IN = 2, 8
    inputs = jax.random.randint(ikey, (B, T_IN), minval=3, maxval=VOCAB,
                                dtype=jnp.int32)
    inputs = inputs.at[:, -2:].set(0)        # some padding -> exercises bias
    targets0 = jnp.ones((B, 1), dtype=jnp.int32)   # start token

    out = infer_transformer(params, inputs, targets0)
    out = jax.block_until_ready(out)
    assert out.shape[0] == B and 1 <= out.shape[1] <= MAX_DECODE_LEN
    print("KERNEL_OK")
</pallas_src>

<mosaic_0001>
module attributes {stable_mosaic.version = 11 : i64} {
  func.func @_cross_kv_kernel(%arg0: i32, %arg1: memref<1x8x128xf32, #tpu.memory_space<vmem>>, %arg2: memref<2x128xf32, #tpu.memory_space<vmem>>, %arg3: memref<2x128x256xbf16, #tpu.memory_space<vmem>>, %arg4: memref<2x1x8x256xbf16, #tpu.memory_space<vmem>>) attributes {dimension_semantics = [#tpu.dimension_semantics<parallel>], iteration_bounds = array<i64: 2>, scalar_prefetch = 0 : i64, scratch_operands = 0 : i64, tpu.core_type = #tpu.core_type<tc>, window_params = [{transform_indices = @transform_0, window_bounds = array<i64: 1, 8, 128>}, {pipeline_mode = #tpu.pipeline_mode<synchronous>, transform_indices = @transform_1, window_bounds = array<i64: 2, 128>}, {pipeline_mode = #tpu.pipeline_mode<synchronous>, transform_indices = @transform_2, window_bounds = array<i64: 2, 128, 256>}, {transform_indices = @transform_3, window_bounds = array<i64: 2, 1, 8, 256>}]} {
    %c0 = arith.constant 0 : index
    %c0_0 = arith.constant 0 : index
    %c0_1 = arith.constant 0 : index
    %0 = vector.load %arg1[%c0, %c0_0, %c0_1] : memref<1x8x128xf32, #tpu.memory_space<vmem>>, vector<1x8x128xf32>
    %1 = vector.shape_cast %0 : vector<1x8x128xf32> to vector<8x128xf32>
    %c0_2 = arith.constant 0 : index
    %c0_3 = arith.constant 0 : index
    %2 = vector.load %arg2[%c0_2, %c0_3] : memref<2x128xf32, #tpu.memory_space<vmem>>, vector<1x128xf32>
    %c1 = arith.constant 1 : index
    %c0_4 = arith.constant 0 : index
    %3 = vector.load %arg2[%c1, %c0_4] : memref<2x128xf32, #tpu.memory_space<vmem>>, vector<1x128xf32>
    %cst = arith.constant dense<0.000000e+00> : vector<8xf32>
    %4 = vector.multi_reduction <add>, %1, %cst [1] : vector<8x128xf32> to vector<8xf32>
    %5 = vector.shape_cast %4 : vector<8xf32> to vector<8x1xf32>
    %cst_5 = arith.constant 1.280000e+02 : f32
    %6 = vector.broadcast %cst_5 : f32 to vector<8x1xf32>
    %7 = arith.divf %5, %6 : vector<8x1xf32>
    %8 = vector.broadcast %7 : vector<8x1xf32> to vector<8x128xf32>
    %9 = arith.subf %1, %8 : vector<8x128xf32>
    %10 = arith.mulf %9, %9 : vector<8x128xf32>
    %cst_6 = arith.constant dense<0.000000e+00> : vector<8xf32>
    %11 = vector.multi_reduction <add>, %10, %cst_6 [1] : vector<8x128xf32> to vector<8xf32>
    %12 = vector.shape_cast %11 : vector<8xf32> to vector<8x1xf32>
    %cst_7 = arith.constant 1.280000e+02 : f32
    %13 = vector.broadcast %cst_7 : f32 to vector<8x1xf32>
    %14 = arith.divf %12, %13 : vector<8x1xf32>
    %15 = vector.broadcast %7 : vector<8x1xf32> to vector<8x128xf32>
    %16 = arith.subf %1, %15 : vector<8x128xf32>
    %cst_8 = arith.constant 9.99999997E-7 : f32
    %17 = vector.broadcast %cst_8 : f32 to vector<8x1xf32>
    %18 = arith.addf %14, %17 : vector<8x1xf32>
    %19 = math.rsqrt %18 : vector<8x1xf32>
    %20 = vector.broadcast %19 : vector<8x1xf32> to vector<8x128xf32>
    %21 = arith.mulf %16, %20 : vector<8x128xf32>
    %22 = vector.broadcast %2 : vector<1x128xf32> to vector<8x128xf32>
    %23 = arith.mulf %22, %21 : vector<8x128xf32>
    %24 = vector.broadcast %3 : vector<1x128xf32> to vector<8x128xf32>
    %25 = arith.addf %23, %24 : vector<8x128xf32>
    %26 = arith.truncf %25 : vector<8x128xf32> to vector<8x128xbf16>
    %c0_9 = arith.constant 0 : index
    %c0_10 = arith.constant 0 : index
    %c0_11 = arith.constant 0 : index
    %27 = vector.load %arg3[%c0_9, %c0_10, %c0_11] : memref<2x128x256xbf16, #tpu.memory_space<vmem>>, vector<1x128x256xbf16>
    %28 = vector.shape_cast %27 : vector<1x128x256xbf16> to vector<128x256xbf16>
    %cst_12 = arith.constant dense<0.000000e+00> : vector<8x256xf32>
    %29 = tpu.matmul %26, %28, %cst_12 {dimension_numbers = #tpu.dot_dimension_numbers<[1], [0], [0], [1], [0, 0, 1, 1], [], []>} : vector<8x128xbf16>, vector<128x256xbf16>, vector<8x256xf32> -> vector<8x256xf32>
    %30 = arith.truncf %29 : vector<8x256xf32> to vector<8x256xbf16>
    %c0_13 = arith.constant 0 : index
    %c0_14 = arith.constant 0 : index
    %c0_15 = arith.constant 0 : index
    %c0_16 = arith.constant 0 : index
    %31 = vector.load %arg4[%c0_13, %c0_14, %c0_15, %c0_16] : memref<2x1x8x256xbf16, #tpu.memory_space<vmem>>, vector<1x1x8x256xbf16>
    %32 = vector.shape_cast %31 : vector<1x1x8x256xbf16> to vector<8x256xbf16>
    %33 = vector.shape_cast %30 : vector<8x256xbf16> to vector<1x1x8x256xbf16>
    tpu.vector_store %arg4[%c0_13, %c0_14, %c0_15, %c0_16], %33 {strides = array<i32>} : memref<2x1x8x256xbf16, #tpu.memory_space<vmem>>, vector<1x1x8x256xbf16>,
    %c1_17 = arith.constant 1 : index
    %c0_18 = arith.constant 0 : index
    %c0_19 = arith.constant 0 : index
    %34 = vector.load %arg3[%c1_17, %c0_18, %c0_19] : memref<2x128x256xbf16, #tpu.memory_space<vmem>>, vector<1x128x256xbf16>
    %35 = vector.shape_cast %34 : vector<1x128x256xbf16> to vector<128x256xbf16>
    %cst_20 = arith.constant dense<0.000000e+00> : vector<8x256xf32>
    %36 = tpu.matmul %26, %35, %cst_20 {dimension_numbers = #tpu.dot_dimension_numbers<[1], [0], [0], [1], [0, 0, 1, 1], [], []>} : vector<8x128xbf16>, vector<128x256xbf16>, vector<8x256xf32> -> vector<8x256xf32>
    %37 = arith.truncf %36 : vector<8x256xf32> to vector<8x256xbf16>
    %c1_21 = arith.constant 1 : index
    %c0_22 = arith.constant 0 : index
    %c0_23 = arith.constant 0 : index
    %c0_24 = arith.constant 0 : index
    %38 = vector.load %arg4[%c1_21, %c0_22, %c0_23, %c0_24] : memref<2x1x8x256xbf16, #tpu.memory_space<vmem>>, vector<1x1x8x256xbf16>
    %39 = vector.shape_cast %38 : vector<1x1x8x256xbf16> to vector<8x256xbf16>
    %40 = vector.shape_cast %37 : vector<8x256xbf16> to vector<1x1x8x256xbf16>
    tpu.vector_store %arg4[%c1_21, %c0_22, %c0_23, %c0_24], %40 {strides = array<i32>} : memref<2x1x8x256xbf16, #tpu.memory_space<vmem>>, vector<1x1x8x256xbf16>,
    return
  }
  func.func @transform_0(%arg0: i32) -> (i32, i32, i32) {
    %c0_i32 = arith.constant 0 : i32
    %c0_i32_0 = arith.constant 0 : i32
    %c0_i32_1 = arith.constant 0 : i32
    return %arg0, %c0_i32, %c0_i32_0 : i32, i32, i32
  }
  func.func @transform_1(%arg0: i32) -> (i32, i32) {
    %c0_i32 = arith.constant 0 : i32
    %c0_i32_0 = arith.constant 0 : i32
    %c0_i32_1 = arith.constant 0 : i32
    return %c0_i32, %c0_i32_0 : i32, i32
  }
  func.func @transform_2(%arg0: i32) -> (i32, i32, i32) {
    %c0_i32 = arith.constant 0 : i32
    %c0_i32_0 = arith.constant 0 : i32
    %c0_i32_1 = arith.constant 0 : i32
    %c0_i32_2 = arith.constant 0 : i32
    return %c0_i32, %c0_i32_0, %c0_i32_1 : i32, i32, i32
  }
  func.func @transform_3(%arg0: i32) -> (i32, i32, i32, i32) {
    %c0_i32 = arith.constant 0 : i32
    %c0_i32_0 = arith.constant 0 : i32
    %c0_i32_1 = arith.constant 0 : i32
    %c0_i32_2 = arith.constant 0 : i32
    return %c0_i32, %arg0, %c0_i32_0, %c0_i32_1 : i32, i32, i32, i32
  }
}

module attributes {stable_mosaic.version = 11 : i64} {
  func.func @_encoder_layer_kernel(%arg0: i32, %arg1: memref<1x8x128xf32, #tpu.memory_space<vmem>>, %arg2: memref<1x1x8xf32, #tpu.memory_space<vmem>>, %arg3: memref<4x128xf32, #tpu.memory_space<vmem>>, %arg4: memref<128x384xbf16, #tpu.memory_space<vmem>>, %arg5: memref<128x128xbf16, #tpu.memory_space<vmem>>, %arg6: memref<128x256xbf16, #tpu.memory_space<vmem>>, %arg7: memref<1x256xf32, #tpu.memory_space<vmem>>, %arg8: memref<256x128xbf16, #tpu.memory_space<vmem>>, %arg9: memref<1x128xf32, #tpu.memory_space<vmem>>, %arg10: memref<1x8x128xf32, #tpu.memory_space<vmem>>) attributes {dimension_semantics = [#tpu.dimension_semantics<parallel>], iteration_bounds = array<i64: 2>, scalar_prefetch = 0 : i64, scratch_operands = 0 : i64, tpu.core_type = #tpu.core_type<tc>, window_params = [{transform_indices = @transform_0, window_bounds = array<i64: 1, 8, 128>}, {transform_indices = @transform_1, window_bounds = array<i64: 1, 1, 8>}, {pipeline_mode = #tpu.pipeline_mode<synchronous>, transform_indices = @transform_2, window_bounds = array<i64: 4, 128>}, {pipeline_mode = #tpu.pipeline_mode<synchronous>, transform_indices = @transform_3, window_bounds = array<i64: 128, 384>}, {pipeline_mode = #tpu.pipeline_mode<synchronous>, transform_indices = @transform_4, window_bounds = array<i64: 128, 128>}, {pipeline_mode = #tpu.pipeline_mode<synchronous>, transform_indices = @transform_5, window_bounds = array<i64: 128, 256>}, {pipeline_mode = #tpu.pipeline_mode<synchronous>, transform_indices = @transform_6, window_bounds = array<i64: 1, 256>}, {pipeline_mode = #tpu.pipeline_mode<synchronous>, transform_indices = @transform_7, window_bounds = array<i64: 256, 128>}, {pipeline_mode = #tpu.pipeline_mode<synchronous>, transform_indices = @transform_8, window_bounds = array<i64: 1, 128>}, {transform_indices = @transform_9, window_bounds = array<i64: 1, 8, 128>}]} {
    %c0 = arith.constant 0 : index
    %c0_0 = arith.constant 0 : index
    %c0_1 = arith.constant 0 : index
    %0 = vector.load %arg1[%c0, %c0_0, %c0_1] : memref<1x8x128xf32, #tpu.memory_space<vmem>>, vector<1x8x128xf32>
    %1 = vector.shape_cast %0 : vector<1x8x128xf32> to vector<8x128xf32>
    %c0_2 = arith.constant 0 : index
    %c0_3 = arith.constant 0 : index
    %c0_4 = arith.constant 0 : index
    %2 = vector.load %arg2[%c0_2, %c0_3, %c0_4] : memref<1x1x8xf32, #tpu.memory_space<vmem>>, vector<1x1x8xf32>
    %3 = vector.shape_cast %2 : vector<1x1x8xf32> to vector<1x8xf32>
    %c0_5 = arith.constant 0 : index
    %c0_6 = arith.constant 0 : index
    %4 = vector.load %arg3[%c0_5, %c0_6] : memref<4x128xf32, #tpu.memory_space<vmem>>, vector<1x128xf32>
    %c1 = arith.constant 1 : index
    %c0_7 = arith.constant 0 : index
    %5 = vector.load %arg3[%c1, %c0_7] : memref<4x128xf32, #tpu.memory_space<vmem>>, vector<1x128xf32>
    %cst = arith.constant dense<0.000000e+00> : vector<8xf32>
    %6 = vector.multi_reduction <add>, %1, %cst [1] : vector<8x128xf32> to vector<8xf32>
    %7 = vector.shape_cast %6 : vector<8xf32> to vector<8x1xf32>
    %cst_8 = arith.constant 1.280000e+02 : f32
    %8 = vector.broadcast %cst_8 : f32 to vector<8x1xf32>
    %9 = arith.divf %7, %8 : vector<8x1xf32>
    %10 = vector.broadcast %9 : vector<8x1xf32> to vector<8x128xf32>
    %11 = arith.subf %1, %10 : vector<8x128xf32>
    %12 = arith.mulf %11, %11 : vector<8x128xf32>
    %cst_9 = arith.constant dense<0.000000e+00> : vector<8xf32>
    %13 = vector.multi_reduction <add>, %12, %cst_9 [1] : vector<8x128xf32> to vector<8xf32>
    %14 = vector.shape_cast %13 : vector<8xf32> to vector<8x1xf32>
    %cst_10 = arith.constant 1.280000e+02 : f32
    %15 = vector.broadcast %cst_10 : f32 to vector<8x1xf32>
    %16 = arith.divf %14, %15 : vector<8x1xf32>
    %17 = vector.broadcast %9 : vector<8x1xf32> to vector<8x128xf32>
    %18 = arith.subf %1, %17 : vector<8x128xf32>
    %cst_11 = arith.constant 9.99999997E-7 : f32
    %19 = vector.broadcast %cst_11 : f32 to vector<8x1xf32>
    %20 = arith.addf %16, %19 : vector<8x1xf32>
    %21 = math.rsqrt %20 : vector<8x1xf32>
    %22 = vector.broadcast %21 : vector<8x1xf32> to vector<8x128xf32>
    %23 = arith.mulf %18, %22 : vector<8x128xf32>
    %24 = vector.broadcast %4 : vector<1x128xf32> to vector<8x128xf32>
    %25 = arith.mulf %24, %23 : vector<8x128xf32>
    %26 = vector.broadcast %5 : vector<1x128xf32> to vector<8x128xf32>
    %27 = arith.addf %25, %26 : vector<8x128xf32>
    %28 = arith.truncf %27 : vector<8x128xf32> to vector<8x128xbf16>
    %c0_12 = arith.constant 0 : index
    %c0_13 = arith.constant 0 : index
    %29 = vector.load %arg4[%c0_12, %c0_13] : memref<128x384xbf16, #tpu.memory_space<vmem>>, vector<128x384xbf16>
    %cst_14 = arith.constant dense<0.000000e+00> : vector<8x384xf32>
    %30 = tpu.matmul %28, %29, %cst_14 {dimension_numbers = #tpu.dot_dimension_numbers<[1], [0], [0], [1], [0, 0, 1, 1], [], []>} : vector<8x128xbf16>, vector<128x384xbf16>, vector<8x384xf32> -> vector<8x384xf32>
    %31 = vector.extract_strided_slice %30 {offsets = [0, 0], sizes = [8, 128], strides = [1, 1]} : vector<8x384xf32> to vector<8x128xf32>
    %32 = vector.extract_strided_slice %30 {offsets = [0, 128], sizes = [8, 128], strides = [1, 1]} : vector<8x384xf32> to vector<8x128xf32>
    %33 = vector.extract_strided_slice %30 {offsets = [0, 256], sizes = [8, 128], strides = [1, 1]} : vector<8x384xf32> to vector<8x128xf32>
    %34 = vector.shape_cast %3 : vector<1x8xf32> to vector<1x8xf32>
    %35 = vector.broadcast %34 : vector<1x8xf32> to vector<8x8xf32>
    %36 = arith.truncf %31 : vector<8x128xf32> to vector<8x128xbf16>
    %37 = arith.truncf %32 : vector<8x128xf32> to vector<8x128xbf16>
    %38 = arith.truncf %33 : vector<8x128xf32> to vector<8x128xbf16>
    %39 = vector.extract_strided_slice %36 {offsets = [0, 0], sizes = [8, 32], strides = [1, 1]} : vector<8x128xbf16> to vector<8x32xbf16>
    %40 = vector.extract_strided_slice %37 {offsets = [0, 0], sizes = [8, 32], strides = [1, 1]} : vector<8x128xbf16> to vector<8x32xbf16>
    %cst_15 = arith.constant dense<0.000000e+00> : vector<8x8xf32>
    %41 = tpu.matmul %39, %40, %cst_15 {dimension_numbers = #tpu.dot_dimension_numbers<[1], [1], [0], [0], [0, 0, 1, 0], [], []>} : vector<8x32xbf16>, vector<8x32xbf16>, vector<8x8xf32> -> vector<8x8xf32>
    %42 = arith.addf %41, %35 : vector<8x8xf32>
    %cst_16 = arith.constant dense<0xFF800000> : vector<8xf32>
    %43 = vector.multi_reduction <maximumf>, %42, %cst_16 [1] : vector<8x8xf32> to vector<8xf32>
    %44 = vector.shape_cast %43 : vector<8xf32> to vector<8x1xf32>
    %45 = vector.broadcast %44 : vector<8x1xf32> to vector<8x8xf32>
    %46 = arith.subf %42, %45 : vector<8x8xf32>
    %47 = math.exp %46 : vector<8x8xf32>
    %cst_17 = arith.constant dense<0.000000e+00> : vector<8xf32>
    %48 = vector.multi_reduction <add>, %47, %cst_17 [1] : vector<8x8xf32> to vector<8xf32>
    %49 = vector.shape_cast %48 : vector<8xf32> to vector<8x1xf32>
    %50 = tpu.reciprocal %49 {approx = true} : vector<8x1xf32> -> vector<8x1xf32>
    %51 = vector.broadcast %50 : vector<8x1xf32> to vector<8x8xf32>
    %52 = arith.mulf %47, %51 : vector<8x8xf32>
    %53 = arith.truncf %52 : vector<8x8xf32> to vector<8x8xbf16>
    %54 = vector.extract_strided_slice %38 {offsets = [0, 0], sizes = [8, 32], strides = [1, 1]} : vector<8x128xbf16> to vector<8x32xbf16>
    %cst_18 = arith.constant dense<0.000000e+00> : vector<8x32xf32>
    %55 = tpu.matmul %53, %54, %cst_18 {dimension_numbers = #tpu.dot_dimension_numbers<[1], [0], [0], [1], [0, 0, 1, 1], [], []>} : vector<8x8xbf16>, vector<8x32xbf16>, vector<8x32xf32> -> vector<8x32xf32>
    %56 = vector.extract_strided_slice %36 {offsets = [0, 32], sizes = [8, 32], strides = [1, 1]} : vector<8x128xbf16> to vector<8x32xbf16>
    %57 = vector.extract_strided_slice %37 {offsets = [0, 32], sizes = [8, 32], strides = [1, 1]} : vector<8x128xbf16> to vector<8x32xbf16>
    %cst_19 = arith.constant dense<0.000000e+00> : vector<8x8xf32>
    %58 = tpu.matmul %56, %57, %cst_19 {dimension_numbers = #tpu.dot_dimension_numbers<[1], [1], [0], [0], [0, 0, 1, 0], [], []>} : vector<8x32xbf16>, vector<8x32xbf16>, vector<8x8xf32> -> vector<8x8xf32>
    %59 = arith.addf %58, %35 : vector<8x8xf32>
    %cst_20 = arith.constant dense<0xFF800000> : vector<8xf32>
    %60 = vector.multi_reduction <maximumf>, %59, %cst_20 [1] : vector<8x8xf32> to vector<8xf32>
    %61 = vector.shape_cast %60 : vector<8xf32> to vector<8x1xf32>
    %62 = vector.broadcast %61 : vector<8x1xf32> to vector<8x8xf32>
    %63 = arith.subf %59, %62 : vector<8x8xf32>
    %64 = math.exp %63 : vector<8x8xf32>
    %cst_21 = arith.constant dense<0.000000e+00> : vector<8xf32>
    %65 = vector.multi_reduction <add>, %64, %cst_21 [1] : vector<8x8xf32> to vector<8xf32>
    %66 = vector.shape_cast %65 : vector<8xf32> to vector<8x1xf32>
    %67 = tpu.reciprocal %66 {approx = true} : vector<8x1xf32> -> vector<8x1xf32>
    %68 = vector.broadcast %67 : vector<8x1xf32> to vector<8x8xf32>
    %69 = arith.mulf %64, %68 : vector<8x8xf32>
    %70 = arith.truncf %69 : vector<8x8xf32> to vector<8x8xbf16>
    %71 = vector.extract_strided_slice %38 {offsets = [0, 32], sizes = [8, 32], strides = [1, 1]} : vector<8x128xbf16> to vector<8x32xbf16>
    %cst_22 = arith.constant dense<0.000000e+00> : vector<8x32xf32>
    %72 = tpu.matmul %70, %71, %cst_22 {dimension_numbers = #tpu.dot_dimension_numbers<[1], [0], [0], [1], [0, 0, 1, 1], [], []>} : vector<8x8xbf16>, vector<8x32xbf16>, vector<8x32xf32> -> vector<8x32xf32>
    %73 = vector.extract_strided_slice %36 {offsets = [0, 64], sizes = [8, 32], strides = [1, 1]} : vector<8x128xbf16> to vector<8x32xbf16>
    %74 = vector.extract_strided_slice %37 {offsets = [0, 64], sizes = [8, 32], strides = [1, 1]} : vector<8x128xbf16> to vector<8x32xbf16>
    %cst_23 = arith.constant dense<0.000000e+00> : vector<8x8xf32>
    %75 = tpu.matmul %73, %74, %cst_23 {dimension_numbers = #tpu.dot_dimension_numbers<[1], [1], [0], [0], [0, 0, 1, 0], [], []>} : vector<8x32xbf16>, vector<8x32xbf16>, vector<8x8xf32> -> vector<8x8xf32>
    %76 = arith.addf %75, %35 : vector<8x8xf32>
    %cst_24 = arith.constant dense<0xFF800000> : vector<8xf32>
    %77 = vector.multi_reduction <maximumf>, %76, %cst_24 [1] : vector<8x8xf32> to vector<8xf32>
    %78 = vector.shape_cast %77 : vector<8xf32> to vector<8x1xf32>
    %79 = vector.broadcast %78 : vector<8x1xf32> to vector<8x8xf32>
    %80 = arith.subf %76, %79 : vector<8x8xf32>
    %81 = math.exp %80 : vector<8x8xf32>
    %cst_25 = arith.constant dense<0.000000e+00> : vector<8xf32>
    %82 = vector.multi_reduction <add>, %81, %cst_25 [1] : vector<8x8xf32> to vector<8xf32>
    %83 = vector.shape_cast %82 : vector<8xf32> to vector<8x1xf32>
    %84 = tpu.reciprocal %83 {approx = true} : vector<8x1xf32> -> vector<8x1xf32>
    %85 = vector.broadcast %84 : vector<8x1xf32> to vector<8x8xf32>
    %86 = arith.mulf %81, %85 : vector<8x8xf32>
    %87 = arith.truncf %86 : vector<8x8xf32> to vector<8x8xbf16>
    %88 = vector.extract_strided_slice %38 {offsets = [0, 64], sizes = [8, 32], strides = [1, 1]} : vector<8x128xbf16> to vector<8x32xbf16>
    %cst_26 = arith.constant dense<0.000000e+00> : vector<8x32xf32>
    %89 = tpu.matmul %87, %88, %cst_26 {dimension_numbers = #tpu.dot_dimension_numbers<[1], [0], [0], [1], [0, 0, 1, 1], [], []>} : vector<8x8xbf16>, vector<8x32xbf16>, vector<8x32xf32> -> vector<8x32xf32>
    %90 = vector.extract_strided_slice %36 {offsets = [0, 96], sizes = [8, 32], strides = [1, 1]} : vector<8x128xbf16> to vector<8x32xbf16>
    %91 = vector.extract_strided_slice %37 {offsets = [0, 96], sizes = [8, 32], strides = [1, 1]} : vector<8x128xbf16> to vector<8x32xbf16>
    %cst_27 = arith.constant dense<0.000000e+00> : vector<8x8xf32>
    %92 = tpu.matmul %90, %91, %cst_27 {dimension_numbers = #tpu.dot_dimension_numbers<[1], [1], [0], [0], [0, 0, 1, 0], [], []>} : vector<8x32xbf16>, vector<8x32xbf16>, vector<8x8xf32> -> vector<8x8xf32>
    %93 = arith.addf %92, %35 : vector<8x8xf32>
    %cst_28 = arith.constant dense<0xFF800000> : vector<8xf32>
    %94 = vector.multi_reduction <maximumf>, %93, %cst_28 [1] : vector<8x8xf32> to vector<8xf32>
    %95 = vector.shape_cast %94 : vector<8xf32> to vector<8x1xf32>
    %96 = vector.broadcast %95 : vector<8x1xf32> to vector<8x8xf32>
    %97 = arith.subf %93, %96 : vector<8x8xf32>
    %98 = math.exp %97 : vector<8x8xf32>
    %cst_29 = arith.constant dense<0.000000e+00> : vector<8xf32>
    %99 = vector.multi_reduction <add>, %98, %cst_29 [1] : vector<8x8xf32> to vector<8xf32>
    %100 = vector.shape_cast %99 : vector<8xf32> to vector<8x1xf32>
    %101 = tpu.reciprocal %100 {approx = true} : vector<8x1xf32> -> vector<8x1xf32>
    %102 = vector.broadcast %101 : vector<8x1xf32> to vector<8x8xf32>
    %103 = arith.mulf %98, %102 : vector<8x8xf32>
    %104 = arith.truncf %103 : vector<8x8xf32> to vector<8x8xbf16>
    %105 = vector.extract_strided_slice %38 {offsets = [0, 96], sizes = [8, 32], strides = [1, 1]} : vector<8x128xbf16> to vector<8x32xbf16>
    %cst_30 = arith.constant dense<0.000000e+00> : vector<8x32xf32>
    %106 = tpu.matmul %104, %105, %cst_30 {dimension_numbers = #tpu.dot_dimension_numbers<[1], [0], [0], [1], [0, 0, 1, 1], [], []>} : vector<8x8xbf16>, vector<8x32xbf16>, vector<8x32xf32> -> vector<8x32xf32>
    %107 = tpu.concatenate %55, %72, %89, %106 in 1 : vector<8x32xf32>, vector<8x32xf32>, vector<8x32xf32>, vector<8x32xf32> -> vector<8x128xf32>
    %108 = arith.truncf %107 : vector<8x128xf32> to vector<8x128xbf16>
    %c0_31 = arith.constant 0 : index
    %c0_32 = arith.constant 0 : index
    %109 = vector.load %arg5[%c0_31, %c0_32] : memref<128x128xbf16, #tpu.memory_space<vmem>>, vector<128x128xbf16>
    %cst_33 = arith.constant dense<0.000000e+00> : vector<8x128xf32>
    %110 = tpu.matmul %108, %109, %cst_33 {dimension_numbers = #tpu.dot_dimension_numbers<[1], [0], [0], [1], [0, 0, 1, 1], [], []>} : vector<8x128xbf16>, vector<128x128xbf16>, vector<8x128xf32> -> vector<8x128xf32>
    %111 = arith.addf %1, %110 : vector<8x128xf32>
    %c2 = arith.constant 2 : index
    %c0_34 = arith.constant 0 : index
    %112 = vector.load %arg3[%c2, %c0_34] : memref<4x128xf32, #tpu.memory_space<vmem>>, vector<1x128xf32>
    %c3 = arith.constant 3 : index
    %c0_35 = arith.constant 0 : index
    %113 = vector.load %arg3[%c3, %c0_35] : memref<4x128xf32, #tpu.memory_space<vmem>>, vector<1x128xf32>
    %cst_36 = arith.constant dense<0.000000e+00> : vector<8xf32>
    %114 = vector.multi_reduction <add>, %111, %cst_36 [1] : vector<8x128xf32> to vector<8xf32>
    %115 = vector.shape_cast %114 : vector<8xf32> to vector<8x1xf32>
    %cst_37 = arith.constant 1.280000e+02 : f32
    %116 = vector.broadcast %cst_37 : f32 to vector<8x1xf32>
    %117 = arith.divf %115, %116 : vector<8x1xf32>
    %118 = vector.broadcast %117 : vector<8x1xf32> to vector<8x128xf32>
    %119 = arith.subf %111, %118 : vector<8x128xf32>
    %120 = arith.mulf %119, %119 : vector<8x128xf32>
    %cst_38 = arith.constant dense<0.000000e+00> : vector<8xf32>
    %121 = vector.multi_reduction <add>, %120, %cst_38 [1] : vector<8x128xf32> to vector<8xf32>
    %122 = vector.shape_cast %121 : vector<8xf32> to vector<8x1xf32>
    %cst_39 = arith.constant 1.280000e+02 : f32
    %123 = vector.broadcast %cst_39 : f32 to vector<8x1xf32>
    %124 = arith.divf %122, %123 : vector<8x1xf32>
    %125 = vector.broadcast %117 : vector<8x1xf32> to vector<8x128xf32>
    %126 = arith.subf %111, %125 : vector<8x128xf32>
    %cst_40 = arith.constant 9.99999997E-7 : f32
    %127 = vector.broadcast %cst_40 : f32 to vector<8x1xf32>
    %128 = arith.addf %124, %127 : vector<8x1xf32>
    %129 = math.rsqrt %128 : vector<8x1xf32>
    %130 = vector.broadcast %129 : vector<8x1xf32> to vector<8x128xf32>
    %131 = arith.mulf %126, %130 : vector<8x128xf32>
    %132 = vector.broadcast %112 : vector<1x128xf32> to vector<8x128xf32>
    %133 = arith.mulf %132, %131 : vector<8x128xf32>
    %134 = vector.broadcast %113 : vector<1x128xf32> to vector<8x128xf32>
    %135 = arith.addf %133, %134 : vector<8x128xf32>
    %136 = arith.truncf %135 : vector<8x128xf32> to vector<8x128xbf16>
    %c0_41 = arith.constant 0 : index
    %c0_42 = arith.constant 0 : index
    %137 = vector.load %arg6[%c0_41, %c0_42] : memref<128x256xbf16, #tpu.memory_space<vmem>>, vector<128x256xbf16>
    %cst_43 = arith.constant dense<0.000000e+00> : vector<8x256xf32>
    %138 = tpu.matmul %136, %137, %cst_43 {dimension_numbers = #tpu.dot_dimension_numbers<[1], [0], [0], [1], [0, 0, 1, 1], [], []>} : vector<8x128xbf16>, vector<128x256xbf16>, vector<8x256xf32> -> vector<8x256xf32>
    %c0_44 = arith.constant 0 : index
    %c0_45 = arith.constant 0 : index
    %139 = vector.load %arg7[%c0_44, %c0_45] : memref<1x256xf32, #tpu.memory_space<vmem>>, vector<1x256xf32>
    %140 = vector.broadcast %139 : vector<1x256xf32> to vector<8x256xf32>
    %141 = arith.addf %138, %140 : vector<8x256xf32>
    %cst_46 = arith.constant 0.000000e+00 : f32
    %142 = vector.broadcast %cst_46 : f32 to vector<8x256xf32>
    %143 = arith.maximumf %141, %142 : vector<8x256xf32>
    %144 = arith.truncf %143 : vector<8x256xf32> to vector<8x256xbf16>
    %c0_47 = arith.constant 0 : index
    %c0_48 = arith.constant 0 : index
    %145 = vector.load %arg8[%c0_47, %c0_48] : memref<256x128xbf16, #tpu.memory_space<vmem>>, vector<256x128xbf16>
    %cst_49 = arith.constant dense<0.000000e+00> : vector<8x128xf32>
    %146 = tpu.matmul %144, %145, %cst_49 {dimension_numbers = #tpu.dot_dimension_numbers<[1], [0], [0], [1], [0, 0, 1, 1], [], []>} : vector<8x256xbf16>, vector<256x128xbf16>, vector<8x128xf32> -> vector<8x128xf32>
    %147 = arith.addf %111, %146 : vector<8x128xf32>
    %c0_50 = arith.constant 0 : index
    %c0_51 = arith.constant 0 : index
    %148 = vector.load %arg9[%c0_50, %c0_51] : memref<1x128xf32, #tpu.memory_space<vmem>>, vector<1x128xf32>
    %149 = vector.broadcast %148 : vector<1x128xf32> to vector<8x128xf32>
    %150 = arith.addf %147, %149 : vector<8x128xf32>
    %c0_52 = arith.constant 0 : index
    %c0_53 = arith.constant 0 : index
    %c0_54 = arith.constant 0 : index
    %151 = vector.load %arg10[%c0_52, %c0_53, %c0_54] : memref<1x8x128xf32, #tpu.memory_space<vmem>>, vector<1x8x128xf32>
    %152 = vector.shape_cast %151 : vector<1x8x128xf32> to vector<8x128xf32>
    %153 = vector.shape_cast %150 : vector<8x128xf32> to vector<1x8x128xf32>
    tpu.vector_store %arg10[%c0_52, %c0_53, %c0_54], %153 {strides = array<i32>} : memref<1x8x128xf32, #tpu.memory_space<vmem>>, vector<1x8x128xf32>,
    return
  }
  func.func @transform_0(%arg0: i32) -> (i32, i32, i32) {
    %c0_i32 = arith.constant 0 : i32
    %c0_i32_0 = arith.constant 0 : i32
    %c0_i32_1 = arith.constant 0 : i32
    return %arg0, %c0_i32, %c0_i32_0 : i32, i32, i32
  }
  func.func @transform_1(%arg0: i32) -> (i32, i32, i32) {
    %c0_i32 = arith.constant 0 : i32
    %c0_i32_0 = arith.constant 0 : i32
    %c0_i32_1 = arith.constant 0 : i32
    return %arg0, %c0_i32, %c0_i32_0 : i32, i32, i32
  }
  func.func @transform_2(%arg0: i32) -> (i32, i32) {
    %c0_i32 = arith.constant 0 : i32
    %c0_i32_0 = arith.constant 0 : i32
    %c0_i32_1 = arith.constant 0 : i32
    return %c0_i32, %c0_i32_0 : i32, i32
  }
  func.func @transform_3(%arg0: i32) -> (i32, i32) {
    %c0_i32 = arith.constant 0 : i32
    %c0_i32_0 = arith.constant 0 : i32
    %c0_i32_1 = arith.constant 0 : i32
    return %c0_i32, %c0_i32_0 : i32, i32
  }
  func.func @transform_4(%arg0: i32) -> (i32, i32) {
    %c0_i32 = arith.constant 0 : i32
    %c0_i32_0 = arith.constant 0 : i32
    %c0_i32_1 = arith.constant 0 : i32
    return %c0_i32, %c0_i32_0 : i32, i32
  }
  func.func @transform_5(%arg0: i32) -> (i32, i32) {
    %c0_i32 = arith.constant 0 : i32
    %c0_i32_0 = arith.constant 0 : i32
    %c0_i32_1 = arith.constant 0 : i32
    return %c0_i32, %c0_i32_0 : i32, i32
  }
  func.func @transform_6(%arg0: i32) -> (i32, i32) {
    %c0_i32 = arith.constant 0 : i32
    %c0_i32_0 = arith.constant 0 : i32
    %c0_i32_1 = arith.constant 0 : i32
    return %c0_i32, %c0_i32_0 : i32, i32
  }
  func.func @transform_7(%arg0: i32) -> (i32, i32) {
    %c0_i32 = arith.constant 0 : i32
    %c0_i32_0 = arith.constant 0 : i32
    %c0_i32_1 = arith.constant 0 : i32
    return %c0_i32, %c0_i32_0 : i32, i32
  }
  func.func @transform_8(%arg0: i32) -> (i32, i32) {
    %c0_i32 = arith.constant 0 : i32
    %c0_i32_0 = arith.constant 0 : i32
    %c0_i32_1 = arith.constant 0 : i32
    return %c0_i32, %c0_i32_0 : i32, i32
  }
  func.func @transform_9(%arg0: i32) -> (i32, i32, i32) {
    %c0_i32 = arith.constant 0 : i32
    %c0_i32_0 = arith.constant 0 : i32
    %c0_i32_1 = arith.constant 0 : i32
    return %arg0, %c0_i32, %c0_i32_0 : i32, i32, i32
  }
}

module attributes {stable_mosaic.version = 11 : i64} {
  func.func @_decode_step_kernel(%arg0: i32, %arg1: memref<1xi32, #tpu.memory_space<smem>>, %arg2: memref<1x1x128xf32, #tpu.memory_space<vmem>>, %arg3: memref<1x1x8xf32, #tpu.memory_space<vmem>>, %arg4: memref<2x1x8x256xbf16, #tpu.memory_space<vmem>>, %arg5: memref<2x1x20x256xbf16, #tpu.memory_space<vmem>>, %arg6: memref<2x6x128xf32, #tpu.memory_space<vmem>>, %arg7: memref<2x128x384xbf16, #tpu.memory_space<vmem>>, %arg8: memref<2x128x128xbf16, #tpu.memory_space<vmem>>, %arg9: memref<2x128x128xbf16, #tpu.memory_space<vmem>>, %arg10: memref<2x128x128xbf16, #tpu.memory_space<vmem>>, %arg11: memref<2x128x256xbf16, #tpu.memory_space<vmem>>, %arg12: memref<2x1x256xf32, #tpu.memory_space<vmem>>, %arg13: memref<2x256x128xbf16, #tpu.memory_space<vmem>>, %arg14: memref<2x1x128xf32, #tpu.memory_space<vmem>>, %arg15: memref<2x128xf32, #tpu.memory_space<vmem>>, %arg16: memref<128x512xbf16, #tpu.memory_space<vmem>>, %arg17: memref<2x1x20x256xbf16, #tpu.memory_space<vmem>>, %arg18: memref<1x1x128xi32, #tpu.memory_space<vmem>>) attributes {dimension_semantics = [#tpu.dimension_semantics<parallel>], iteration_bounds = array<i64: 2>, scalar_prefetch = 0 : i64, scratch_operands = 0 : i64, tpu.core_type = #tpu.core_type<tc>, window_params = [{transform_indices = @transform_0, window_bounds = array<i64: 1>}, {transform_indices = @transform_1, window_bounds = array<i64: 1, 1, 128>}, {transform_indices = @transform_2, window_bounds = array<i64: 1, 1, 8>}, {transform_indices = @transform_3, window_bounds = array<i64: 2, 1, 8, 256>}, {transform_indices = @transform_4, window_bounds = array<i64: 2, 1, 20, 256>}, {pipeline_mode = #tpu.pipeline_mode<synchronous>, transform_indices = @transform_5, window_bounds = array<i64: 2, 6, 128>}, {pipeline_mode = #tpu.pipeline_mode<synchronous>, transform_indices = @transform_6, window_bounds = array<i64: 2, 128, 384>}, {pipeline_mode = #tpu.pipeline_mode<synchronous>, transform_indices = @transform_7, window_bounds = array<i64: 2, 128, 128>}, {pipeline_mode = #tpu.pipeline_mode<synchronous>, transform_indices = @transform_8, window_bounds = array<i64: 2, 128, 128>}, {pipeline_mode = #tpu.pipeline_mode<synchronous>, transform_indices = @transform_9, window_bounds = array<i64: 2, 128, 128>}, {pipeline_mode = #tpu.pipeline_mode<synchronous>, transform_indices = @transform_10, window_bounds = array<i64: 2, 128, 256>}, {pipeline_mode = #tpu.pipeline_mode<synchronous>, transform_indices = @transform_11, window_bounds = array<i64: 2, 1, 256>}, {pipeline_mode = #tpu.pipeline_mode<synchronous>, transform_indices = @transform_12, window_bounds = array<i64: 2, 256, 128>}, {pipeline_mode = #tpu.pipeline_mode<synchronous>, transform_indices = @transform_13, window_bounds = array<i64: 2, 1, 128>}, {pipeline_mode = #tpu.pipeline_mode<synchronous>, transform_indices = @transform_14, window_bounds = array<i64: 2, 128>}, {pipeline_mode = #tpu.pipeline_mode<synchronous>, transform_indices = @transform_15, window_bounds = array<i64: 128, 512>}, {transform_indices = @transform_16, window_bounds = array<i64: 2, 1, 20, 256>}, {transform_indices = @transform_17, window_bounds = array<i64: 1, 1, 128>}]} {
    %c0 = arith.constant 0 : index
    %0 = memref.load %arg1[%c0] : memref<1xi32, #tpu.memory_space<smem>>
    %c0_0 = arith.constant 0 : index
    %c0_1 = arith.constant 0 : index
    %c0_2 = arith.constant 0 : index
    %1 = vector.load %arg2[%c0_0, %c0_1, %c0_2] : memref<1x1x128xf32, #tpu.memory_space<vmem>>, vector<1x1x128xf32>
    %2 = vector.shape_cast %1 : vector<1x1x128xf32> to vector<1x128xf32>
    %3 = tpu.iota {dimensions = array<i32: 1>} : vector<1x20xi32>
    %4 = vector.broadcast %0 : i32 to vector<1x20xi32>
    %5 = arith.cmpi sgt, %3, %4 : vector<1x20xi32>
    %cst = arith.constant -1.000000e+09 : f32
    %cst_3 = arith.constant 0.000000e+00 : f32
    %6 = vector.broadcast %cst : f32 to vector<1x20xf32>
    %7 = vector.broadcast %cst_3 : f32 to vector<1x20xf32>
    %8 = arith.select %5, %6, %7 : vector<1x20xi1>, vector<1x20xf32>
    %c0_4 = arith.constant 0 : index
    %c0_5 = arith.constant 0 : index
    %c0_6 = arith.constant 0 : index
    %9 = vector.load %arg3[%c0_4, %c0_5, %c0_6] : memref<1x1x8xf32, #tpu.memory_space<vmem>>, vector<1x1x8xf32>
    %10 = vector.shape_cast %9 : vector<1x1x8xf32> to vector<1x8xf32>
    %11 = tpu.iota {dimensions = array<i32: 0>} : vector<20x1xi32>
    %12 = vector.broadcast %0 : i32 to vector<20x1xi32>
    %13 = arith.cmpi eq, %11, %12 : vector<20x1xi32>
    %c0_7 = arith.constant 0 : index
    %c0_8 = arith.constant 0 : index
    %c0_9 = arith.constant 0 : index
    %14 = vector.load %arg6[%c0_7, %c0_8, %c0_9] : memref<2x6x128xf32, #tpu.memory_space<vmem>>, vector<1x1x128xf32>
    %15 = vector.shape_cast %14 : vector<1x1x128xf32> to vector<1x128xf32>
    %c0_10 = arith.constant 0 : index
    %c1 = arith.constant 1 : index
    %c0_11 = arith.constant 0 : index
    %16 = vector.load %arg6[%c0_10, %c1, %c0_11] : memref<2x6x128xf32, #tpu.memory_space<vmem>>, vector<1x1x128xf32>
    %17 = vector.shape_cast %16 : vector<1x1x128xf32> to vector<1x128xf32>
    %cst_12 = arith.constant dense<0.000000e+00> : vector<1xf32>
    %18 = vector.multi_reduction <add>, %2, %cst_12 [1] : vector<1x128xf32> to vector<1xf32>
    %19 = vector.shape_cast %18 : vector<1xf32> to vector<1x1xf32>
    %cst_13 = arith.constant 1.280000e+02 : f32
    %20 = vector.broadcast %cst_13 : f32 to vector<1x1xf32>
    %21 = arith.divf %19, %20 : vector<1x1xf32>
    %22 = vector.broadcast %21 : vector<1x1xf32> to vector<1x128xf32>
    %23 = arith.subf %2, %22 : vector<1x128xf32>
    %24 = arith.mulf %23, %23 : vector<1x128xf32>
    %cst_14 = arith.constant dense<0.000000e+00> : vector<1xf32>
    %25 = vector.multi_reduction <add>, %24, %cst_14 [1] : vector<1x128xf32> to vector<1xf32>
    %26 = vector.shape_cast %25 : vector<1xf32> to vector<1x1xf32>
    %cst_15 = arith.constant 1.280000e+02 : f32
    %27 = vector.broadcast %cst_15 : f32 to vector<1x1xf32>
    %28 = arith.divf %26, %27 : vector<1x1xf32>
    %29 = vector.broadcast %21 : vector<1x1xf32> to vector<1x128xf32>
    %30 = arith.subf %2, %29 : vector<1x128xf32>
    %cst_16 = arith.constant 9.99999997E-7 : f32
    %31 = vector.broadcast %cst_16 : f32 to vector<1x1xf32>
    %32 = arith.addf %28, %31 : vector<1x1xf32>
    %33 = math.rsqrt %32 : vector<1x1xf32>
    %34 = vector.broadcast %33 : vector<1x1xf32> to vector<1x128xf32>
    %35 = arith.mulf %30, %34 : vector<1x128xf32>
    %36 = arith.mulf %15, %35 : vector<1x128xf32>
    %37 = arith.addf %36, %17 : vector<1x128xf32>
    %38 = arith.truncf %37 : vector<1x128xf32> to vector<1x128xbf16>
    %c0_17 = arith.constant 0 : index
    %c0_18 = arith.constant 0 : index
    %c0_19 = arith.constant 0 : index
    %39 = vector.load %arg7[%c0_17, %c0_18, %c0_19] : memref<2x128x384xbf16, #tpu.memory_space<vmem>>, vector<1x128x384xbf16>
    %40 = vector.shape_cast %39 : vector<1x128x384xbf16> to vector<128x384xbf16>
    %cst_20 = arith.constant dense<0.000000e+00> : vector<1x384xf32>
    %41 = tpu.matmul %38, %40, %cst_20 {dimension_numbers = #tpu.dot_dimension_numbers<[1], [0], [0], [1], [0, 0, 1, 1], [], []>} : vector<1x128xbf16>, vector<128x384xbf16>, vector<1x384xf32> -> vector<1x384xf32>
    %42 = vector.extract_strided_slice %41 {offsets = [0, 128], sizes = [1, 256], strides = [1, 1]} : vector<1x384xf32> to vector<1x256xf32>
    %c0_21 = arith.constant 0 : index
    %c0_22 = arith.constant 0 : index
    %c0_23 = arith.constant 0 : index
    %c0_24 = arith.constant 0 : index
    %43 = vector.load %arg5[%c0_21, %c0_22, %c0_23, %c0_24] : memref<2x1x20x256xbf16, #tpu.memory_space<vmem>>, vector<1x1x20x256xbf16>
    %44 = vector.shape_cast %43 : vector<1x1x20x256xbf16> to vector<20x256xbf16>
    %45 = arith.extf %44 : vector<20x256xbf16> to vector<20x256xf32>
    %46 = vector.shape_cast %13 : vector<20x1xi1> to vector<20x1xi1>
    %47 = vector.broadcast %46 : vector<20x1xi1> to vector<20x256xi1>
    %48 = vector.shape_cast %42 : vector<1x256xf32> to vector<1x256xf32>
    %49 = vector.broadcast %48 : vector<1x256xf32> to vector<20x256xf32>
    %50 = arith.select %47, %49, %45 : vector<20x256xi1>, vector<20x256xf32>
    %51 = arith.truncf %50 : vector<20x256xf32> to vector<20x256xbf16>
    %c0_25 = arith.constant 0 : index
    %c0_26 = arith.constant 0 : index
    %c0_27 = arith.constant 0 : index
    %c0_28 = arith.constant 0 : index
    %52 = vector.load %arg17[%c0_25, %c0_26, %c0_27, %c0_28] : memref<2x1x20x256xbf16, #tpu.memory_space<vmem>>, vector<1x1x20x256xbf16>
    %53 = vector.shape_cast %52 : vector<1x1x20x256xbf16> to vector<20x256xbf16>
    %54 = vector.shape_cast %51 : vector<20x256xbf16> to vector<1x1x20x256xbf16>
    tpu.vector_store %arg17[%c0_25, %c0_26, %c0_27, %c0_28], %54 {strides = array<i32>} : memref<2x1x20x256xbf16, #tpu.memory_space<vmem>>, vector<1x1x20x256xbf16>,
    %55 = vector.extract_strided_slice %41 {offsets = [0, 0], sizes = [1, 128], strides = [1, 1]} : vector<1x384xf32> to vector<1x128xf32>
    %56 = vector.extract_strided_slice %51 {offsets = [0, 0], sizes = [20, 128], strides = [1, 1]} : vector<20x256xbf16> to vector<20x128xbf16>
    %57 = vector.extract_strided_slice %51 {offsets = [0, 128], sizes = [20, 128], strides = [1, 1]} : vector<20x256xbf16> to vector<20x128xbf16>
    %58 = arith.truncf %55 : vector<1x128xf32> to vector<1x128xbf16>
    %59 = vector.extract_strided_slice %58 {offsets = [0, 0], sizes = [1, 32], strides = [1, 1]} : vector<1x128xbf16> to vector<1x32xbf16>
    %60 = vector.extract_strided_slice %56 {offsets = [0, 0], sizes = [20, 32], strides = [1, 1]} : vector<20x128xbf16> to vector<20x32xbf16>
    %cst_29 = arith.constant dense<0.000000e+00> : vector<1x20xf32>
    %61 = tpu.matmul %59, %60, %cst_29 {dimension_numbers = #tpu.dot_dimension_numbers<[1], [1], [0], [0], [0, 0, 1, 0], [], []>} : vector<1x32xbf16>, vector<20x32xbf16>, vector<1x20xf32> -> vector<1x20xf32>
    %62 = arith.addf %61, %8 : vector<1x20xf32>
    %cst_30 = arith.constant dense<0xFF800000> : vector<1xf32>
    %63 = vector.multi_reduction <maximumf>, %62, %cst_30 [1] : vector<1x20xf32> to vector<1xf32>
    %64 = vector.shape_cast %63 : vector<1xf32> to vector<1x1xf32>
    %65 = vector.broadcast %64 : vector<1x1xf32> to vector<1x20xf32>
    %66 = arith.subf %62, %65 : vector<1x20xf32>
    %67 = math.exp %66 : vector<1x20xf32>
    %cst_31 = arith.constant dense<0.000000e+00> : vector<1xf32>
    %68 = vector.multi_reduction <add>, %67, %cst_31 [1] : vector<1x20xf32> to vector<1xf32>
    %69 = vector.shape_cast %68 : vector<1xf32> to vector<1x1xf32>
    %70 = tpu.reciprocal %69 {approx = true} : vector<1x1xf32> -> vector<1x1xf32>
    %71 = vector.broadcast %70 : vector<1x1xf32> to vector<1x20xf32>
    %72 = arith.mulf %67, %71 : vector<1x20xf32>
    %73 = arith.truncf %72 : vector<1x20xf32> to vector<1x20xbf16>
    %74 = vector.extract_strided_slice %57 {offsets = [0, 0], sizes = [20, 32], strides = [1, 1]} : vector<20x128xbf16> to vector<20x32xbf16>
    %cst_32 = arith.constant dense<0.000000e+00> : vector<1x32xf32>
    %75 = tpu.matmul %73, %74, %cst_32 {dimension_numbers = #tpu.dot_dimension_numbers<[1], [0], [0], [1], [0, 0, 1, 1], [], []>} : vector<1x20xbf16>, vector<20x32xbf16>, vector<1x32xf32> -> vector<1x32xf32>
    %76 = vector.extract_strided_slice %58 {offsets = [0, 32], sizes = [1, 32], strides = [1, 1]} : vector<1x128xbf16> to vector<1x32xbf16>
    %77 = vector.extract_strided_slice %56 {offsets = [0, 32], sizes = [20, 32], strides = [1, 1]} : vector<20x128xbf16> to vector<20x32xbf16>
    %cst_33 = arith.constant dense<0.000000e+00> : vector<1x20xf32>
    %78 = tpu.matmul %76, %77, %cst_33 {dimension_numbers = #tpu.dot_dimension_numbers<[1], [1], [0], [0], [0, 0, 1, 0], [], []>} : vector<1x32xbf16>, vector<20x32xbf16>, vector<1x20xf32> -> vector<1x20xf32>
    %79 = arith.addf %78, %8 : vector<1x20xf32>
    %cst_34 = arith.constant dense<0xFF800000> : vector<1xf32>
    %80 = vector.multi_reduction <maximumf>, %79, %cst_34 [1] : vector<1x20xf32> to vector<1xf32>
    %81 = vector.shape_cast %80 : vector<1xf32> to vector<1x1xf32>
    %82 = vector.broadcast %81 : vector<1x1xf32> to vector<1x20xf32>
    %83 = arith.subf %79, %82 : vector<1x20xf32>
    %84 = math.exp %83 : vector<1x20xf32>
    %cst_35 = arith.constant dense<0.000000e+00> : vector<1xf32>
    %85 = vector.multi_reduction <add>, %84, %cst_35 [1] : vector<1x20xf32> to vector<1xf32>
    %86 = vector.shape_cast %85 : vector<1xf32> to vector<1x1xf32>
    %87 = tpu.reciprocal %86 {approx = true} : vector<1x1xf32> -> vector<1x1xf32>
    %88 = vector.broadcast %87 : vector<1x1xf32> to vector<1x20xf32>
    %89 = arith.mulf %84, %88 : vector<1x20xf32>
    %90 = arith.truncf %89 : vector<1x20xf32> to vector<1x20xbf16>
    %91 = vector.extract_strided_slice %57 {offsets = [0, 32], sizes = [20, 32], strides = [1, 1]} : vector<20x128xbf16> to vector<20x32xbf16>
    %cst_36 = arith.constant dense<0.000000e+00> : vector<1x32xf32>
    %92 = tpu.matmul %90, %91, %cst_36 {dimension_numbers = #tpu.dot_dimension_numbers<[1], [0], [0], [1], [0, 0, 1, 1], [], []>} : vector<1x20xbf16>, vector<20x32xbf16>, vector<1x32xf32> -> vector<1x32xf32>
    %93 = vector.extract_strided_slice %58 {offsets = [0, 64], sizes = [1, 32], strides = [1, 1]} : vector<1x128xbf16> to vector<1x32xbf16>
    %94 = vector.extract_strided_slice %56 {offsets = [0, 64], sizes = [20, 32], strides = [1, 1]} : vector<20x128xbf16> to vector<20x32xbf16>
    %cst_37 = arith.constant dense<0.000000e+00> : vector<1x20xf32>
    %95 = tpu.matmul %93, %94, %cst_37 {dimension_numbers = #tpu.dot_dimension_numbers<[1], [1], [0], [0], [0, 0, 1, 0], [], []>} : vector<1x32xbf16>, vector<20x32xbf16>, vector<1x20xf32> -> vector<1x20xf32>
    %96 = arith.addf %95, %8 : vector<1x20xf32>
    %cst_38 = arith.constant dense<0xFF800000> : vector<1xf32>
    %97 = vector.multi_reduction <maximumf>, %96, %cst_38 [1] : vector<1x20xf32> to vector<1xf32>
    %98 = vector.shape_cast %97 : vector<1xf32> to vector<1x1xf32>
    %99 = vector.broadcast %98 : vector<1x1xf32> to vector<1x20xf32>
    %100 = arith.subf %96, %99 : vector<1x20xf32>
    %101 = math.exp %100 : vector<1x20xf32>
    %cst_39 = arith.constant dense<0.000000e+00> : vector<1xf32>
    %102 = vector.multi_reduction <add>, %101, %cst_39 [1] : vector<1x20xf32> to vector<1xf32>
    %103 = vector.shape_cast %102 : vector<1xf32> to vector<1x1xf32>
    %104 = tpu.reciprocal %103 {approx = true} : vector<1x1xf32> -> vector<1x1xf32>
    %105 = vector.broadcast %104 : vector<1x1xf32> to vector<1x20xf32>
    %106 = arith.mulf %101, %105 : vector<1x20xf32>
    %107 = arith.truncf %106 : vector<1x20xf32> to vector<1x20xbf16>
    %108 = vector.extract_strided_slice %57 {offsets = [0, 64], sizes = [20, 32], strides = [1, 1]} : vector<20x128xbf16> to vector<20x32xbf16>
    %cst_40 = arith.constant dense<0.000000e+00> : vector<1x32xf32>
    %109 = tpu.matmul %107, %108, %cst_40 {dimension_numbers = #tpu.dot_dimension_numbers<[1], [0], [0], [1], [0, 0, 1, 1], [], []>} : vector<1x20xbf16>, vector<20x32xbf16>, vector<1x32xf32> -> vector<1x32xf32>
    %110 = vector.extract_strided_slice %58 {offsets = [0, 96], sizes = [1, 32], strides = [1, 1]} : vector<1x128xbf16> to vector<1x32xbf16>
    %111 = vector.extract_strided_slice %56 {offsets = [0, 96], sizes = [20, 32], strides = [1, 1]} : vector<20x128xbf16> to vector<20x32xbf16>
    %cst_41 = arith.constant dense<0.000000e+00> : vector<1x20xf32>
    %112 = tpu.matmul %110, %111, %cst_41 {dimension_numbers = #tpu.dot_dimension_numbers<[1], [1], [0], [0], [0, 0, 1, 0], [], []>} : vector<1x32xbf16>, vector<20x32xbf16>, vector<1x20xf32> -> vector<1x20xf32>
    %113 = arith.addf %112, %8 : vector<1x20xf32>
    %cst_42 = arith.constant dense<0xFF800000> : vector<1xf32>
    %114 = vector.multi_reduction <maximumf>, %113, %cst_42 [1] : vector<1x20xf32> to vector<1xf32>
    %115 = vector.shape_cast %114 : vector<1xf32> to vector<1x1xf32>
    %116 = vector.broadcast %115 : vector<1x1xf32> to vector<1x20xf32>
    %117 = arith.subf %113, %116 : vector<1x20xf32>
    %118 = math.exp %117 : vector<1x20xf32>
    %cst_43 = arith.constant dense<0.000000e+00> : vector<1xf32>
    %119 = vector.multi_reduction <add>, %118, %cst_43 [1] : vector<1x20xf32> to vector<1xf32>
    %120 = vector.shape_cast %119 : vector<1xf32> to vector<1x1xf32>
    %121 = tpu.reciprocal %120 {approx = true} : vector<1x1xf32> -> vector<1x1xf32>
    %122 = vector.broadcast %121 : vector<1x1xf32> to vector<1x20xf32>
    %123 = arith.mulf %118, %122 : vector<1x20xf32>
    %124 = arith.truncf %123 : vector<1x20xf32> to vector<1x20xbf16>
    %125 = vector.extract_strided_slice %57 {offsets = [0, 96], sizes = [20, 32], strides = [1, 1]} : vector<20x128xbf16> to vector<20x32xbf16>
    %cst_44 = arith.constant dense<0.000000e+00> : vector<1x32xf32>
    %126 = tpu.matmul %124, %125, %cst_44 {dimension_numbers = #tpu.dot_dimension_numbers<[1], [0], [0], [1], [0, 0, 1, 1], [], []>} : vector<1x20xbf16>, vector<20x32xbf16>, vector<1x32xf32> -> vector<1x32xf32>
    %127 = tpu.concatenate %75, %92, %109, %126 in 1 : vector<1x32xf32>, vector<1x32xf32>, vector<1x32xf32>, vector<1x32xf32> -> vector<1x128xf32>
    %128 = arith.truncf %127 : vector<1x128xf32> to vector<1x128xbf16>
    %c0_45 = arith.constant 0 : index
    %c0_46 = arith.constant 0 : index
    %c0_47 = arith.constant 0 : index
    %129 = vector.load %arg8[%c0_45, %c0_46, %c0_47] : memref<2x128x128xbf16, #tpu.memory_space<vmem>>, vector<1x128x128xbf16>
    %130 = vector.shape_cast %129 : vector<1x128x128xbf16> to vector<128x128xbf16>
    %cst_48 = arith.constant dense<0.000000e+00> : vector<1x128xf32>
    %131 = tpu.matmul %128, %130, %cst_48 {dimension_numbers = #tpu.dot_dimension_numbers<[1], [0], [0], [1], [0, 0, 1, 1], [], []>} : vector<1x128xbf16>, vector<128x128xbf16>, vector<1x128xf32> -> vector<1x128xf32>
    %132 = arith.addf %2, %131 : vector<1x128xf32>
    %c0_49 = arith.constant 0 : index
    %c2 = arith.constant 2 : index
    %c0_50 = arith.constant 0 : index
    %133 = vector.load %arg6[%c0_49, %c2, %c0_50] : memref<2x6x128xf32, #tpu.memory_space<vmem>>, vector<1x1x128xf32>
    %134 = vector.shape_cast %133 : vector<1x1x128xf32> to vector<1x128xf32>
    %c0_51 = arith.constant 0 : index
    %c3 = arith.constant 3 : index
    %c0_52 = arith.constant 0 : index
    %135 = vector.load %arg6[%c0_51, %c3, %c0_52] : memref<2x6x128xf32, #tpu.memory_space<vmem>>, vector<1x1x128xf32>
    %136 = vector.shape_cast %135 : vector<1x1x128xf32> to vector<1x128xf32>
    %cst_53 = arith.constant dense<0.000000e+00> : vector<1xf32>
    %137 = vector.multi_reduction <add>, %132, %cst_53 [1] : vector<1x128xf32> to vector<1xf32>
    %138 = vector.shape_cast %137 : vector<1xf32> to vector<1x1xf32>
    %cst_54 = arith.constant 1.280000e+02 : f32
    %139 = vector.broadcast %cst_54 : f32 to vector<1x1xf32>
    %140 = arith.divf %138, %139 : vector<1x1xf32>
    %141 = vector.broadcast %140 : vector<1x1xf32> to vector<1x128xf32>
    %142 = arith.subf %132, %141 : vector<1x128xf32>
    %143 = arith.mulf %142, %142 : vector<1x128xf32>
    %cst_55 = arith.constant dense<0.000000e+00> : vector<1xf32>
    %144 = vector.multi_reduction <add>, %143, %cst_55 [1] : vector<1x128xf32> to vector<1xf32>
    %145 = vector.shape_cast %144 : vector<1xf32> to vector<1x1xf32>
    %cst_56 = arith.constant 1.280000e+02 : f32
    %146 = vector.broadcast %cst_56 : f32 to vector<1x1xf32>
    %147 = arith.divf %145, %146 : vector<1x1xf32>
    %148 = vector.broadcast %140 : vector<1x1xf32> to vector<1x128xf32>
    %149 = arith.subf %132, %148 : vector<1x128xf32>
    %cst_57 = arith.constant 9.99999997E-7 : f32
    %150 = vector.broadcast %cst_57 : f32 to vector<1x1xf32>
    %151 = arith.addf %147, %150 : vector<1x1xf32>
    %152 = math.rsqrt %151 : vector<1x1xf32>
    %153 = vector.broadcast %152 : vector<1x1xf32> to vector<1x128xf32>
    %154 = arith.mulf %149, %153 : vector<1x128xf32>
    %155 = arith.mulf %134, %154 : vector<1x128xf32>
    %156 = arith.addf %155, %136 : vector<1x128xf32>
    %157 = arith.truncf %156 : vector<1x128xf32> to vector<1x128xbf16>
    %c0_58 = arith.constant 0 : index
    %c0_59 = arith.constant 0 : index
    %c0_60 = arith.constant 0 : index
    %158 = vector.load %arg9[%c0_58, %c0_59, %c0_60] : memref<2x128x128xbf16, #tpu.memory_space<vmem>>, vector<1x128x128xbf16>
    %159 = vector.shape_cast %158 : vector<1x128x128xbf16> to vector<128x128xbf16>
    %cst_61 = arith.constant dense<0.000000e+00> : vector<1x128xf32>
    %160 = tpu.matmul %157, %159, %cst_61 {dimension_numbers = #tpu.dot_dimension_numbers<[1], [0], [0], [1], [0, 0, 1, 1], [], []>} : vector<1x128xbf16>, vector<128x128xbf16>, vector<1x128xf32> -> vector<1x128xf32>
    %c0_62 = arith.constant 0 : index
    %c0_63 = arith.constant 0 : index
    %c0_64 = arith.constant 0 : index
    %c0_65 = arith.constant 0 : index
    %161 = vector.load %arg4[%c0_62, %c0_63, %c0_64, %c0_65] : memref<2x1x8x256xbf16, #tpu.memory_space<vmem>>, vector<1x1x8x128xbf16>
    %162 = vector.shape_cast %161 : vector<1x1x8x128xbf16> to vector<8x128xbf16>
    %c0_66 = arith.constant 0 : index
    %c0_67 = arith.constant 0 : index
    %c0_68 = arith.constant 0 : index
    %c128 = arith.constant 128 : index
    %163 = vector.load %arg4[%c0_66, %c0_67, %c0_68, %c128] : memref<2x1x8x256xbf16, #tpu.memory_space<vmem>>, vector<1x1x8x128xbf16>
    %164 = vector.shape_cast %163 : vector<1x1x8x128xbf16> to vector<8x128xbf16>
    %165 = arith.truncf %160 : vector<1x128xf32> to vector<1x128xbf16>
    %166 = vector.extract_strided_slice %165 {offsets = [0, 0], sizes = [1, 32], strides = [1, 1]} : vector<1x128xbf16> to vector<1x32xbf16>
    %167 = vector.extract_strided_slice %162 {offsets = [0, 0], sizes = [8, 32], strides = [1, 1]} : vector<8x128xbf16> to vector<8x32xbf16>
    %cst_69 = arith.constant dense<0.000000e+00> : vector<1x8xf32>
    %168 = tpu.matmul %166, %167, %cst_69 {dimension_numbers = #tpu.dot_dimension_numbers<[1], [1], [0], [0], [0, 0, 1, 0], [], []>} : vector<1x32xbf16>, vector<8x32xbf16>, vector<1x8xf32> -> vector<1x8xf32>
    %169 = arith.addf %168, %10 : vector<1x8xf32>
    %cst_70 = arith.constant dense<0xFF800000> : vector<1xf32>
    %170 = vector.multi_reduction <maximumf>, %169, %cst_70 [1] : vector<1x8xf32> to vector<1xf32>
    %171 = vector.shape_cast %170 : vector<1xf32> to vector<1x1xf32>
    %172 = vector.broadcast %171 : vector<1x1xf32> to vector<1x8xf32>
    %173 = arith.subf %169, %172 : vector<1x8xf32>
    %174 = math.exp %173 : vector<1x8xf32>
    %cst_71 = arith.constant dense<0.000000e+00> : vector<1xf32>
    %175 = vector.multi_reduction <add>, %174, %cst_71 [1] : vector<1x8xf32> to vector<1xf32>
    %176 = vector.shape_cast %175 : vector<1xf32> to vector<1x1xf32>
    %177 = tpu.reciprocal %176 {approx = true} : vector<1x1xf32> -> vector<1x1xf32>
    %178 = vector.broadcast %177 : vector<1x1xf32> to vector<1x8xf32>
    %179 = arith.mulf %174, %178 : vector<1x8xf32>
    %180 = arith.truncf %179 : vector<1x8xf32> to vector<1x8xbf16>
    %181 = vector.extract_strided_slice %164 {offsets = [0, 0], sizes = [8, 32], strides = [1, 1]} : vector<8x128xbf16> to vector<8x32xbf16>
    %cst_72 = arith.constant dense<0.000000e+00> : vector<1x32xf32>
    %182 = tpu.matmul %180, %181, %cst_72 {dimension_numbers = #tpu.dot_dimension_numbers<[1], [0], [0], [1], [0, 0, 1, 1], [], []>} : vector<1x8xbf16>, vector<8x32xbf16>, vector<1x32xf32> -> vector<1x32xf32>
    %183 = vector.extract_strided_slice %165 {offsets = [0, 32], sizes = [1, 32], strides = [1, 1]} : vector<1x128xbf16> to vector<1x32xbf16>
    %184 = vector.extract_strided_slice %162 {offsets = [0, 32], sizes = [8, 32], strides = [1, 1]} : vector<8x128xbf16> to vector<8x32xbf16>
    %cst_73 = arith.constant dense<0.000000e+00> : vector<1x8xf32>
    %185 = tpu.matmul %183, %184, %cst_73 {dimension_numbers = #tpu.dot_dimension_numbers<[1], [1], [0], [0], [0, 0, 1, 0], [], []>} : vector<1x32xbf16>, vector<8x32xbf16>, vector<1x8xf32> -> vector<1x8xf32>
    %186 = arith.addf %185, %10 : vector<1x8xf32>
    %cst_74 = arith.constant dense<0xFF800000> : vector<1xf32>
    %187 = vector.multi_reduction <maximumf>, %186, %cst_74 [1] : vector<1x8xf32> to vector<1xf32>
    %188 = vector.shape_cast %187 : vector<1xf32> to vector<1x1xf32>
    %189 = vector.broadcast %188 : vector<1x1xf32> to vector<1x8xf32>
    %190 = arith.subf %186, %189 : vector<1x8xf32>
    %191 = math.exp %190 : vector<1x8xf32>
    %cst_75 = arith.constant dense<0.000000e+00> : vector<1xf32>
    %192 = vector.multi_reduction <add>, %191, %cst_75 [1] : vector<1x8xf32> to vector<1xf32>
    %193 = vector.shape_cast %192 : vector<1xf32> to vector<1x1xf32>
    %194 = tpu.reciprocal %193 {approx = true} : vector<1x1xf32> -> vector<1x1xf32>
    %195 = vector.broadcast %194 : vector<1x1xf32> to vector<1x8xf32>
    %196 = arith.mulf %191, %195 : vector<1x8xf32>
    %197 = arith.truncf %196 : vector<1x8xf32> to vector<1x8xbf16>
    %198 = vector.extract_strided_slice %164 {offsets = [0, 32], sizes = [8, 32], strides = [1, 1]} : vector<8x128xbf16> to vector<8x32xbf16>
    %cst_76 = arith.constant dense<0.000000e+00> : vector<1x32xf32>
    %199 = tpu.matmul %197, %198, %cst_76 {dimension_numbers = #tpu.dot_dimension_numbers<[1], [0], [0], [1], [0, 0, 1, 1], [], []>} : vector<1x8xbf16>, vector<8x32xbf16>, vector<1x32xf32> -> vector<1x32xf32>
    %200 = vector.extract_strided_slice %165 {offsets = [0, 64], sizes = [1, 32], strides = [1, 1]} : vector<1x128xbf16> to vector<1x32xbf16>
    %201 = vector.extract_strided_slice %162 {offsets = [0, 64], sizes = [8, 32], strides = [1, 1]} : vector<8x128xbf16> to vector<8x32xbf16>
    %cst_77 = arith.constant dense<0.000000e+00> : vector<1x8xf32>
    %202 = tpu.matmul %200, %201, %cst_77 {dimension_numbers = #tpu.dot_dimension_numbers<[1], [1], [0], [0], [0, 0, 1, 0], [], []>} : vector<1x32xbf16>, vector<8x32xbf16>, vector<1x8xf32> -> vector<1x8xf32>
    %203 = arith.addf %202, %10 : vector<1x8xf32>
    %cst_78 = arith.constant dense<0xFF800000> : vector<1xf32>
    %204 = vector.multi_reduction <maximumf>, %203, %cst_78 [1] : vector<1x8xf32> to vector<1xf32>
    %205 = vector.shape_cast %204 : vector<1xf32> to vector<1x1xf32>
    %206 = vector.broadcast %205 : vector<1x1xf32> to vector<1x8xf32>
    %207 = arith.subf %203, %206 : vector<1x8xf32>
    %208 = math.exp %207 : vector<1x8xf32>
    %cst_79 = arith.constant dense<0.000000e+00> : vector<1xf32>
    %209 = vector.multi_reduction <add>, %208, %cst_79 [1] : vector<1x8xf32> to vector<1xf32>
    %210 = vector.shape_cast %209 : vector<1xf32> to vector<1x1xf32>
    %211 = tpu.reciprocal %210 {approx = true} : vector<1x1xf32> -> vector<1x1xf32>
    %212 = vector.broadcast %211 : vector<1x1xf32> to vector<1x8xf32>
    %213 = arith.mulf %208, %212 : vector<1x8xf32>
    %214 = arith.truncf %213 : vector<1x8xf32> to vector<1x8xbf16>
    %215 = vector.extract_strided_slice %164 {offsets = [0, 64], sizes = [8, 32], strides = [1, 1]} : vector<8x128xbf16> to vector<8x32xbf16>
    %cst_80 = arith.constant dense<0.000000e+00> : vector<1x32xf32>
    %216 = tpu.matmul %214, %215, %cst_80 {dimension_numbers = #tpu.dot_dimension_numbers<[1], [0], [0], [1], [0, 0, 1, 1], [], []>} : vector<1x8xbf16>, vector<8x32xbf16>, vector<1x32xf32> -> vector<1x32xf32>
    %217 = vector.extract_strided_slice %165 {offsets = [0, 96], sizes = [1, 32], strides = [1, 1]} : vector<1x128xbf16> to vector<1x32xbf16>
    %218 = vector.extract_strided_slice %162 {offsets = [0, 96], sizes = [8, 32], strides = [1, 1]} : vector<8x128xbf16> to vector<8x32xbf16>
    %cst_81 = arith.constant dense<0.000000e+00> : vector<1x8xf32>
    %219 = tpu.matmul %217, %218, %cst_81 {dimension_numbers = #tpu.dot_dimension_numbers<[1], [1], [0], [0], [0, 0, 1, 0], [], []>} : vector<1x32xbf16>, vector<8x32xbf16>, vector<1x8xf32> -> vector<1x8xf32>
    %220 = arith.addf %219, %10 : vector<1x8xf32>
    %cst_82 = arith.constant dense<0xFF800000> : vector<1xf32>
    %221 = vector.multi_reduction <maximumf>, %220, %cst_82 [1] : vector<1x8xf32> to vector<1xf32>
    %222 = vector.shape_cast %221 : vector<1xf32> to vector<1x1xf32>
    %223 = vector.broadcast %222 : vector<1x1xf32> to vector<1x8xf32>
    %224 = arith.subf %220, %223 : vector<1x8xf32>
    %225 = math.exp %224 : vector<1x8xf32>
    %cst_83 = arith.constant dense<0.000000e+00> : vector<1xf32>
    %226 = vector.multi_reduction <add>, %225, %cst_83 [1] : vector<1x8xf32> to vector<1xf32>
    %227 = vector.shape_cast %226 : vector<1xf32> to vector<1x1xf32>
    %228 = tpu.reciprocal %227 {approx = true} : vector<1x1xf32> -> vector<1x1xf32>
    %229 = vector.broadcast %228 : vector<1x1xf32> to vector<1x8xf32>
    %230 = arith.mulf %225, %229 : vector<1x8xf32>
    %231 = arith.truncf %230 : vector<1x8xf32> to vector<1x8xbf16>
    %232 = vector.extract_strided_slice %164 {offsets = [0, 96], sizes = [8, 32], strides = [1, 1]} : vector<8x128xbf16> to vector<8x32xbf16>
    %cst_84 = arith.constant dense<0.000000e+00> : vector<1x32xf32>
    %233 = tpu.matmul %231, %232, %cst_84 {dimension_numbers = #tpu.dot_dimension_numbers<[1], [0], [0], [1], [0, 0, 1, 1], [], []>} : vector<1x8xbf16>, vector<8x32xbf16>, vector<1x32xf32> -> vector<1x32xf32>
    %234 = tpu.concatenate %182, %199, %216, %233 in 1 : vector<1x32xf32>, vector<1x32xf32>, vector<1x32xf32>, vector<1x32xf32> -> vector<1x128xf32>
    %235 = arith.truncf %234 : vector<1x128xf32> to vector<1x128xbf16>
    %c0_85 = arith.constant 0 : index
    %c0_86 = arith.constant 0 : index
    %c0_87 = arith.constant 0 : index
    %236 = vector.load %arg10[%c0_85, %c0_86, %c0_87] : memref<2x128x128xbf16, #tpu.memory_space<vmem>>, vector<1x128x128xbf16>
    %237 = vector.shape_cast %236 : vector<1x128x128xbf16> to vector<128x128xbf16>
    %cst_88 = arith.constant dense<0.000000e+00> : vector<1x128xf32>
    %238 = tpu.matmul %235, %237, %cst_88 {dimension_numbers = #tpu.dot_dimension_numbers<[1], [0], [0], [1], [0, 0, 1, 1], [], []>} : vector<1x128xbf16>, vector<128x128xbf16>, vector<1x128xf32> -> vector<1x128xf32>
    %239 = arith.addf %132, %238 : vector<1x128xf32>
    %c0_89 = arith.constant 0 : index
    %c4 = arith.constant 4 : index
    %c0_90 = arith.constant 0 : index
    %240 = vector.load %arg6[%c0_89, %c4, %c0_90] : memref<2x6x128xf32, #tpu.memory_space<vmem>>, vector<1x1x128xf32>
    %241 = vector.shape_cast %240 : vector<1x1x128xf32> to vector<1x128xf32>
    %c0_91 = arith.constant 0 : index
    %c5 = arith.constant 5 : index
    %c0_92 = arith.constant 0 : index
    %242 = vector.load %arg6[%c0_91, %c5, %c0_92] : memref<2x6x128xf32, #tpu.memory_space<vmem>>, vector<1x1x128xf32>
    %243 = vector.shape_cast %242 : vector<1x1x128xf32> to vector<1x128xf32>
    %cst_93 = arith.constant dense<0.000000e+00> : vector<1xf32>
    %244 = vector.multi_reduction <add>, %239, %cst_93 [1] : vector<1x128xf32> to vector<1xf32>
    %245 = vector.shape_cast %244 : vector<1xf32> to vector<1x1xf32>
    %cst_94 = arith.constant 1.280000e+02 : f32
    %246 = vector.broadcast %cst_94 : f32 to vector<1x1xf32>
    %247 = arith.divf %245, %246 : vector<1x1xf32>
    %248 = vector.broadcast %247 : vector<1x1xf32> to vector<1x128xf32>
    %249 = arith.subf %239, %248 : vector<1x128xf32>
    %250 = arith.mulf %249, %249 : vector<1x128xf32>
    %cst_95 = arith.constant dense<0.000000e+00> : vector<1xf32>
    %251 = vector.multi_reduction <add>, %250, %cst_95 [1] : vector<1x128xf32> to vector<1xf32>
    %252 = vector.shape_cast %251 : vector<1xf32> to vector<1x1xf32>
    %cst_96 = arith.constant 1.280000e+02 : f32
    %253 = vector.broadcast %cst_96 : f32 to vector<1x1xf32>
    %254 = arith.divf %252, %253 : vector<1x1xf32>
    %255 = vector.broadcast %247 : vector<1x1xf32> to vector<1x128xf32>
    %256 = arith.subf %239, %255 : vector<1x128xf32>
    %cst_97 = arith.constant 9.99999997E-7 : f32
    %257 = vector.broadcast %cst_97 : f32 to vector<1x1xf32>
    %258 = arith.addf %254, %257 : vector<1x1xf32>
    %259 = math.rsqrt %258 : vector<1x1xf32>
    %260 = vector.broadcast %259 : vector<1x1xf32> to vector<1x128xf32>
    %261 = arith.mulf %256, %260 : vector<1x128xf32>
    %262 = arith.mulf %241, %261 : vector<1x128xf32>
    %263 = arith.addf %262, %243 : vector<1x128xf32>
    %264 = arith.truncf %263 : vector<1x128xf32> to vector<1x128xbf16>
    %c0_98 = arith.constant 0 : index
    %c0_99 = arith.constant 0 : index
    %c0_100 = arith.constant 0 : index
    %265 = vector.load %arg11[%c0_98, %c0_99, %c0_100] : memref<2x128x256xbf16, #tpu.memory_space<vmem>>, vector<1x128x256xbf16>
    %266 = vector.shape_cast %265 : vector<1x128x256xbf16> to vector<128x256xbf16>
    %cst_101 = arith.constant dense<0.000000e+00> : vector<1x256xf32>
    %267 = tpu.matmul %264, %266, %cst_101 {dimension_numbers = #tpu.dot_dimension_numbers<[1], [0], [0], [1], [0, 0, 1, 1], [], []>} : vector<1x128xbf16>, vector<128x256xbf16>, vector<1x256xf32> -> vector<1x256xf32>
    %c0_102 = arith.constant 0 : index
    %c0_103 = arith.constant 0 : index
    %c0_104 = arith.constant 0 : index
    %268 = vector.load %arg12[%c0_102, %c0_103, %c0_104] : memref<2x1x256xf32, #tpu.memory_space<vmem>>, vector<1x1x256xf32>
    %269 = vector.shape_cast %268 : vector<1x1x256xf32> to vector<1x256xf32>
    %270 = arith.addf %267, %269 : vector<1x256xf32>
    %cst_105 = arith.constant 0.000000e+00 : f32
    %271 = vector.broadcast %cst_105 : f32 to vector<1x256xf32>
    %272 = arith.maximumf %270, %271 : vector<1x256xf32>
    %273 = arith.truncf %272 : vector<1x256xf32> to vector<1x256xbf16>
    %c0_106 = arith.constant 0 : index
    %c0_107 = arith.constant 0 : index
    %c0_108 = arith.constant 0 : index
    %274 = vector.load %arg13[%c0_106, %c0_107, %c0_108] : memref<2x256x128xbf16, #tpu.memory_space<vmem>>, vector<1x256x128xbf16>
    %275 = vector.shape_cast %274 : vector<1x256x128xbf16> to vector<256x128xbf16>
    %cst_109 = arith.constant dense<0.000000e+00> : vector<1x128xf32>
    %276 = tpu.matmul %273, %275, %cst_109 {dimension_numbers = #tpu.dot_dimension_numbers<[1], [0], [0], [1], [0, 0, 1, 1], [], []>} : vector<1x256xbf16>, vector<256x128xbf16>, vector<1x128xf32> -> vector<1x128xf32>
    %277 = arith.addf %239, %276 : vector<1x128xf32>
    %c0_110 = arith.constant 0 : index
    %c0_111 = arith.constant 0 : index
    %c0_112 = arith.constant 0 : index
    %278 = vector.load %arg14[%c0_110, %c0_111, %c0_112] : memref<2x1x128xf32, #tpu.memory_space<vmem>>, vector<1x1x128xf32>
    %279 = vector.shape_cast %278 : vector<1x1x128xf32> to vector<1x128xf32>
    %280 = arith.addf %277, %279 : vector<1x128xf32>
    %c1_113 = arith.constant 1 : index
    %c0_114 = arith.constant 0 : index
    %c0_115 = arith.constant 0 : index
    %281 = vector.load %arg6[%c1_113, %c0_114, %c0_115] : memref<2x6x128xf32, #tpu.memory_space<vmem>>, vector<1x1x128xf32>
    %282 = vector.shape_cast %281 : vector<1x1x128xf32> to vector<1x128xf32>
    %c1_116 = arith.constant 1 : index
    %c1_117 = arith.constant 1 : index
    %c0_118 = arith.constant 0 : index
    %283 = vector.load %arg6[%c1_116, %c1_117, %c0_118] : memref<2x6x128xf32, #tpu.memory_space<vmem>>, vector<1x1x128xf32>
    %284 = vector.shape_cast %283 : vector<1x1x128xf32> to vector<1x128xf32>
    %cst_119 = arith.constant dense<0.000000e+00> : vector<1xf32>
    %285 = vector.multi_reduction <add>, %280, %cst_119 [1] : vector<1x128xf32> to vector<1xf32>
    %286 = vector.shape_cast %285 : vector<1xf32> to vector<1x1xf32>
    %cst_120 = arith.constant 1.280000e+02 : f32
    %287 = vector.broadcast %cst_120 : f32 to vector<1x1xf32>
    %288 = arith.divf %286, %287 : vector<1x1xf32>
    %289 = vector.broadcast %288 : vector<1x1xf32> to vector<1x128xf32>
    %290 = arith.subf %280, %289 : vector<1x128xf32>
    %291 = arith.mulf %290, %290 : vector<1x128xf32>
    %cst_121 = arith.constant dense<0.000000e+00> : vector<1xf32>
    %292 = vector.multi_reduction <add>, %291, %cst_121 [1] : vector<1x128xf32> to vector<1xf32>
    %293 = vector.shape_cast %292 : vector<1xf32> to vector<1x1xf32>
    %cst_122 = arith.constant 1.280000e+02 : f32
    %294 = vector.broadcast %cst_122 : f32 to vector<1x1xf32>
    %295 = arith.divf %293, %294 : vector<1x1xf32>
    %296 = vector.broadcast %288 : vector<1x1xf32> to vector<1x128xf32>
    %297 = arith.subf %280, %296 : vector<1x128xf32>
    %cst_123 = arith.constant 9.99999997E-7 : f32
    %298 = vector.broadcast %cst_123 : f32 to vector<1x1xf32>
    %299 = arith.addf %295, %298 : vector<1x1xf32>
    %300 = math.rsqrt %299 : vector<1x1xf32>
    %301 = vector.broadcast %300 : vector<1x1xf32> to vector<1x128xf32>
    %302 = arith.mulf %297, %301 : vector<1x128xf32>
    %303 = arith.mulf %282, %302 : vector<1x128xf32>
    %304 = arith.addf %303, %284 : vector<1x128xf32>
    %305 = arith.truncf %304 : vector<1x128xf32> to vector<1x128xbf16>
    %c1_124 = arith.constant 1 : index
    %c0_125 = arith.constant 0 : index
    %c0_126 = arith.constant 0 : index
    %306 = vector.load %arg7[%c1_124, %c0_125, %c0_126] : memref<2x128x384xbf16, #tpu.memory_space<vmem>>, vector<1x128x384xbf16>
    %307 = vector.shape_cast %306 : vector<1x128x384xbf16> to vector<128x384xbf16>
    %cst_127 = arith.constant dense<0.000000e+00> : vector<1x384xf32>
    %308 = tpu.matmul %305, %307, %cst_127 {dimension_numbers = #tpu.dot_dimension_numbers<[1], [0], [0], [1], [0, 0, 1, 1], [], []>} : vector<1x128xbf16>, vector<128x384xbf16>, vector<1x384xf32> -> vector<1x384xf32>
    %309 = vector.extract_strided_slice %308 {offsets = [0, 128], sizes = [1, 256], strides = [1, 1]} : vector<1x384xf32> to vector<1x256xf32>
    %c1_128 = arith.constant 1 : index
    %c0_129 = arith.constant 0 : index
    %c0_130 = arith.constant 0 : index
    %c0_131 = arith.constant 0 : index
    %310 = vector.load %arg5[%c1_128, %c0_129, %c0_130, %c0_131] : memref<2x1x20x256xbf16, #tpu.memory_space<vmem>>, vector<1x1x20x256xbf16>
    %311 = vector.shape_cast %310 : vector<1x1x20x256xbf16> to vector<20x256xbf16>
    %312 = arith.extf %311 : vector<20x256xbf16> to vector<20x256xf32>
    %313 = vector.shape_cast %13 : vector<20x1xi1> to vector<20x1xi1>
    %314 = vector.broadcast %313 : vector<20x1xi1> to vector<20x256xi1>
    %315 = vector.shape_cast %309 : vector<1x256xf32> to vector<1x256xf32>
    %316 = vector.broadcast %315 : vector<1x256xf32> to vector<20x256xf32>
    %317 = arith.select %314, %316, %312 : vector<20x256xi1>, vector<20x256xf32>
    %318 = arith.truncf %317 : vector<20x256xf32> to vector<20x256xbf16>
    %c1_132 = arith.constant 1 : index
    %c0_133 = arith.constant 0 : index
    %c0_134 = arith.constant 0 : index
    %c0_135 = arith.constant 0 : index
    %319 = vector.load %arg17[%c1_132, %c0_133, %c0_134, %c0_135] : memref<2x1x20x256xbf16, #tpu.memory_space<vmem>>, vector<1x1x20x256xbf16>
    %320 = vector.shape_cast %319 : vector<1x1x20x256xbf16> to vector<20x256xbf16>
    %321 = vector.shape_cast %318 : vector<20x256xbf16> to vector<1x1x20x256xbf16>
    tpu.vector_store %arg17[%c1_132, %c0_133, %c0_134, %c0_135], %321 {strides = array<i32>} : memref<2x1x20x256xbf16, #tpu.memory_space<vmem>>, vector<1x1x20x256xbf16>,
    %322 = vector.extract_strided_slice %308 {offsets = [0, 0], sizes = [1, 128], strides = [1, 1]} : vector<1x384xf32> to vector<1x128xf32>
    %323 = vector.extract_strided_slice %318 {offsets = [0, 0], sizes = [20, 128], strides = [1, 1]} : vector<20x256xbf16> to vector<20x128xbf16>
    %324 = vector.extract_strided_slice %318 {offsets = [0, 128], sizes = [20, 128], strides = [1, 1]} : vector<20x256xbf16> to vector<20x128xbf16>
    %325 = arith.truncf %322 : vector<1x128xf32> to vector<1x128xbf16>
    %326 = vector.extract_strided_slice %325 {offsets = [0, 0], sizes = [1, 32], strides = [1, 1]} : vector<1x128xbf16> to vector<1x32xbf16>
    %327 = vector.extract_strided_slice %323 {offsets = [0, 0], sizes = [20, 32], strides = [1, 1]} : vector<20x128xbf16> to vector<20x32xbf16>
    %cst_136 = arith.constant dense<0.000000e+00> : vector<1x20xf32>
    %328 = tpu.matmul %326, %327, %cst_136 {dimension_numbers = #tpu.dot_dimension_numbers<[1], [1], [0], [0], [0, 0, 1, 0], [], []>} : vector<1x32xbf16>, vector<20x32xbf16>, vector<1x20xf32> -> vector<1x20xf32>
    %329 = arith.addf %328, %8 : vector<1x20xf32>
    %cst_137 = arith.constant dense<0xFF800000> : vector<1xf32>
    %330 = vector.multi_reduction <maximumf>, %329, %cst_137 [1] : vector<1x20xf32> to vector<1xf32>
    %331 = vector.shape_cast %330 : vector<1xf32> to vector<1x1xf32>
    %332 = vector.broadcast %331 : vector<1x1xf32> to vector<1x20xf32>
    %333 = arith.subf %329, %332 : vector<1x20xf32>
    %334 = math.exp %333 : vector<1x20xf32>
    %cst_138 = arith.constant dense<0.000000e+00> : vector<1xf32>
    %335 = vector.multi_reduction <add>, %334, %cst_138 [1] : vector<1x20xf32> to vector<1xf32>
    %336 = vector.shape_cast %335 : vector<1xf32> to vector<1x1xf32>
    %337 = tpu.reciprocal %336 {approx = true} : vector<1x1xf32> -> vector<1x1xf32>
    %338 = vector.broadcast %337 : vector<1x1xf32> to vector<1x20xf32>
    %339 = arith.mulf %334, %338 : vector<1x20xf32>
    %340 = arith.truncf %339 : vector<1x20xf32> to vector<1x20xbf16>
    %341 = vector.extract_strided_slice %324 {offsets = [0, 0], sizes = [20, 32], strides = [1, 1]} : vector<20x128xbf16> to vector<20x32xbf16>
    %cst_139 = arith.constant dense<0.000000e+00> : vector<1x32xf32>
    %342 = tpu.matmul %340, %341, %cst_139 {dimension_numbers = #tpu.dot_dimension_numbers<[1], [0], [0], [1], [0, 0, 1, 1], [], []>} : vector<1x20xbf16>, vector<20x32xbf16>, vector<1x32xf32> -> vector<1x32xf32>
    %343 = vector.extract_strided_slice %325 {offsets = [0, 32], sizes = [1, 32], strides = [1, 1]} : vector<1x128xbf16> to vector<1x32xbf16>
    %344 = vector.extract_strided_slice %323 {offsets = [0, 32], sizes = [20, 32], strides = [1, 1]} : vector<20x128xbf16> to vector<20x32xbf16>
    %cst_140 = arith.constant dense<0.000000e+00> : vector<1x20xf32>
    %345 = tpu.matmul %343, %344, %cst_140 {dimension_numbers = #tpu.dot_dimension_numbers<[1], [1], [0], [0], [0, 0, 1, 0], [], []>} : vector<1x32xbf16>, vector<20x32xbf16>, vector<1x20xf32> -> vector<1x20xf32>
    %346 = arith.addf %345, %8 : vector<1x20xf32>
    %cst_141 = arith.constant dense<0xFF800000> : vector<1xf32>
    %347 = vector.multi_reduction <maximumf>, %346, %cst_141 [1] : vector<1x20xf32> to vector<1xf32>
    %348 = vector.shape_cast %347 : vector<1xf32> to vector<1x1xf32>
    %349 = vector.broadcast %348 : vector<1x1xf32> to vector<1x20xf32>
    %350 = arith.subf %346, %349 : vector<1x20xf32>
    %351 = math.exp %350 : vector<1x20xf32>
    %cst_142 = arith.constant dense<0.000000e+00> : vector<1xf32>
    %352 = vector.multi_reduction <add>, %351, %cst_142 [1] : vector<1x20xf32> to vector<1xf32>
    %353 = vector.shape_cast %352 : vector<1xf32> to vector<1x1xf32>
    %354 = tpu.reciprocal %353 {approx = true} : vector<1x1xf32> -> vector<1x1xf32>
    %355 = vector.broadcast %354 : vector<1x1xf32> to vector<1x20xf32>
    %356 = arith.mulf %351, %355 : vector<1x20xf32>
    %357 = arith.truncf %356 : vector<1x20xf32> to vector<1x20xbf16>
    %358 = vector.extract_strided_slice %324 {offsets = [0, 32], sizes = [20, 32], strides = [1, 1]} : vector<20x128xbf16> to vector<20x32xbf16>
    %cst_143 = arith.constant dense<0.000000e+00> : vector<1x32xf32>
    %359 = tpu.matmul %357, %358, %cst_143 {dimension_numbers = #tpu.dot_dimension_numbers<[1], [0], [0], [1], [0, 0, 1, 1], [], []>} : vector<1x20xbf16>, vector<20x32xbf16>, vector<1x32xf32> -> vector<1x32xf32>
    %360 = vector.extract_strided_slice %325 {offsets = [0, 64], sizes = [1, 32], strides = [1, 1]} : vector<1x128xbf16> to vector<1x32xbf16>
    %361 = vector.extract_strided_slice %323 {offsets = [0, 64], sizes = [20, 32], strides = [1, 1]} : vector<20x128xbf16> to vector<20x32xbf16>
    %cst_144 = arith.constant dense<0.000000e+00> : vector<1x20xf32>
    %362 = tpu.matmul %360, %361, %cst_144 {dimension_numbers = #tpu.dot_dimension_numbers<[1], [1], [0], [0], [0, 0, 1, 0], [], []>} : vector<1x32xbf16>, vector<20x32xbf16>, vector<1x20xf32> -> vector<1x20xf32>
    %363 = arith.addf %362, %8 : vector<1x20xf32>
    %cst_145 = arith.constant dense<0xFF800000> : vector<1xf32>
    %364 = vector.multi_reduction <maximumf>, %363, %cst_145 [1] : vector<1x20xf32> to vector<1xf32>
    %365 = vector.shape_cast %364 : vector<1xf32> to vector<1x1xf32>
    %366 = vector.broadcast %365 : vector<1x1xf32> to vector<1x20xf32>
    %367 = arith.subf %363, %366 : vector<1x20xf32>
    %368 = math.exp %367 : vector<1x20xf32>
    %cst_146 = arith.constant dense<0.000000e+00> : vector<1xf32>
    %369 = vector.multi_reduction <add>, %368, %cst_146 [1] : vector<1x20xf32> to vector<1xf32>
    %370 = vector.shape_cast %369 : vector<1xf32> to vector<1x1xf32>
    %371 = tpu.reciprocal %370 {approx = true} : vector<1x1xf32> -> vector<1x1xf32>
    %372 = vector.broadcast %371 : vector<1x1xf32> to vector<1x20xf32>
    %373 = arith.mulf %368, %372 : vector<1x20xf32>
    %374 = arith.truncf %373 : vector<1x20xf32> to vector<1x20xbf16>
    %375 = vector.extract_strided_slice %324 {offsets = [0, 64], sizes = [20, 32], strides = [1, 1]} : vector<20x128xbf16> to vector<20x32xbf16>
    %cst_147 = arith.constant dense<0.000000e+00> : vector<1x32xf32>
    %376 = tpu.matmul %374, %375, %cst_147 {dimension_numbers = #tpu.dot_dimension_numbers<[1], [0], [0], [1], [0, 0, 1, 1], [], []>} : vector<1x20xbf16>, vector<20x32xbf16>, vector<1x32xf32> -> vector<1x32xf32>
    %377 = vector.extract_strided_slice %325 {offsets = [0, 96], sizes = [1, 32], strides = [1, 1]} : vector<1x128xbf16> to vector<1x32xbf16>
    %378 = vector.extract_strided_slice %323 {offsets = [0, 96], sizes = [20, 32], strides = [1, 1]} : vector<20x128xbf16> to vector<20x32xbf16>
    %cst_148 = arith.constant dense<0.000000e+00> : vector<1x20xf32>
    %379 = tpu.matmul %377, %378, %cst_148 {dimension_numbers = #tpu.dot_dimension_numbers<[1], [1], [0], [0], [0, 0, 1, 0], [], []>} : vector<1x32xbf16>, vector<20x32xbf16>, vector<1x20xf32> -> vector<1x20xf32>
    %380 = arith.addf %379, %8 : vector<1x20xf32>
    %cst_149 = arith.constant dense<0xFF800000> : vector<1xf32>
    %381 = vector.multi_reduction <maximumf>, %380, %cst_149 [1] : vector<1x20xf32> to vector<1xf32>
    %382 = vector.shape_cast %381 : vector<1xf32> to vector<1x1xf32>
    %383 = vector.broadcast %382 : vector<1x1xf32> to vector<1x20xf32>
    %384 = arith.subf %380, %383 : vector<1x20xf32>
    %385 = math.exp %384 : vector<1x20xf32>
    %cst_150 = arith.constant dense<0.000000e+00> : vector<1xf32>
    %386 = vector.multi_reduction <add>, %385, %cst_150 [1] : vector<1x20xf32> to vector<1xf32>
    %387 = vector.shape_cast %386 : vector<1xf32> to vector<1x1xf32>
    %388 = tpu.reciprocal %387 {approx = true} : vector<1x1xf32> -> vector<1x1xf32>
    %389 = vector.broadcast %388 : vector<1x1xf32> to vector<1x20xf32>
    %390 = arith.mulf %385, %389 : vector<1x20xf32>
    %391 = arith.truncf %390 : vector<1x20xf32> to vector<1x20xbf16>
    %392 = vector.extract_strided_slice %324 {offsets = [0, 96], sizes = [20, 32], strides = [1, 1]} : vector<20x128xbf16> to vector<20x32xbf16>
    %cst_151 = arith.constant dense<0.000000e+00> : vector<1x32xf32>
    %393 = tpu.matmul %391, %392, %cst_151 {dimension_numbers = #tpu.dot_dimension_numbers<[1], [0], [0], [1], [0, 0, 1, 1], [], []>} : vector<1x20xbf16>, vector<20x32xbf16>, vector<1x32xf32> -> vector<1x32xf32>
    %394 = tpu.concatenate %342, %359, %376, %393 in 1 : vector<1x32xf32>, vector<1x32xf32>, vector<1x32xf32>, vector<1x32xf32> -> vector<1x128xf32>
    %395 = arith.truncf %394 : vector<1x128xf32> to vector<1x128xbf16>
    %c1_152 = arith.constant 1 : index
    %c0_153 = arith.constant 0 : index
    %c0_154 = arith.constant 0 : index
    %396 = vector.load %arg8[%c1_152, %c0_153, %c0_154] : memref<2x128x128xbf16, #tpu.memory_space<vmem>>, vector<1x128x128xbf16>
    %397 = vector.shape_cast %396 : vector<1x128x128xbf16> to vector<128x128xbf16>
    %cst_155 = arith.constant dense<0.000000e+00> : vector<1x128xf32>
    %398 = tpu.matmul %395, %397, %cst_155 {dimension_numbers = #tpu.dot_dimension_numbers<[1], [0], [0], [1], [0, 0, 1, 1], [], []>} : vector<1x128xbf16>, vector<128x128xbf16>, vector<1x128xf32> -> vector<1x128xf32>
    %399 = arith.addf %280, %398 : vector<1x128xf32>
    %c1_156 = arith.constant 1 : index
    %c2_157 = arith.constant 2 : index
    %c0_158 = arith.constant 0 : index
    %400 = vector.load %arg6[%c1_156, %c2_157, %c0_158] : memref<2x6x128xf32, #tpu.memory_space<vmem>>, vector<1x1x128xf32>
    %401 = vector.shape_cast %400 : vector<1x1x128xf32> to vector<1x128xf32>
    %c1_159 = arith.constant 1 : index
    %c3_160 = arith.constant 3 : index
    %c0_161 = arith.constant 0 : index
    %402 = vector.load %arg6[%c1_159, %c3_160, %c0_161] : memref<2x6x128xf32, #tpu.memory_space<vmem>>, vector<1x1x128xf32>
    %403 = vector.shape_cast %402 : vector<1x1x128xf32> to vector<1x128xf32>
    %cst_162 = arith.constant dense<0.000000e+00> : vector<1xf32>
    %404 = vector.multi_reduction <add>, %399, %cst_162 [1] : vector<1x128xf32> to vector<1xf32>
    %405 = vector.shape_cast %404 : vector<1xf32> to vector<1x1xf32>
    %cst_163 = arith.constant 1.280000e+02 : f32
    %406 = vector.broadcast %cst_163 : f32 to vector<1x1xf32>
    %407 = arith.divf %405, %406 : vector<1x1xf32>
    %408 = vector.broadcast %407 : vector<1x1xf32> to vector<1x128xf32>
    %409 = arith.subf %399, %408 : vector<1x128xf32>
    %410 = arith.mulf %409, %409 : vector<1x128xf32>
    %cst_164 = arith.constant dense<0.000000e+00> : vector<1xf32>
    %411 = vector.multi_reduction <add>, %410, %cst_164 [1] : vector<1x128xf32> to vector<1xf32>
    %412 = vector.shape_cast %411 : vector<1xf32> to vector<1x1xf32>
    %cst_165 = arith.constant 1.280000e+02 : f32
    %413 = vector.broadcast %cst_165 : f32 to vector<1x1xf32>
    %414 = arith.divf %412, %413 : vector<1x1xf32>
    %415 = vector.broadcast %407 : vector<1x1xf32> to vector<1x128xf32>
    %416 = arith.subf %399, %415 : vector<1x128xf32>
    %cst_166 = arith.constant 9.99999997E-7 : f32
    %417 = vector.broadcast %cst_166 : f32 to vector<1x1xf32>
    %418 = arith.addf %414, %417 : vector<1x1xf32>
    %419 = math.rsqrt %418 : vector<1x1xf32>
    %420 = vector.broadcast %419 : vector<1x1xf32> to vector<1x128xf32>
    %421 = arith.mulf %416, %420 : vector<1x128xf32>
    %422 = arith.mulf %401, %421 : vector<1x128xf32>
    %423 = arith.addf %422, %403 : vector<1x128xf32>
    %424 = arith.truncf %423 : vector<1x128xf32> to vector<1x128xbf16>
    %c1_167 = arith.constant 1 : index
    %c0_168 = arith.constant 0 : index
    %c0_169 = arith.constant 0 : index
    %425 = vector.load %arg9[%c1_167, %c0_168, %c0_169] : memref<2x128x128xbf16, #tpu.memory_space<vmem>>, vector<1x128x128xbf16>
    %426 = vector.shape_cast %425 : vector<1x128x128xbf16> to vector<128x128xbf16>
    %cst_170 = arith.constant dense<0.000000e+00> : vector<1x128xf32>
    %427 = tpu.matmul %424, %426, %cst_170 {dimension_numbers = #tpu.dot_dimension_numbers<[1], [0], [0], [1], [0, 0, 1, 1], [], []>} : vector<1x128xbf16>, vector<128x128xbf16>, vector<1x128xf32> -> vector<1x128xf32>
    %c1_171 = arith.constant 1 : index
    %c0_172 = arith.constant 0 : index
    %c0_173 = arith.constant 0 : index
    %c0_174 = arith.constant 0 : index
    %428 = vector.load %arg4[%c1_171, %c0_172, %c0_173, %c0_174] : memref<2x1x8x256xbf16, #tpu.memory_space<vmem>>, vector<1x1x8x128xbf16>
    %429 = vector.shape_cast %428 : vector<1x1x8x128xbf16> to vector<8x128xbf16>
    %c1_175 = arith.constant 1 : index
    %c0_176 = arith.constant 0 : index
    %c0_177 = arith.constant 0 : index
    %c128_178 = arith.constant 128 : index
    %430 = vector.load %arg4[%c1_175, %c0_176, %c0_177, %c128_178] : memref<2x1x8x256xbf16, #tpu.memory_space<vmem>>, vector<1x1x8x128xbf16>
    %431 = vector.shape_cast %430 : vector<1x1x8x128xbf16> to vector<8x128xbf16>
    %432 = arith.truncf %427 : vector<1x128xf32> to vector<1x128xbf16>
    %433 = vector.extract_strided_slice %432 {offsets = [0, 0], sizes = [1, 32], strides = [1, 1]} : vector<1x128xbf16> to vector<1x32xbf16>
    %434 = vector.extract_strided_slice %429 {offsets = [0, 0], sizes = [8, 32], strides = [1, 1]} : vector<8x128xbf16> to vector<8x32xbf16>
    %cst_179 = arith.constant dense<0.000000e+00> : vector<1x8xf32>
    %435 = tpu.matmul %433, %434, %cst_179 {dimension_numbers = #tpu.dot_dimension_numbers<[1], [1], [0], [0], [0, 0, 1, 0], [], []>} : vector<1x32xbf16>, vector<8x32xbf16>, vector<1x8xf32> -> vector<1x8xf32>
    %436 = arith.addf %435, %10 : vector<1x8xf32>
    %cst_180 = arith.constant dense<0xFF800000> : vector<1xf32>
    %437 = vector.multi_reduction <maximumf>, %436, %cst_180 [1] : vector<1x8xf32> to vector<1xf32>
    %438 = vector.shape_cast %437 : vector<1xf32> to vector<1x1xf32>
    %439 = vector.broadcast %438 : vector<1x1xf32> to vector<1x8xf32>
    %440 = arith.subf %436, %439 : vector<1x8xf32>
    %441 = math.exp %440 : vector<1x8xf32>
    %cst_181 = arith.constant dense<0.000000e+00> : vector<1xf32>
    %442 = vector.multi_reduction <add>, %441, %cst_181 [1] : vector<1x8xf32> to vector<1xf32>
    %443 = vector.shape_cast %442 : vector<1xf32> to vector<1x1xf32>
    %444 = tpu.reciprocal %443 {approx = true} : vector<1x1xf32> -> vector<1x1xf32>
    %445 = vector.broadcast %444 : vector<1x1xf32> to vector<1x8xf32>
    %446 = arith.mulf %441, %445 : vector<1x8xf32>
    %447 = arith.truncf %446 : vector<1x8xf32> to vector<1x8xbf16>
    %448 = vector.extract_strided_slice %431 {offsets = [0, 0], sizes = [8, 32], strides = [1, 1]} : vector<8x128xbf16> to vector<8x32xbf16>
    %cst_182 = arith.constant dense<0.000000e+00> : vector<1x32xf32>
    %449 = tpu.matmul %447, %448, %cst_182 {dimension_numbers = #tpu.dot_dimension_numbers<[1], [0], [0], [1], [0, 0, 1, 1], [], []>} : vector<1x8xbf16>, vector<8x32xbf16>, vector<1x32xf32> -> vector<1x32xf32>
    %450 = vector.extract_strided_slice %432 {offsets = [0, 32], sizes = [1, 32], strides = [1, 1]} : vector<1x128xbf16> to vector<1x32xbf16>
    %451 = vector.extract_strided_slice %429 {offsets = [0, 32], sizes = [8, 32], strides = [1, 1]} : vector<8x128xbf16> to vector<8x32xbf16>
    %cst_183 = arith.constant dense<0.000000e+00> : vector<1x8xf32>
    %452 = tpu.matmul %450, %451, %cst_183 {dimension_numbers = #tpu.dot_dimension_numbers<[1], [1], [0], [0], [0, 0, 1, 0], [], []>} : vector<1x32xbf16>, vector<8x32xbf16>, vector<1x8xf32> -> vector<1x8xf32>
    %453 = arith.addf %452, %10 : vector<1x8xf32>
    %cst_184 = arith.constant dense<0xFF800000> : vector<1xf32>
    %454 = vector.multi_reduction <maximumf>, %453, %cst_184 [1] : vector<1x8xf32> to vector<1xf32>
    %455 = vector.shape_cast %454 : vector<1xf32> to vector<1x1xf32>
    %456 = vector.broadcast %455 : vector<1x1xf32> to vector<1x8xf32>
    %457 = arith.subf %453, %456 : vector<1x8xf32>
    %458 = math.exp %457 : vector<1x8xf32>
    %cst_185 = arith.constant dense<0.000000e+00> : vector<1xf32>
    %459 = vector.multi_reduction <add>, %458, %cst_185 [1] : vector<1x8xf32> to vector<1xf32>
    %460 = vector.shape_cast %459 : vector<1xf32> to vector<1x1xf32>
    %461 = tpu.reciprocal %460 {approx = true} : vector<1x1xf32> -> vector<1x1xf32>
    %462 = vector.broadcast %461 : vector<1x1xf32> to vector<1x8xf32>
    %463 = arith.mulf %458, %462 : vector<1x8xf32>
    %464 = arith.truncf %463 : vector<1x8xf32> to vector<1x8xbf16>
    %465 = vector.extract_strided_slice %431 {offsets = [0, 32], sizes = [8, 32], strides = [1, 1]} : vector<8x128xbf16> to vector<8x32xbf16>
    %cst_186 = arith.constant dense<0.000000e+00> : vector<1x32xf32>
    %466 = tpu.matmul %464, %465, %cst_186 {dimension_numbers = #tpu.dot_dimension_numbers<[1], [0], [0], [1], [0, 0, 1, 1], [], []>} : vector<1x8xbf16>, vector<8x32xbf16>, vector<1x32xf32> -> vector<1x32xf32>
    %467 = vector.extract_strided_slice %432 {offsets = [0, 64], sizes = [1, 32], strides = [1, 1]} : vector<1x128xbf16> to vector<1x32xbf16>
    %468 = vector.extract_strided_slice %429 {offsets = [0, 64], sizes = [8, 32], strides = [1, 1]} : vector<8x128xbf16> to vector<8x32xbf16>
    %cst_187 = arith.constant dense<0.000000e+00> : vector<1x8xf32>
    %469 = tpu.matmul %467, %468, %cst_187 {dimension_numbers = #tpu.dot_dimension_numbers<[1], [1], [0], [0], [0, 0, 1, 0], [], []>} : vector<1x32xbf16>, vector<8x32xbf16>, vector<1x8xf32> -> vector<1x8xf32>
    %470 = arith.addf %469, %10 : vector<1x8xf32>
    %cst_188 = arith.constant dense<0xFF800000> : vector<1xf32>
    %471 = vector.multi_reduction <maximumf>, %470, %cst_188 [1] : vector<1x8xf32> to vector<1xf32>
    %472 = vector.shape_cast %471 : vector<1xf32> to vector<1x1xf32>
    %473 = vector.broadcast %472 : vector<1x1xf32> to vector<1x8xf32>
    %474 = arith.subf %470, %473 : vector<1x8xf32>
    %475 = math.exp %474 : vector<1x8xf32>
    %cst_189 = arith.constant dense<0.000000e+00> : vector<1xf32>
    %476 = vector.multi_reduction <add>, %475, %cst_189 [1] : vector<1x8xf32> to vector<1xf32>
    %477 = vector.shape_cast %476 : vector<1xf32> to vector<1x1xf32>
    %478 = tpu.reciprocal %477 {approx = true} : vector<1x1xf32> -> vector<1x1xf32>
    %479 = vector.broadcast %478 : vector<1x1xf32> to vector<1x8xf32>
    %480 = arith.mulf %475, %479 : vector<1x8xf32>
    %481 = arith.truncf %480 : vector<1x8xf32> to vector<1x8xbf16>
    %482 = vector.extract_strided_slice %431 {offsets = [0, 64], sizes = [8, 32], strides = [1, 1]} : vector<8x128xbf16> to vector<8x32xbf16>
    %cst_190 = arith.constant dense<0.000000e+00> : vector<1x32xf32>
    %483 = tpu.matmul %481, %482, %cst_190 {dimension_numbers = #tpu.dot_dimension_numbers<[1], [0], [0], [1], [0, 0, 1, 1], [], []>} : vector<1x8xbf16>, vector<8x32xbf16>, vector<1x32xf32> -> vector<1x32xf32>
    %484 = vector.extract_strided_slice %432 {offsets = [0, 96], sizes = [1, 32], strides = [1, 1]} : vector<1x128xbf16> to vector<1x32xbf16>
    %485 = vector.extract_strided_slice %429 {offsets = [0, 96], sizes = [8, 32], strides = [1, 1]} : vector<8x128xbf16> to vector<8x32xbf16>
    %cst_191 = arith.constant dense<0.000000e+00> : vector<1x8xf32>
    %486 = tpu.matmul %484, %485, %cst_191 {dimension_numbers = #tpu.dot_dimension_numbers<[1], [1], [0], [0], [0, 0, 1, 0], [], []>} : vector<1x32xbf16>, vector<8x32xbf16>, vector<1x8xf32> -> vector<1x8xf32>
    %487 = arith.addf %486, %10 : vector<1x8xf32>
    %cst_192 = arith.constant dense<0xFF800000> : vector<1xf32>
    %488 = vector.multi_reduction <maximumf>, %487, %cst_192 [1] : vector<1x8xf32> to vector<1xf32>
    %489 = vector.shape_cast %488 : vector<1xf32> to vector<1x1xf32>
    %490 = vector.broadcast %489 : vector<1x1xf32> to vector<1x8xf32>
    %491 = arith.subf %487, %490 : vector<1x8xf32>
    %492 = math.exp %491 : vector<1x8xf32>
    %cst_193 = arith.constant dense<0.000000e+00> : vector<1xf32>
    %493 = vector.multi_reduction <add>, %492, %cst_193 [1] : vector<1x8xf32> to vector<1xf32>
    %494 = vector.shape_cast %493 : vector<1xf32> to vector<1x1xf32>
    %495 = tpu.reciprocal %494 {approx = true} : vector<1x1xf32> -> vector<1x1xf32>
    %496 = vector.broadcast %495 : vector<1x1xf32> to vector<1x8xf32>
    %497 = arith.mulf %492, %496 : vector<1x8xf32>
    %498 = arith.truncf %497 : vector<1x8xf32> to vector<1x8xbf16>
    %499 = vector.extract_strided_slice %431 {offsets = [0, 96], sizes = [8, 32], strides = [1, 1]} : vector<8x128xbf16> to vector<8x32xbf16>
    %cst_194 = arith.constant dense<0.000000e+00> : vector<1x32xf32>
    %500 = tpu.matmul %498, %499, %cst_194 {dimension_numbers = #tpu.dot_dimension_numbers<[1], [0], [0], [1], [0, 0, 1, 1], [], []>} : vector<1x8xbf16>, vector<8x32xbf16>, vector<1x32xf32> -> vector<1x32xf32>
    %501 = tpu.concatenate %449, %466, %483, %500 in 1 : vector<1x32xf32>, vector<1x32xf32>, vector<1x32xf32>, vector<1x32xf32> -> vector<1x128xf32>
    %502 = arith.truncf %501 : vector<1x128xf32> to vector<1x128xbf16>
    %c1_195 = arith.constant 1 : index
    %c0_196 = arith.constant 0 : index
    %c0_197 = arith.constant 0 : index
    %503 = vector.load %arg10[%c1_195, %c0_196, %c0_197] : memref<2x128x128xbf16, #tpu.memory_space<vmem>>, vector<1x128x128xbf16>
    %504 = vector.shape_cast %503 : vector<1x128x128xbf16> to vector<128x128xbf16>
    %cst_198 = arith.constant dense<0.000000e+00> : vector<1x128xf32>
    %505 = tpu.matmul %502, %504, %cst_198 {dimension_numbers = #tpu.dot_dimension_numbers<[1], [0], [0], [1], [0, 0, 1, 1], [], []>} : vector<1x128xbf16>, vector<128x128xbf16>, vector<1x128xf32> -> vector<1x128xf32>
    %506 = arith.addf %399, %505 : vector<1x128xf32>
    %c1_199 = arith.constant 1 : index
    %c4_200 = arith.constant 4 : index
    %c0_201 = arith.constant 0 : index
    %507 = vector.load %arg6[%c1_199, %c4_200, %c0_201] : memref<2x6x128xf32, #tpu.memory_space<vmem>>, vector<1x1x128xf32>
    %508 = vector.shape_cast %507 : vector<1x1x128xf32> to vector<1x128xf32>
    %c1_202 = arith.constant 1 : index
    %c5_203 = arith.constant 5 : index
    %c0_204 = arith.constant 0 : index
    %509 = vector.load %arg6[%c1_202, %c5_203, %c0_204] : memref<2x6x128xf32, #tpu.memory_space<vmem>>, vector<1x1x128xf32>
    %510 = vector.shape_cast %509 : vector<1x1x128xf32> to vector<1x128xf32>
    %cst_205 = arith.constant dense<0.000000e+00> : vector<1xf32>
    %511 = vector.multi_reduction <add>, %506, %cst_205 [1] : vector<1x128xf32> to vector<1xf32>
    %512 = vector.shape_cast %511 : vector<1xf32> to vector<1x1xf32>
    %cst_206 = arith.constant 1.280000e+02 : f32
    %513 = vector.broadcast %cst_206 : f32 to vector<1x1xf32>
    %514 = arith.divf %512, %513 : vector<1x1xf32>
    %515 = vector.broadcast %514 : vector<1x1xf32> to vector<1x128xf32>
    %516 = arith.subf %506, %515 : vector<1x128xf32>
    %517 = arith.mulf %516, %516 : vector<1x128xf32>
    %cst_207 = arith.constant dense<0.000000e+00> : vector<1xf32>
    %518 = vector.multi_reduction <add>, %517, %cst_207 [1] : vector<1x128xf32> to vector<1xf32>
    %519 = vector.shape_cast %518 : vector<1xf32> to vector<1x1xf32>
    %cst_208 = arith.constant 1.280000e+02 : f32
    %520 = vector.broadcast %cst_208 : f32 to vector<1x1xf32>
    %521 = arith.divf %519, %520 : vector<1x1xf32>
    %522 = vector.broadcast %514 : vector<1x1xf32> to vector<1x128xf32>
    %523 = arith.subf %506, %522 : vector<1x128xf32>
    %cst_209 = arith.constant 9.99999997E-7 : f32
    %524 = vector.broadcast %cst_209 : f32 to vector<1x1xf32>
    %525 = arith.addf %521, %524 : vector<1x1xf32>
    %526 = math.rsqrt %525 : vector<1x1xf32>
    %527 = vector.broadcast %526 : vector<1x1xf32> to vector<1x128xf32>
    %528 = arith.mulf %523, %527 : vector<1x128xf32>
    %529 = arith.mulf %508, %528 : vector<1x128xf32>
    %530 = arith.addf %529, %510 : vector<1x128xf32>
    %531 = arith.truncf %530 : vector<1x128xf32> to vector<1x128xbf16>
    %c1_210 = arith.constant 1 : index
    %c0_211 = arith.constant 0 : index
    %c0_212 = arith.constant 0 : index
    %532 = vector.load %arg11[%c1_210, %c0_211, %c0_212] : memref<2x128x256xbf16, #tpu.memory_space<vmem>>, vector<1x128x256xbf16>
    %533 = vector.shape_cast %532 : vector<1x128x256xbf16> to vector<128x256xbf16>
    %cst_213 = arith.constant dense<0.000000e+00> : vector<1x256xf32>
    %534 = tpu.matmul %531, %533, %cst_213 {dimension_numbers = #tpu.dot_dimension_numbers<[1], [0], [0], [1], [0, 0, 1, 1], [], []>} : vector<1x128xbf16>, vector<128x256xbf16>, vector<1x256xf32> -> vector<1x256xf32>
    %c1_214 = arith.constant 1 : index
    %c0_215 = arith.constant 0 : index
    %c0_216 = arith.constant 0 : index
    %535 = vector.load %arg12[%c1_214, %c0_215, %c0_216] : memref<2x1x256xf32, #tpu.memory_space<vmem>>, vector<1x1x256xf32>
    %536 = vector.shape_cast %535 : vector<1x1x256xf32> to vector<1x256xf32>
    %537 = arith.addf %534, %536 : vector<1x256xf32>
    %cst_217 = arith.constant 0.000000e+00 : f32
    %538 = vector.broadcast %cst_217 : f32 to vector<1x256xf32>
    %539 = arith.maximumf %537, %538 : vector<1x256xf32>
    %540 = arith.truncf %539 : vector<1x256xf32> to vector<1x256xbf16>
    %c1_218 = arith.constant 1 : index
    %c0_219 = arith.constant 0 : index
    %c0_220 = arith.constant 0 : index
    %541 = vector.load %arg13[%c1_218, %c0_219, %c0_220] : memref<2x256x128xbf16, #tpu.memory_space<vmem>>, vector<1x256x128xbf16>
    %542 = vector.shape_cast %541 : vector<1x256x128xbf16> to vector<256x128xbf16>
    %cst_221 = arith.constant dense<0.000000e+00> : vector<1x128xf32>
    %543 = tpu.matmul %540, %542, %cst_221 {dimension_numbers = #tpu.dot_dimension_numbers<[1], [0], [0], [1], [0, 0, 1, 1], [], []>} : vector<1x256xbf16>, vector<256x128xbf16>, vector<1x128xf32> -> vector<1x128xf32>
    %544 = arith.addf %506, %543 : vector<1x128xf32>
    %c1_222 = arith.constant 1 : index
    %c0_223 = arith.constant 0 : index
    %c0_224 = arith.constant 0 : index
    %545 = vector.load %arg14[%c1_222, %c0_223, %c0_224] : memref<2x1x128xf32, #tpu.memory_space<vmem>>, vector<1x1x128xf32>
    %546 = vector.shape_cast %545 : vector<1x1x128xf32> to vector<1x128xf32>
    %547 = arith.addf %544, %546 : vector<1x128xf32>
    %c0_225 = arith.constant 0 : index
    %c0_226 = arith.constant 0 : index
    %548 = vector.load %arg15[%c0_225, %c0_226] : memref<2x128xf32, #tpu.memory_space<vmem>>, vector<1x128xf32>
    %c1_227 = arith.constant 1 : index
    %c0_228 = arith.constant 0 : index
    %549 = vector.load %arg15[%c1_227, %c0_228] : memref<2x128xf32, #tpu.memory_space<vmem>>, vector<1x128xf32>
    %cst_229 = arith.constant dense<0.000000e+00> : vector<1xf32>
    %550 = vector.multi_reduction <add>, %547, %cst_229 [1] : vector<1x128xf32> to vector<1xf32>
    %551 = vector.shape_cast %550 : vector<1xf32> to vector<1x1xf32>
    %cst_230 = arith.constant 1.280000e+02 : f32
    %552 = vector.broadcast %cst_230 : f32 to vector<1x1xf32>
    %553 = arith.divf %551, %552 : vector<1x1xf32>
    %554 = vector.broadcast %553 : vector<1x1xf32> to vector<1x128xf32>
    %555 = arith.subf %547, %554 : vector<1x128xf32>
    %556 = arith.mulf %555, %555 : vector<1x128xf32>
    %cst_231 = arith.constant dense<0.000000e+00> : vector<1xf32>
    %557 = vector.multi_reduction <add>, %556, %cst_231 [1] : vector<1x128xf32> to vector<1xf32>
    %558 = vector.shape_cast %557 : vector<1xf32> to vector<1x1xf32>
    %cst_232 = arith.constant 1.280000e+02 : f32
    %559 = vector.broadcast %cst_232 : f32 to vector<1x1xf32>
    %560 = arith.divf %558, %559 : vector<1x1xf32>
    %561 = vector.broadcast %553 : vector<1x1xf32> to vector<1x128xf32>
    %562 = arith.subf %547, %561 : vector<1x128xf32>
    %cst_233 = arith.constant 9.99999997E-7 : f32
    %563 = vector.broadcast %cst_233 : f32 to vector<1x1xf32>
    %564 = arith.addf %560, %563 : vector<1x1xf32>
    %565 = math.rsqrt %564 : vector<1x1xf32>
    %566 = vector.broadcast %565 : vector<1x1xf32> to vector<1x128xf32>
    %567 = arith.mulf %562, %566 : vector<1x128xf32>
    %568 = arith.mulf %548, %567 : vector<1x128xf32>
    %569 = arith.addf %568, %549 : vector<1x128xf32>
    %570 = arith.truncf %569 : vector<1x128xf32> to vector<1x128xbf16>
    %c0_234 = arith.constant 0 : index
    %c0_235 = arith.constant 0 : index
    %571 = vector.load %arg16[%c0_234, %c0_235] : memref<128x512xbf16, #tpu.memory_space<vmem>>, vector<128x512xbf16>
    %cst_236 = arith.constant dense<0.000000e+00> : vector<1x512xf32>
    %572 = tpu.matmul %570, %571, %cst_236 {dimension_numbers = #tpu.dot_dimension_numbers<[1], [0], [0], [1], [0, 0, 1, 1], [], []>} : vector<1x128xbf16>, vector<128x512xbf16>, vector<1x512xf32> -> vector<1x512xf32>
    %cst_237 = arith.constant dense<0xFF800000> : vector<1xf32>
    %573 = vector.multi_reduction <maximumf>, %572, %cst_237 [1] : vector<1x512xf32> to vector<1xf32>
    %574 = vector.shape_cast %573 : vector<1xf32> to vector<1x1xf32>
    %575 = tpu.iota {dimensions = array<i32: 1>} : vector<1x512xi32>
    %576 = vector.broadcast %574 : vector<1x1xf32> to vector<1x512xf32>
    %577 = arith.cmpf oge, %572, %576 : vector<1x512xf32>
    %c512_i32 = arith.constant 512 : i32
    %578 = vector.broadcast %c512_i32 : i32 to vector<1x512xi32>
    %579 = arith.select %577, %575, %578 : vector<1x512xi1>, vector<1x512xi32>
    %cst_238 = arith.constant dense<2147483647> : vector<1xi32>
    %580 = vector.multi_reduction <minsi>, %579, %cst_238 [1] : vector<1x512xi32> to vector<1xi32>
    %581 = vector.shape_cast %580 : vector<1xi32> to vector<1x1xi32>
    %582 = vector.shape_cast %581 : vector<1x1xi32> to vector<1x1xi32>
    %583 = vector.broadcast %582 : vector<1x1xi32> to vector<1x128xi32>
    %c0_239 = arith.constant 0 : index
    %c0_240 = arith.constant 0 : index
    %c0_241 = arith.constant 0 : index
    %584 = vector.load %arg18[%c0_239, %c0_240, %c0_241] : memref<1x1x128xi32, #tpu.memory_space<vmem>>, vector<1x1x128xi32>
    %585 = vector.shape_cast %584 : vector<1x1x128xi32> to vector<1x128xi32>
    %586 = vector.shape_cast %583 : vector<1x128xi32> to vector<1x1x128xi32>
    tpu.vector_store %arg18[%c0_239, %c0_240, %c0_241], %586 {strides = array<i32>} : memref<1x1x128xi32, #tpu.memory_space<vmem>>, vector<1x1x128xi32>,
    return
  }
  func.func @transform_0(%arg0: i32) -> i32 {
    %c0_i32 = arith.constant 0 : i32
    %c0_i32_0 = arith.constant 0 : i32
    return %c0_i32 : i32
  }
  func.func @transform_1(%arg0: i32) -> (i32, i32, i32) {
    %c0_i32 = arith.constant 0 : i32
    %c0_i32_0 = arith.constant 0 : i32
    %c0_i32_1 = arith.constant 0 : i32
    return %arg0, %c0_i32, %c0_i32_0 : i32, i32, i32
  }
  func.func @transform_2(%arg0: i32) -> (i32, i32, i32) {
    %c0_i32 = arith.constant 0 : i32
    %c0_i32_0 = arith.constant 0 : i32
    %c0_i32_1 = arith.constant 0 : i32
    return %arg0, %c0_i32, %c0_i32_0 : i32, i32, i32
  }
  func.func @transform_3(%arg0: i32) -> (i32, i32, i32, i32) {
    %c0_i32 = arith.constant 0 : i32
    %c0_i32_0 = arith.constant 0 : i32
    %c0_i32_1 = arith.constant 0 : i32
    %c0_i32_2 = arith.constant 0 : i32
    return %c0_i32, %arg0, %c0_i32_0, %c0_i32_1 : i32, i32, i32, i32
  }
  func.func @transform_4(%arg0: i32) -> (i32, i32, i32, i32) {
    %c0_i32 = arith.constant 0 : i32
    %c0_i32_0 = arith.constant 0 : i32
    %c0_i32_1 = arith.constant 0 : i32
    %c0_i32_2 = arith.constant 0 : i32
    return %c0_i32, %arg0, %c0_i32_0, %c0_i32_1 : i32, i32, i32, i32
  }
  func.func @transform_5(%arg0: i32) -> (i32, i32, i32) {
    %c0_i32 = arith.constant 0 : i32
    %c0_i32_0 = arith.constant 0 : i32
    %c0_i32_1 = arith.constant 0 : i32
    %c0_i32_2 = arith.constant 0 : i32
    return %c0_i32, %c0_i32_0, %c0_i32_1 : i32, i32, i32
  }
  func.func @transform_6(%arg0: i32) -> (i32, i32, i32) {
    %c0_i32 = arith.constant 0 : i32
    %c0_i32_0 = arith.constant 0 : i32
    %c0_i32_1 = arith.constant 0 : i32
    %c0_i32_2 = arith.constant 0 : i32
    return %c0_i32, %c0_i32_0, %c0_i32_1 : i32, i32, i32
  }
  func.func @transform_7(%arg0: i32) -> (i32, i32, i32) {
    %c0_i32 = arith.constant 0 : i32
    %c0_i32_0 = arith.constant 0 : i32
    %c0_i32_1 = arith.constant 0 : i32
    %c0_i32_2 = arith.constant 0 : i32
    return %c0_i32, %c0_i32_0, %c0_i32_1 : i32, i32, i32
  }
  func.func @transform_8(%arg0: i32) -> (i32, i32, i32) {
    %c0_i32 = arith.constant 0 : i32
    %c0_i32_0 = arith.constant 0 : i32
    %c0_i32_1 = arith.constant 0 : i32
    %c0_i32_2 = arith.constant 0 : i32
    return %c0_i32, %c0_i32_0, %c0_i32_1 : i32, i32, i32
  }
  func.func @transform_9(%arg0: i32) -> (i32, i32, i32) {
    %c0_i32 = arith.constant 0 : i32
    %c0_i32_0 = arith.constant 0 : i32
    %c0_i32_1 = arith.constant 0 : i32
    %c0_i32_2 = arith.constant 0 : i32
    return %c0_i32, %c0_i32_0, %c0_i32_1 : i32, i32, i32
  }
  func.func @transform_10(%arg0: i32) -> (i32, i32, i32) {
    %c0_i32 = arith.constant 0 : i32
    %c0_i32_0 = arith.constant 0 : i32
    %c0_i32_1 = arith.constant 0 : i32
    %c0_i32_2 = arith.constant 0 : i32
    return %c0_i32, %c0_i32_0, %c0_i32_1 : i32, i32, i32
  }
  func.func @transform_11(%arg0: i32) -> (i32, i32, i32) {
    %c0_i32 = arith.constant 0 : i32
    %c0_i32_0 = arith.constant 0 : i32
    %c0_i32_1 = arith.constant 0 : i32
    %c0_i32_2 = arith.constant 0 : i32
    return %c0_i32, %c0_i32_0, %c0_i32_1 : i32, i32, i32
  }
  func.func @transform_12(%arg0: i32) -> (i32, i32, i32) {
    %c0_i32 = arith.constant 0 : i32
    %c0_i32_0 = arith.constant 0 : i32
    %c0_i32_1 = arith.constant 0 : i32
    %c0_i32_2 = arith.constant 0 : i32
    return %c0_i32, %c0_i32_0, %c0_i32_1 : i32, i32, i32
  }
  func.func @transform_13(%arg0: i32) -> (i32, i32, i32) {
    %c0_i32 = arith.constant 0 : i32
    %c0_i32_0 = arith.constant 0 : i32
    %c0_i32_1 = arith.constant 0 : i32
    %c0_i32_2 = arith.constant 0 : i32
    return %c0_i32, %c0_i32_0, %c0_i32_1 : i32, i32, i32
  }
  func.func @transform_14(%arg0: i32) -> (i32, i32) {
    %c0_i32 = arith.constant 0 : i32
    %c0_i32_0 = arith.constant 0 : i32
    %c0_i32_1 = arith.constant 0 : i32
    return %c0_i32, %c0_i32_0 : i32, i32
  }
  func.func @transform_15(%arg0: i32) -> (i32, i32) {
    %c0_i32 = arith.constant 0 : i32
    %c0_i32_0 = arith.constant 0 : i32
    %c0_i32_1 = arith.constant 0 : i32
    return %c0_i32, %c0_i32_0 : i32, i32
  }
  func.func @transform_16(%arg0: i32) -> (i32, i32, i32, i32) {
    %c0_i32 = arith.constant 0 : i32
    %c0_i32_0 = arith.constant 0 : i32
    %c0_i32_1 = arith.constant 0 : i32
    %c0_i32_2 = arith.constant 0 : i32
    return %c0_i32, %arg0, %c0_i32_0, %c0_i32_1 : i32, i32, i32, i32
  }
  func.func @transform_17(%arg0: i32) -> (i32, i32, i32) {
    %c0_i32 = arith.constant 0 : i32
    %c0_i32_0 = arith.constant 0 : i32
    %c0_i32_1 = arith.constant 0 : i32
    return %arg0, %c0_i32, %c0_i32_0 : i32, i32, i32
  }
}

</mosaic_0001>

<bundles_post_ra>
// kernel: _run_inference.5
= control target key start
LH: loop header
LB: loop body
LE: loop exit
PB: predicated region body
PF: predicated region fallthrough
CT: control target
= control target key end

     0   :  { %8 = vsyncpa [#allocation3], 0  ;;  %s875_s12 = smov 0   ;;  %s877_s13 = smov 0   ;;  %s951_s0 = inlined_call_operand.vmem [shape: f32[2,8,128], index: 0, kind: input, shape index: {}]   ;;  %s952_s1 = inlined_call_operand.vmem [shape: f32[2,128], index: 1, kind: input, shape index: {}]   ;;  %s953_s2 = inlined_call_operand.hbm [shape: bf16[2,128,256], index: 2, kind: input, shape index: {}]   ;;  %s954_s3 = inlined_call_operand.vmem [shape: bf16[2,2,8,256], index: 3, kind: output, shape index: {}]  }
   0x1   :  { %s879_s14 = smov 0  }
   0x2 LB: > { %s888_s15 = sadd.s32 4294967295, %s849_s14   ;;  %s890_s16 = sadd.s32 1, %s849_s14   ;;  %s849_s14 = sphi %s879_s14, %s958_s14   ;;  %s845_s13 = sphi %s877_s13, %s957_s13   ;;  %s841_s12 = sphi %s875_s12, %s956_s12  }
   0x3   : > { %s86_s17 = ssub.s32 %s849_s14, %s890_s16  ;;  %s89_s18 = sadd.s32 1, %s845_s13 }
   0x4   : > { %p87_p0 = scmp.eq.s32.totalorder %s86_s17, 0  ;;  %p99_p1 = scmp.ne.s32.totalorder %s845_s13, %s841_s12 }
   0x5   : > { %p100_p2 = scmp.eq.s32.totalorder %s888_s15, 1  ;;  %p575_p3 = scmp.ge.s32.totalorder %s849_s14, 1 }
   0x6   : > { %s898_s19 = scalar_select %p87_p0, %s845_s13, %s89_s18  }
   0x7   : > { %p900_p4 = por %p100_p2, %p99_p1  ;;  %p113_p5 = scmp.lt.s32.totalorder %s849_s14, 3 }
   0x8   : > { %p757_p6 = scmp.eq.s32.totalorder %s888_s15, 0  ;;  %s127_s23 = sshll.u32 %s953_s2, 4  ;;  %s128_s23 = int_to_ptr.hbm [resolvable:$true] %s127_s23 }
   0x9   : > { %p114_p7 = pnand %p575_p3, %p113_p5  ;;  %s851_s24 = smov [#allocation2]  }
   0xa   : > { %s129_s25 = sshll.u32 %s851_s24, 4  ;;  %s852_s26 = smov 128   ;;  %s130_s25 = int_to_ptr.vmem [resolvable:$true] %s129_s25 }
   0xb   : > { %p753_p8 = pneg %p114_p7  ;;  %s853_s27 = smov 8  }
   0xc   : > { %152 = sbr.rel (%p114_p7) target bundleno = 437 (0x1b5), region = 32 }
   0xd   : > { %p754_p9 = pnand %p757_p6, %p753_p8 }
   0xf   : > { %756 = dma.hbm_to_vmem [thread:$0]  (!%p754_p9), %s128_s23, 4096, %s130_s25, [#allocation3], %s852_s26, %s852_s26, %s853_s27  }
  0x11   : > { %836 = dma.done.wait (%p757_p6), [#allocation3], 4096  }
  0x12   : > { %838 = vsyncadd (%p757_p6), [#allocation3], 4294963200  ;;  %p175_p10 = scmp.lt.s32.totalorder %s888_s15, 1  ;;  %v854_v1 = vmov 128.0   ;;  %v640_v2 = vld [vmem:[#allocation2 + $0x70] sm:$0xf] }
  0x13   : > { %789 = vrcp.f32 %v854_v1  ;;  %v731_v3 = vld [vmem:[#allocation2 + $0x74] sm:$0xf0]  ;;  %v730_v4 = vld [vmem:[#allocation2 + $0x74] sm:$0xf]  ;;  %v642_v6 = vld [vmem:[#allocation2 + $0x78] sm:$0xf0] }
  0x14   : > { %s176_s28 = scalar_select %p175_p10, %s888_s15, 1  ;;  %v641_v5 = vor.u32 %v731_v3, %v640_v2  ;;  %v704_v7 = vld [vmem:[#allocation2 + $0xf0] sm:$0xf]  ;;  %v747_v8 = vld [vmem:[#allocation2 + $0xf4] sm:$0xf0]  ;;  %v645_v9 = vor.u32 %v730_v4, %v642_v6 }
  0x15   : > { %v705_v10 = vor.u32 %v747_v8, %v704_v7  ;;  %v746_v11 = vld [vmem:[#allocation2 + $0xf4] sm:$0xf]  ;;  %v706_v12 = vld [vmem:[#allocation2 + $0xf8] sm:$0xf0]  ;;  %v632_v24 = vld [vmem:[#allocation2 + $0x60] sm:$0xf] }
  0x16   : > { %s581_s29 = sshll.u32 %s176_s28, 3  ;;  %310 = vmatpush.bf16.msra.mxu0 %v641_v5  ;;  %v709_v13 = vor.u32 %v746_v11, %v706_v12  ;;  %323 = vmatpush.bf16.msra.mxu1 %v645_v9  ;;  %v729_v25 = vld [vmem:[#allocation2 + $0x64] sm:$0xf0]  ;;  %v728_v26 = vld [vmem:[#allocation2 + $0x64] sm:$0xf]  ;;  %s172_s10 = sand.u32 1, %s841_s12  }
  0x17   : > { %s178_s5 = scalar_lea.vmem %s951_s0, %s581_s29  ;;  %435 = vmatpush.bf16.msra.mxu2 %v705_v10  ;;  %v633_v27 = vor.u32 %v729_v25, %v632_v24  ;;  %v634_v28 = vld [vmem:[#allocation2 + $0x68] sm:$0xf0]  ;;  %v696_v29 = vld [vmem:[#allocation2 + $0xe0] sm:$0xf]  ;;  %v745_v30 = vld [vmem:[#allocation2 + $0xe4] sm:$0xf0] }
  0x18   : > { %v179_v0 = vld [vmem:[%s178_s5] sm:$0xff]  ;;  %448 = vmatpush.bf16.msra.mxu3 %v709_v13  ;;  %v637_v31 = vor.u32 %v728_v26, %v634_v28  ;;  %v697_v32 = vor.u32 %v745_v30, %v696_v29  ;;  %v698_v34 = vld [vmem:[#allocation2 + $0xe8] sm:$0xf0]  ;;  %v624_v36 = vld [vmem:[#allocation2 + $0x50] sm:$0xf]  ;;  %s580_s11 = sshll.u32 %s172_s10, 4 }
  0x19   : > { %182 = vadd.xlane.f32.xlu0 %v179_v0  ;;  %v790_v14 = vpop.eup %789  ;;  %v744_v33 = vld [vmem:[#allocation2 + $0xe4] sm:$0xf]  ;;  %v727_v37 = vld [vmem:[#allocation2 + $0x54] sm:$0xf0]  ;;  %v726_v38 = vld [vmem:[#allocation2 + $0x54] sm:$0xf] }
  0x1a   : > { %v185_v15 = vmul.f32 128.0, %v790_v14  ;;  %vm189_vm0 = vweird.f32 %v790_v14  ;;  %311 = vmatpush.bf16.msra.mxu0 %v633_v27  ;;  %v701_v35 = vor.u32 %v744_v33, %v698_v34  ;;  %324 = vmatpush.bf16.msra.mxu1 %v637_v31  ;;  %v625_v39 = vor.u32 %v727_v37, %v624_v36  ;;  %v626_v40 = vld [vmem:[#allocation2 + $0x58] sm:$0xf0]  ;;  %v688_v41 = vld [vmem:[#allocation2 + $0xd0] sm:$0xf]  ;;  %s174_s14 = scalar_lea.vmem [#allocation4], %s580_s11 }
  0x1b   : > { %436 = vmatpush.bf16.msra.mxu2 %v697_v32  ;;  %v743_v42 = vld [vmem:[#allocation2 + $0xd4] sm:$0xf0]  ;;  %v629_v43 = vor.u32 %v726_v38, %v626_v40  ;;  %v742_v45 = vld [vmem:[#allocation2 + $0xd4] sm:$0xf]  ;;  %v690_v46 = vld [vmem:[#allocation2 + $0xd8] sm:$0xf0] }
  0x1c   : > { %v186_v16 = vsub.f32 1.0, %v185_v15  ;;  %449 = vmatpush.bf16.msra.mxu3 %v701_v35  ;;  %v689_v44 = vor.u32 %v743_v42, %v688_v41  ;;  %v693_v47 = vor.u32 %v742_v45, %v690_v46  ;;  %v616_v48 = vld [vmem:[#allocation2 + $0x40] sm:$0xf]  ;;  %v725_v49 = vld [vmem:[#allocation2 + $0x44] sm:$0xf0]  ;;  %s748_s17 = sshll.u32 (%p900_p4), %s888_s15, 3 }
  0x1d   : > { %v724_v50 = vld [vmem:[#allocation2 + $0x44] sm:$0xf]  ;;  %v617_v51 = vor.u32 %v725_v49, %v616_v48  ;;  %v618_v52 = vld [vmem:[#allocation2 + $0x48] sm:$0xf0]  ;;  %v680_v53 = vld [vmem:[#allocation2 + $0xc0] sm:$0xf]  ;;  %s473_s21 = scalar_lea.vmem (%p900_p4), %s954_s3, %s748_s17 }
  0x1e   : > { %v187_v17 = vmul.f32 %v790_v14, %v186_v16  ;;  %312 = vmatpush.bf16.msra.mxu0 %v625_v39  ;;  %325 = vmatpush.bf16.msra.mxu1 %v629_v43  ;;  %v741_v54 = vld [vmem:[#allocation2 + $0xc4] sm:$0xf0]  ;;  %v621_v55 = vor.u32 %v724_v50, %v618_v52  ;;  %v740_v57 = vld [vmem:[#allocation2 + $0xc4] sm:$0xf]  ;;  %v682_v58 = vld [vmem:[#allocation2 + $0xc8] sm:$0xf0] }
  0x1f   : > { %437 = vmatpush.bf16.msra.mxu2 %v689_v44  ;;  %v681_v56 = vor.u32 %v741_v54, %v680_v53  ;;  %v685_v59 = vor.u32 %v740_v57, %v682_v58  ;;  %v608_v60 = vld [vmem:[#allocation2 + $0x30] sm:$0xf]  ;;  %v723_v61 = vld [vmem:[#allocation2 + $0x34] sm:$0xf0]  ;;  %v722_v62 = vld [vmem:[#allocation2 + $0x34] sm:$0xf] }
  0x20   : > { %v188_v18 = vadd.f32 %v790_v14, %v187_v17  ;;  %450 = vmatpush.bf16.msra.mxu3 %v693_v47  ;;  %v609_v63 = vor.u32 %v723_v61, %v608_v60  ;;  %v672_v1 = vld [vmem:[#allocation2 + $0xb0] sm:$0xf]  ;;  %v739_v2 = vld [vmem:[#allocation2 + $0xb4] sm:$0xf0]  ;;  %v738_v5 = vld [vmem:[#allocation2 + $0xb4] sm:$0xf] }
  0x21   : > { %v673_v4 = vor.u32 %v739_v2, %v672_v1  ;;  %v674_v6 = vld [vmem:[#allocation2 + $0xb8] sm:$0xf0]  ;;  %v600_v8 = vld [vmem:[#allocation2 + $0x20] sm:$0xf]  ;;  %v721_v9 = vld [vmem:[#allocation2 + $0x24] sm:$0xf0] }
  0x22   : > { %v919_v19 = vsel %vm189_vm0, %v790_v14, %v188_v18  ;;  %313 = vmatpush.bf16.msra.mxu0 %v617_v51  ;;  %326 = vmatpush.bf16.msra.mxu1 %v621_v55  ;;  %v677_v7 = vor.u32 %v738_v5, %v674_v6  ;;  %v720_v10 = vld [vmem:[#allocation2 + $0x24] sm:$0xf]  ;;  %v601_v11 = vor.u32 %v721_v9, %v600_v8  ;;  %v602_v12 = vld [vmem:[#allocation2 + $0x28] sm:$0xf0]  ;;  %v664_v13 = vld [vmem:[#allocation2 + $0xa0] sm:$0xf] }
  0x23   : > { %438 = vmatpush.bf16.msra.mxu2 %v681_v56  ;;  %v737_v14 = vld [vmem:[#allocation2 + $0xa4] sm:$0xf0]  ;;  %v605_v15 = vor.u32 %v720_v10, %v602_v12  ;;  %v736_v17 = vld [vmem:[#allocation2 + $0xa4] sm:$0xf]  ;;  %v666_v18 = vld [vmem:[#allocation2 + $0xa8] sm:$0xf0] }
  0x24   : > { %451 = vmatpush.bf16.msra.mxu3 %v685_v59  ;;  %v665_v16 = vor.u32 %v737_v14, %v664_v13  ;;  %v718_v24 = vld [vmem:[#allocation2 + $0x14] sm:$0xf]  ;;  %v594_v26 = vld [vmem:[#allocation2 + $0x18] sm:$0xf0]  ;;  %v656_v27 = vld [vmem:[#allocation2 + $0x90] sm:$0xf] }
  0x25   : > { %v735_v28 = vld [vmem:[#allocation2 + $0x94] sm:$0xf0]  ;;  %v597_v29 = vor.u32 %v718_v24, %v594_v26  ;;  %v734_v31 = vld [vmem:[#allocation2 + $0x94] sm:$0xf]  ;;  %v658_v32 = vld [vmem:[#allocation2 + $0x98] sm:$0xf0] }
  0x26   : > { %314 = vmatpush.bf16.msra.mxu0 %v609_v63  ;;  %v657_v30 = vor.u32 %v735_v28, %v656_v27  ;;  %v584_v33 = vld [vmem:[#allocation2] sm:$0xf]  ;;  %v661_v34 = vor.u32 %v734_v31, %v658_v32  ;;  %v717_v35 = vld [vmem:[#allocation2 + $0x4] sm:$0xf0]  ;;  %v716_v36 = vld [vmem:[#allocation2 + $0x4] sm:$0xf] }
  0x27   : > { %439 = vmatpush.bf16.msra.mxu2 %v673_v4  ;;  %v586_v37 = vld [vmem:[#allocation2 + $0x8] sm:$0xf0]  ;;  %v585_v38 = vor.u32 %v717_v35, %v584_v33  ;;  %v648_v40 = vld [vmem:[#allocation2 + $0x80] sm:$0xf]  ;;  %v733_v41 = vld [vmem:[#allocation2 + $0x84] sm:$0xf0] }
  0x28   : > { %452 = vmatpush.bf16.msra.mxu3 %v677_v7  ;;  %v589_v39 = vor.u32 %v716_v36, %v586_v37  ;;  %v732_v42 = vld [vmem:[#allocation2 + $0x84] sm:$0xf]  ;;  %v649_v43 = vor.u32 %v733_v41, %v648_v40  ;;  %v650_v44 = vld [vmem:[#allocation2 + $0x88] sm:$0xf0]  ;;  %v787_v55 = vld [vmem:[%s952_s1] ss:$0 sm:$0xff] }
  0x29   : > { %v653_v45 = vor.u32 %v732_v42, %v650_v44 }
  0x2a   : > { %315 = vmatpush.bf16.msra.mxu0 %v601_v11 }
  0x2b   : > { %440 = vmatpush.bf16.msra.mxu2 %v665_v16 }
  0x2f   : > { %441 = vmatpush.bf16.msra.mxu2 %v657_v30 }
  0x33   : > { %442 = vmatpush.bf16.msra.mxu2 %v649_v43 }
  0x8c   : > { %v183_v20 = vpop.xlane.xlu0 %182 }
  0x8d   : > { %v191_v21 = vmul.f32 %v919_v19, %v183_v20  ;;  %v669_v20 = vor.u32 %v736_v17, %v666_v18 }
  0x8f   : > { %v922_v22 = vsub.f32 %v179_v0, %v191_v21  ;;  %v610_v0 = vld [vmem:[#allocation2 + $0x38] sm:$0xf0]  ;;  %v592_v21 = vld [vmem:[#allocation2 + $0x10] sm:$0xf]  ;;  %453 = vmatpush.bf16.msra.mxu3 %v669_v20 }
  0x90   : > { %v613_v3 = vor.u32 %v722_v62, %v610_v0 }
  0x91   : > { %v193_v23 = vmul.f32 %v922_v22, %v922_v22 }
  0x92   : > { %327 = vmatpush.bf16.msra.mxu1 %v613_v3 }
  0x93   : > { %194 = vadd.xlane.f32.xlu0 %v193_v23  ;;  %v719_v23 = vld [vmem:[#allocation2 + $0x14] sm:$0xf0]  ;;  %454 = vmatpush.bf16.msra.mxu3 %v661_v34 }
  0x94   : > { %v593_v25 = vor.u32 %v719_v23, %v592_v21 }
  0x96   : > { %328 = vmatpush.bf16.msra.mxu1 %v605_v15  ;;  %316 = vmatpush.bf16.msra.mxu0 %v593_v25 }
  0x97   : > { %455 = vmatpush.bf16.msra.mxu3 %v653_v45 }
  0x9a   : > { %329 = vmatpush.bf16.msra.mxu1 %v597_v29  ;;  %317 = vmatpush.bf16.msra.mxu0 %v585_v38 }
  0x9e   : > { %330 = vmatpush.bf16.msra.mxu1 %v589_v39 }
 0x106   : > { %v195_v46 = vpop.xlane.xlu0 %194 }
 0x107   : > { %v196_v47 = vmul.f32 %v195_v46, %v919_v19  ;;  %v788_v19 = vld [vmem:[%s952_s1 + $0x1] ss:$0 sm:$0xff] }
 0x109   : > { %v197_v48 = vadd.f32 1e-06, %v196_v47 }
 0x10b   : > { %791 = vrsqrt.f32 %v197_v48  ;;  %vm204_vm2 = vweird.f32 %v197_v48 }
 0x111   : > { %v792_v49 = vpop.eup %791 }
 0x112   : > { %v199_v50 = vmul.f32 %v792_v49, %v197_v48  ;;  %vm205_vm1 = vweird.f32 %v792_v49 }
 0x113   : > { %vm206_vm3 = vmor %vm204_vm2, %vm205_vm1 }
 0x114   : > { %v200_v51 = vmul.f32 %v792_v49, %v199_v50 }
 0x116   : > { %v201_v52 = vmul.f32 0.5, %v200_v51 }
 0x118   : > { %v202_v53 = vsub.f32 1.5, %v201_v52 }
 0x11a   : > { %v203_v54 = vmul.f32 %v792_v49, %v202_v53 }
 0x11c   : > { %v207_v56 = vsel %vm206_vm3, %v792_v49, %v203_v54 }
 0x11d   : > { %v208_v57 = vmul.f32 %v207_v56, %v922_v22 }
 0x11f   : > { %v210_v58 = vmul.f32 %v787_v55, %v208_v57 }
 0x121   : > { %v212_v59 = vadd.f32 %v788_v19, %v210_v58 }
 0x123   : > { %v213_v60 = vpack.c.bf16 %v212_v59, %v212_v59 }
 0x125   : > { %318 = vmatmul.bf16.vlgmr.msra.gmra.mxu0 %v213_v60  ;;  %331 = vmatmul.bf16.vlgmr.msra.gmra.mxu1 %v213_v60 }
 0x126   : > { %443 = vmatmul.bf16.vlgmr.msra.gmra.mxu2 %v213_v60  ;;  %456 = vmatmul.bf16.vlgmr.msra.gmra.mxu3 %v213_v60 }
 0x1a2   : > { %v319_v61 = vpop.f32.mrf.mxu0  ;;  %v332_v62 = vpop.f32.mrf.mxu1 }
 0x1a3   : > { %v336_v63 = vpack.c.bf16 %v332_v62, %v319_v61 }
 0x1a5   : > { %337 = vst [vmem:[%s174_s14] sm:$0xff] %v336_v63 }
 0x1a9   : > { %v444_v0 = vpop.f32.mrf.mxu2  ;;  %v457_v22 = vpop.f32.mrf.mxu3 }
 0x1aa   : > { %v461_v1 = vpack.c.bf16 %v457_v22, %v444_v0  ;;  %v321_v2 = vpop.f32.mrf.mxu0  ;;  %v334_v3 = vpop.f32.mrf.mxu1 }
 0x1ac   : > { %710 = vst [vmem:[%s174_s14 + $0x8] sm:$0xff] %v461_v1  ;;  %v504_v6 = vld [vmem:[%s174_s14] sm:$0xff] (%p900_p4) }
 0x1ad   : > { %470 = sbr.rel (!%p900_p4) target bundleno = 437 (0x1b5), region = 40  ;;  %505 = vst [vmem:[%s473_s21] sm:$0xff] (%p900_p4), %v504_v6 }
 0x1b1   : > { %v446_v4 = vpop.f32.mrf.mxu2  ;;  %v459_v5 = vpop.f32.mrf.mxu3 }
 0x1b3   : > { %v506_v7 = vld [vmem:[%s174_s14 + $0x8] sm:$0xff] }
 0x1b4   : > { %507 = vst [vmem:[%s473_s21 + $0x10] sm:$0xff] %v506_v7 }
 0x1b5 PF: > { %p11_p11 = scmp.ge.s32.totalorder %s890_s16, 4   ;;  %s956_s12 = smov %s845_s13 }
 0x1b6   : > { %s957_s13 = smov %s898_s19  ;;  %s958_s14 = smov %s890_s16 }
 0x1b7   :  { %13 = sbr.rel (!%p11_p11) target bundleno = 2 (0x2), region = 107 }
 0x1bc   :  { %523 = vsyncpa [#allocation3], 1 }
 0x1bd   :  { %525 = vsyncpa [#allocation3 + $0x1], 1 }

// kernel: _run_inference.3
= control target key start
LH: loop header
LB: loop body
LE: loop exit
PB: predicated region body
PF: predicated region fallthrough
CT: control target
= control target key end

     0   :  { %14 = vsyncpa [#allocation3], 0  ;;  %s2204_s0 = inlined_call_operand.vmem [shape: f32[2,8,128], index: 0, kind: input, shape index: {}]   ;;  %s2205_s1 = inlined_call_operand.vmem [shape: f32[2,1,8], index: 1, kind: input, shape index: {}]   ;;  %s2206_s2 = inlined_call_operand.vmem [shape: f32[4,128], index: 2, kind: input, shape index: {}]   ;;  %s2207_s3 = inlined_call_operand.hbm [shape: bf16[128,384], index: 3, kind: input, shape index: {}]   ;;  %s2208_s4 = inlined_call_operand.hbm [shape: bf16[128,128], index: 4, kind: input, shape index: {}]   ;;  %s2209_s5 = inlined_call_operand.hbm [shape: bf16[128,256], index: 5, kind: input, shape index: {}]   ;;  %s2210_s6 = inlined_call_operand.vmem [shape: f32[1,256], index: 6, kind: input, shape index: {}]   ;;  %s2211_s7 = inlined_call_operand.hbm [shape: bf16[256,128], index: 7, kind: input, shape index: {}]   ;;  %s2212_s8 = inlined_call_operand.vmem [shape: f32[1,128], index: 8, kind: input, shape index: {}]   ;;  %s2213_s9 = inlined_call_operand.vmem [shape: f32[2,8,128], index: 9, kind: output, shape index: {}]  }
   0x1   :  { %15 = vsyncpa [#allocation5], 0 }
   0x2   :  { %16 = vsyncpa [#allocation8], 0  ;;  %s2036_s30 = smov 0  }
   0x3 LB: > { %s280_s12 = sshll.u32 %s2208_s4, 4  ;;  %s2045_s13 = sadd.s32 4294967295, %s1970_s30   ;;  %s1970_s30 = sphi %s2036_s30, %s22_s30   ;;  %s281_s12 = int_to_ptr.hbm [resolvable:$true] %s280_s12 }
   0x4   : > { %p1402_p0 = scmp.ge.s32.totalorder %s1970_s30, 1  ;;  %p252_p1 = scmp.lt.s32.totalorder %s1970_s30, 3 }
   0x5   : > { %p1774_p2 = scmp.eq.s32.totalorder %s2045_s13, 0  ;;  %s1972_s15 = smov [#allocation4]  }
   0x6   : > { %p2050_p3 = pnand %p1402_p0, %p252_p1  ;;  %s282_s16 = sshll.u32 %s1972_s15, 4  ;;  %s283_s16 = int_to_ptr.vmem [resolvable:$true] %s282_s16 }
   0x7   : > { %s266_s19 = sshll.u32 %s2207_s3, 4  ;;  %s1973_s21 = smov [#allocation2]   ;;  %s267_s19 = int_to_ptr.hbm [resolvable:$true] %s266_s19 }
   0x8   : > { %p1761_p4 = pneg %p2050_p3  ;;  %s268_s22 = sshll.u32 %s1973_s21, 4  ;;  %s269_s22 = int_to_ptr.vmem [resolvable:$true] %s268_s22 }
   0x9   : > { %s1974_s23 = smov 64   ;;  %s1975_s24 = smov 4  }
   0xa   : > { %p2061_p5 = pnand %p1774_p2, %p1761_p4  ;;  %s294_s27 = sshll.u32 %s2209_s5, 4  ;;  %s295_s27 = int_to_ptr.hbm [resolvable:$true] %s294_s27 }
   0xb   : > { %s1976_s28 = smov 192   ;;  %s1977_s29 = smov 12  }
   0xc   : > { %1767 = dma.hbm_to_vmem [thread:$0]  (!%p2061_p5), %s281_s12, 1024, %s283_s16, [#allocation5], %s1974_s23, %s1974_s23, %s1975_s24  }
   0xd   : > { %1764 = dma.hbm_to_vmem [thread:$0]  (!%p2061_p5), %s267_s19, 3072, %s269_s22, [#allocation3], %s1976_s28, %s1976_s28, %s1977_s29  }
   0xe   : > { %s1978_s10 = smov [#allocation6]   ;;  %s1979_s15 = smov 128  }
   0xf   : > { %s296_s11 = sshll.u32 %s1978_s10, 4  ;;  %s1980_s17 = smov 8   ;;  %s297_s11 = int_to_ptr.vmem [resolvable:$true] %s296_s11 }
  0x10   : > { %1770 = dma.hbm_to_vmem [thread:$0]  (!%p2061_p5), %s295_s27, 2048, %s297_s11, [#allocation5], %s1979_s15, %s1979_s15, %s1980_s17  }
  0x11   : > { %s311_s12 = sshll.u32 %s2211_s7, 4  ;;  %s1981_s16 = smov [#allocation7]   ;;  %s312_s12 = int_to_ptr.hbm [resolvable:$true] %s311_s12 }
  0x12   : > { %s313_s25 = sshll.u32 %s1981_s16, 4  ;;  %345 = sbr.rel (%p2050_p3) target bundleno = 2155 (0x86b), region = 56  ;;  %s314_s25 = int_to_ptr.vmem [resolvable:$true] %s313_s25 }
  0x13   : > { %1773 = dma.hbm_to_vmem [thread:$0]  (!%p2061_p5), %s312_s12, 2048, %s314_s25, [#allocation8], %s1974_s23, %s1974_s23, %s1975_s24  }
  0x17   : > { %1957 = dma.done.wait (%p1774_p2), [#allocation3], 3072  }
  0x18   : > { %1959 = vsyncadd (%p1774_p2), [#allocation3], 4294964224 }
  0x19   : > { %1961 = dma.done.wait (%p1774_p2), [#allocation5], 3072  }
  0x1a   : > { %1963 = vsyncadd (%p1774_p2), [#allocation5], 4294964224 }
  0x1b   : > { %1965 = dma.done.wait (%p1774_p2), [#allocation8], 2048  }
  0x1c   : > { %1967 = vsyncadd (%p1774_p2), [#allocation8], 4294965248  ;;  %p398_p6 = scmp.lt.s32.totalorder %s2045_s13, 1  ;;  %v1982_v1 = vmov 128.0   ;;  %v1501_v2 = vld [vmem:[#allocation2 + $0xa8] sm:$0xf] }
  0x1d   : > { %1810 = vrcp.f32 %v1982_v1  ;;  %v1703_v3 = vld [vmem:[#allocation2 + $0xb0] sm:$0xf0]  ;;  %v1702_v4 = vld [vmem:[#allocation2 + $0xac] sm:$0xf]  ;;  %v1503_v6 = vld [vmem:[#allocation2 + $0xb4] sm:$0xf0] }
  0x1e   : > { %s2217_s13 = smov (!%p398_p6, %s2045_s13), 1  ;;  %v1502_v5 = vor.u32 %v1703_v3, %v1501_v2  ;;  %v1509_v7 = vld [vmem:[#allocation2 + $0xb0] sm:$0xf]  ;;  %v1704_v8 = vld [vmem:[#allocation2 + $0xb8] sm:$0xf0]  ;;  %v1506_v9 = vor.u32 %v1702_v4, %v1503_v6  ;;  %vm651_vm4 = vcmask 261120  }
  0x1f   : > { %s1413_s14 = sshll.u32 %s2217_s13, 3  ;;  %s404_s26 = scalar_lea.vmem %s2205_s1, %s2217_s13  ;;  %v1510_v10 = vor.u32 %v1704_v8, %v1509_v7  ;;  %v1489_v21 = vld [vmem:[#allocation2 + $0x90] sm:$0xf]  ;;  %v1700_v22 = vld [vmem:[#allocation2 + $0x98] sm:$0xf0]  ;;  %vm687_vm5 = vcmask 1043456  }
  0x20   : > { %s401_s22 = scalar_lea.vmem %s2204_s0, %s1413_s14  ;;  %606 = vmatpush.bf16.msra.mxu0 %v1502_v5  ;;  %619 = vmatpush.bf16.msra.mxu1 %v1506_v9  ;;  %v1699_v23 = vld [vmem:[#allocation2 + $0x94] sm:$0xf]  ;;  %v1490_v24 = vor.u32 %v1700_v22, %v1489_v21  ;;  %v1491_v25 = vld [vmem:[#allocation2 + $0x9c] sm:$0xf0]  ;;  %v1497_v26 = vld [vmem:[#allocation2 + $0x98] sm:$0xf]  ;;  %s408_s28 = scalar_lea.vmem %s2213_s9, %s1413_s14 }
  0x21   : > { %v2107_v0 = vld [vmem:[%s401_s22] sm:$0xff]  ;;  %632 = vmatpush.bf16.msra.mxu2 %v1510_v10  ;;  %v1494_v28 = vor.u32 %v1699_v23, %v1491_v25  ;;  %v1477_v30 = vld [vmem:[#allocation2 + $0x78] sm:$0xf]  ;;  %v1696_v32 = vld [vmem:[#allocation2 + $0x7c] sm:$0xf]  ;;  %s1983_s11 = smov 64  }
  0x22   : > { %414 = vadd.xlane.f32.xlu0 %v2107_v0  ;;  %v1701_v27 = vld [vmem:[#allocation2 + $0xa0] sm:$0xf0]  ;;  %v1479_v34 = vld [vmem:[#allocation2 + $0x84] sm:$0xf0]  ;;  %v1485_v35 = vld [vmem:[#allocation2 + $0x80] sm:$0xf] }
  0x23   : > { %v1811_v11 = vpop.eup %1810  ;;  %v1498_v29 = vor.u32 %v1701_v27, %v1497_v26  ;;  %v1697_v31 = vld [vmem:[#allocation2 + $0x80] sm:$0xf0]  ;;  %v1698_v36 = vld [vmem:[#allocation2 + $0x88] sm:$0xf0]  ;;  %v1482_v37 = vor.u32 %v1696_v32, %v1479_v34  ;;  %v1465_v39 = vld [vmem:[#allocation2 + $0x60] sm:$0xf] }
  0x24   : > { %v417_v12 = vmul.f32 128.0, %v1811_v11  ;;  %vm421_vm0 = vweird.f32 %v1811_v11  ;;  %607 = vmatpush.bf16.msra.mxu0 %v1490_v24  ;;  %620 = vmatpush.bf16.msra.mxu1 %v1494_v28  ;;  %v1478_v33 = vor.u32 %v1697_v31, %v1477_v30  ;;  %v1486_v38 = vor.u32 %v1698_v36, %v1485_v35  ;;  %v1694_v40 = vld [vmem:[#allocation2 + $0x68] sm:$0xf0]  ;;  %v1693_v41 = vld [vmem:[#allocation2 + $0x64] sm:$0xf]  ;;  %s1984_s15 = smov 96  }
  0x25   : > { %633 = vmatpush.bf16.msra.mxu2 %v1498_v29  ;;  %v1466_v42 = vor.u32 %v1694_v40, %v1465_v39  ;;  %v1467_v43 = vld [vmem:[#allocation2 + $0x6c] sm:$0xf0]  ;;  %v1473_v44 = vld [vmem:[#allocation2 + $0x68] sm:$0xf]  ;;  %v1695_v45 = vld [vmem:[#allocation2 + $0x70] sm:$0xf0] }
  0x26   : > { %v418_v13 = vsub.f32 1.0, %v417_v12  ;;  %v1470_v46 = vor.u32 %v1693_v41, %v1467_v43  ;;  %v1474_v47 = vor.u32 %v1695_v45, %v1473_v44  ;;  %v1453_v48 = vld [vmem:[#allocation2 + $0x48] sm:$0xf]  ;;  %v1691_v49 = vld [vmem:[#allocation2 + $0x50] sm:$0xf0]  ;;  %s1985_s17 = smov 32  }
  0x27   : > { %v1690_v50 = vld [vmem:[#allocation2 + $0x4c] sm:$0xf]  ;;  %v1454_v51 = vor.u32 %v1691_v49, %v1453_v48  ;;  %v1455_v52 = vld [vmem:[#allocation2 + $0x54] sm:$0xf0]  ;;  %v1461_v53 = vld [vmem:[#allocation2 + $0x50] sm:$0xf] }
  0x28   : > { %v419_v14 = vmul.f32 %v1811_v11, %v418_v13  ;;  %608 = vmatpush.bf16.msra.mxu0 %v1478_v33  ;;  %621 = vmatpush.bf16.msra.mxu1 %v1482_v37  ;;  %v1692_v54 = vld [vmem:[#allocation2 + $0x58] sm:$0xf0]  ;;  %v1458_v55 = vor.u32 %v1690_v50, %v1455_v52  ;;  %v1441_v57 = vld [vmem:[#allocation2 + $0x30] sm:$0xf]  ;;  %v1687_v59 = vld [vmem:[#allocation2 + $0x34] sm:$0xf] }
  0x29   : > { %634 = vmatpush.bf16.msra.mxu2 %v1486_v38  ;;  %v1462_v56 = vor.u32 %v1692_v54, %v1461_v53  ;;  %v1688_v58 = vld [vmem:[#allocation2 + $0x38] sm:$0xf0]  ;;  %v1443_v61 = vld [vmem:[#allocation2 + $0x3c] sm:$0xf0]  ;;  %v1449_v62 = vld [vmem:[#allocation2 + $0x38] sm:$0xf] }
  0x2a   : > { %v420_v15 = vadd.f32 %v1811_v11, %v419_v14  ;;  %v1442_v60 = vor.u32 %v1688_v58, %v1441_v57  ;;  %v1689_v63 = vld [vmem:[#allocation2 + $0x40] sm:$0xf0]  ;;  %v1446_v1 = vor.u32 %v1687_v59, %v1443_v61  ;;  %v1429_v3 = vld [vmem:[#allocation2 + $0x18] sm:$0xf]  ;;  %v1684_v5 = vld [vmem:[#allocation2 + $0x1c] sm:$0xf] }
  0x2b   : > { %v1450_v2 = vor.u32 %v1689_v63, %v1449_v62  ;;  %v1685_v4 = vld [vmem:[#allocation2 + $0x20] sm:$0xf0]  ;;  %v1431_v7 = vld [vmem:[#allocation2 + $0x24] sm:$0xf0]  ;;  %v1437_v8 = vld [vmem:[#allocation2 + $0x20] sm:$0xf] }
  0x2c   : > { %v2110_v16 = vsel %vm421_vm0, %v1811_v11, %v420_v15  ;;  %609 = vmatpush.bf16.msra.mxu0 %v1466_v42  ;;  %622 = vmatpush.bf16.msra.mxu1 %v1470_v46  ;;  %v1430_v6 = vor.u32 %v1685_v4, %v1429_v3  ;;  %v1686_v9 = vld [vmem:[#allocation2 + $0x28] sm:$0xf0]  ;;  %v1434_v10 = vor.u32 %v1684_v5, %v1431_v7  ;;  %v1417_v12 = vld [vmem:[#allocation2] sm:$0xf]  ;;  %v1681_v14 = vld [vmem:[#allocation2 + $0x4] sm:$0xf] }
  0x2d   : > { %635 = vmatpush.bf16.msra.mxu2 %v1474_v47  ;;  %v1438_v11 = vor.u32 %v1686_v9, %v1437_v8  ;;  %v1682_v13 = vld [vmem:[#allocation2 + $0x8] sm:$0xf0]  ;;  %v1804_v32 = vld [vmem:[%s2206_s2] ss:$0 sm:$0xff]  ;;  %v1805_v35 = vld [vmem:[%s2206_s2 + $0x1] ss:$0 sm:$0xff] }
  0x2e   : > { %v1418_v15 = vor.u32 %v1682_v13, %v1417_v12  ;;  %v1806_v59 = vld [vmem:[%s404_s26] ss:$0 sm:$0xff]  ;;  %vm671_vm6 = vcmask 64512   ;;  %vm894_vm7 = vcmask 523264   ;;  %vm896_vm8 = vcmask 785408  }
  0x30   : > { %610 = vmatpush.bf16.msra.mxu0 %v1454_v51  ;;  %623 = vmatpush.bf16.msra.mxu1 %v1458_v55 }
  0x31   : > { %636 = vmatpush.bf16.msra.mxu2 %v1462_v56 }
  0x34   : > { %611 = vmatpush.bf16.msra.mxu0 %v1442_v60  ;;  %624 = vmatpush.bf16.msra.mxu1 %v1446_v1 }
  0x35   : > { %637 = vmatpush.bf16.msra.mxu2 %v1450_v2 }
  0x38   : > { %612 = vmatpush.bf16.msra.mxu0 %v1430_v6  ;;  %625 = vmatpush.bf16.msra.mxu1 %v1434_v10 }
  0x39   : > { %638 = vmatpush.bf16.msra.mxu2 %v1438_v11 }
  0x3c   : > { %613 = vmatpush.bf16.msra.mxu0 %v1418_v15 }
  0x95   : > { %v415_v17 = vpop.xlane.xlu0 %414 }
  0x96   : > { %v423_v18 = vmul.f32 %v2110_v16, %v415_v17  ;;  %v1419_v17 = vld [vmem:[#allocation2 + $0xc] sm:$0xf0] }
  0x97   : > { %v1422_v21 = vor.u32 %v1681_v14, %v1419_v17 }
  0x98   : > { %v2114_v19 = vsub.f32 %v2107_v0, %v423_v18  ;;  %v1425_v18 = vld [vmem:[#allocation2 + $0x8] sm:$0xf] }
  0x99   : > { %626 = vmatpush.bf16.msra.mxu1 %v1422_v21 }
  0x9a   : > { %v425_v20 = vmul.f32 %v2114_v19, %v2114_v19 }
  0x9c   : > { %426 = vadd.xlane.f32.xlu0 %v425_v20  ;;  %v1683_v20 = vld [vmem:[#allocation2 + $0x10] sm:$0xf0] }
  0x9d   : > { %v1426_v22 = vor.u32 %v1683_v20, %v1425_v18 }
  0x9f   : > { %639 = vmatpush.bf16.msra.mxu2 %v1426_v22 }
 0x10f   : > { %v427_v23 = vpop.xlane.xlu0 %426 }
 0x110   : > { %v428_v24 = vmul.f32 %v427_v23, %v2110_v16 }
 0x112   : > { %v429_v25 = vadd.f32 1e-06, %v428_v24 }
 0x114   : > { %1812 = vrsqrt.f32 %v429_v25  ;;  %vm436_vm2 = vweird.f32 %v429_v25 }
 0x11a   : > { %v1813_v26 = vpop.eup %1812 }
 0x11b   : > { %v431_v27 = vmul.f32 %v1813_v26, %v429_v25  ;;  %vm437_vm1 = vweird.f32 %v1813_v26 }
 0x11c   : > { %vm438_vm3 = vmor %vm436_vm2, %vm437_vm1 }
 0x11d   : > { %v432_v28 = vmul.f32 %v1813_v26, %v431_v27 }
 0x11f   : > { %v433_v29 = vmul.f32 0.5, %v432_v28 }
 0x121   : > { %v434_v30 = vsub.f32 1.5, %v433_v29 }
 0x123   : > { %v435_v31 = vmul.f32 %v1813_v26, %v434_v30 }
 0x125   : > { %v439_v33 = vsel %vm438_vm3, %v1813_v26, %v435_v31 }
 0x126   : > { %v440_v34 = vmul.f32 %v439_v33, %v2114_v19 }
 0x128   : > { %v442_v36 = vmul.f32 %v1804_v32, %v440_v34 }
 0x12a   : > { %v444_v37 = vadd.f32 %v1805_v35, %v442_v36 }
 0x12c   : > { %v445_v38 = vpack.c.bf16 %v444_v37, %v444_v37 }
 0x12e   : > { %614 = vmatmul.bf16.vlgmr.msra.gmra.mxu0 %v445_v38  ;;  %627 = vmatmul.bf16.vlgmr.msra.gmra.mxu1 %v445_v38 }
 0x12f   : > { %640 = vmatmul.bf16.vlgmr.msra.gmra.mxu2 %v445_v38 }
 0x1ab   : > { %v615_v39 = vpop.f32.mrf.mxu0  ;;  %v628_v40 = vpop.f32.mrf.mxu1 }
 0x1ac   : > { %v649_v41 = vpack.c.bf16 %v628_v40, %v628_v40  ;;  %v648_v44 = vpack.c.bf16 %v615_v39, %v615_v39 }
 0x1ae   : > { %v710_v42 = vunpack.c.l.b16 %v649_v41  ;;  %v656_v43 = vsel %vm651_vm4, %v649_v41, 0  ;;  %v705_v49 = vunpack.c.l.b16 %v648_v44 }
 0x1af   : > { %665 = vmatpush.bf16.xpose.msra.mxu3 %v656_v43 }
 0x1b0   : > { %v711_v19 = vpack.c.b16 %v710_v42, %v710_v42  ;;  %v706_v51 = vpack.c.b16 %v705_v49, %v705_v49 }
 0x1b2   : > { %v641_v45 = vpop.f32.mrf.mxu2  ;;  %771 = vrot.lane.b32.xlu0 %v711_v19, %s1983_s11  ;;  %712 = vrot.lane.b32.xlu2 %v711_v19, %s1984_s15 }
 0x1b3   : > { %v650_v46 = vpack.c.bf16 %v641_v45, %v641_v45  ;;  %v617_v47 = vpop.f32.mrf.mxu0  ;;  %v630_v48 = vpop.f32.mrf.mxu1 }
 0x1b5   : > { %v689_v50 = vsel %vm687_vm5, %v650_v46, 0  ;;  %v746_v10 = vunpack.c.l.b16 %v650_v46 }
 0x1b6   : > { %1511 = vmatmul.msk.bf16.vlgmr.msra.gmra.mxu3 %vm651_vm4, %v648_v44 }
 0x1b7   : > { %698 = vmatpush.bf16.msrb.mxu3 %v689_v50  ;;  %v747_v11 = vpack.c.b16 %v746_v10, %v746_v10 }
 0x1ba   : > { %v643_v52 = vpop.f32.mrf.mxu2  ;;  %707 = vrot.lane.b32.xlu2 %v706_v51, %s1984_s15 }
 0x1c2   : > { %769 = vrot.lane.b32.xlu2 %v706_v51, %s1983_s11 }
 0x1ca   : > { %825 = vrot.lane.b32.xlu2 %v706_v51, %s1985_s17 }
 0x20c   : > { %v713_v53 = vpop.permute.xlu2 %712 }
 0x20d   : > { %v718_v54 = vsel %vm651_vm4, %v713_v53, 0 }
 0x20e   : > { %727 = vmatpush.bf16.xpose.msra.mxu3 %v718_v54 }
 0x214   : > { %v708_v55 = vpop.permute.xlu2 %707 }
 0x21c   : > { %v770_v58 = vpop.permute.xlu2 %769 }
 0x224   : > { %v772_v56 = vpop.permute.xlu0 %771  ;;  %v826_v23 = vpop.permute.xlu2 %825 }
 0x225   : > { %v777_v57 = vsel %vm651_vm4, %v772_v56, 0 }
 0x226   : > { %786 = vmatpush.bf16.xpose.msrb.mxu2 %v777_v57 }
 0x22d   : > { %1515 = vmatmul.msk.bf16.vlgmr.msrb.gmra.mxu2 %vm651_vm4, %v770_v58 }
 0x239   : > { %v667_v60 = vpop.f32.mrf.mxu3 }
 0x23a   : > { %v668_v61 = vadd.f32 %v1806_v59, %v667_v60 }
 0x23c   : > { %v672_v62 = vsel %vm671_vm6, %v668_v61, -inf }
 0x23d   : > { %673 = vmax.xlane.f32.xlu1 %v672_v62 }
 0x241   : > { %v669_v63 = vpop.f32.mrf.mxu3 }
 0x2b0   : > { %v788_v1 = vpop.f32.mrf.mxu2  ;;  %v674_v3 = vpop.xlane.xlu1 %673 }
 0x2b1   : > { %v789_v2 = vadd.f32 %v1806_v59, %v788_v1  ;;  %v675_v4 = vsub.f32 %v668_v61, %v674_v3  ;;  %v1712_v3 = vld [vmem:[#allocation4 + $0x38] sm:$0xff] }
 0x2b2   : > { %963 = vmatpush.bf16.msrb.mxu1 %v1712_v3  ;;  %v1715_v3 = vld [vmem:[#allocation6 + $0x14] sm:$0xf] }
 0x2b3   : > { %v792_v5 = vsel %vm671_vm6, %v789_v2, -inf  ;;  %v676_v6 = vmul.f32 1.442695, %v675_v4  ;;  %v1711_v4 = vld [vmem:[#allocation4 + $0x30] sm:$0xff] }
 0x2b4   : > { %793 = vmax.xlane.f32.xlu0 %v792_v5 }
 0x2b5   : > { %1814 = vpow2.f32 %v676_v6  ;;  %v1710_v6 = vld [vmem:[#allocation4 + $0x28] sm:$0xff] }
 0x2b6   : > { %964 = vmatpush.bf16.msrb.mxu1 %v1711_v4 }
 0x2b8   : > { %v790_v7 = vpop.f32.mrf.mxu2 }
 0x2b9   : > { %v1709_v7 = vld [vmem:[#allocation4 + $0x20] sm:$0xff] }
 0x2ba   : > { %965 = vmatpush.bf16.msrb.mxu1 %v1710_v6 }
 0x2bb   : > { %v1815_v8 = vpop.eup %1814 }
 0x2bc   : > { %v678_v9 = vsel %vm671_vm6, %v1815_v8, 0.0 }
 0x2bd   : > { %679 = vadd.xlane.f32.xlu1 %v678_v9 }
 0x2be   : > { %966 = vmatpush.bf16.msrb.mxu1 %v1709_v7  ;;  %v1553_v7 = vld [vmem:[#allocation6] sm:$0xf] }
 0x2c8   : > { %748 = vrot.lane.b32.xlu0 %v747_v11, %s1984_s15 }
 0x2d6   : > { %827 = vrot.lane.b32.xlu1 %v711_v19, %s1985_s17 }
 0x327   : > { %v794_v13 = vpop.xlane.xlu0 %793 }
 0x328   : > { %v795_v26 = vsub.f32 %v789_v2, %v794_v13  ;;  %v1705_v13 = vld [vmem:[#allocation4] sm:$0xff] }
 0x32a   : > { %v796_v27 = vmul.f32 1.442695, %v795_v26 }
 0x330   : > { %v680_v12 = vpop.xlane.xlu1 %679 }
 0x331   : > { %1816 = vrcp.f32 %v680_v12  ;;  %v1706_v12 = vld [vmem:[#allocation4 + $0x8] sm:$0xff] }
 0x332   : > { %1818 = vpow2.f32 %v796_v27  ;;  %v1609_v27 = vld [vmem:[#allocation6 + $0x70] sm:$0xf] }
 0x337   : > { %v1817_v14 = vpop.eup %1816 }
 0x338   : > { %v682_v15 = vmul.f32 %v1817_v14, %v1815_v8  ;;  %v1819_v31 = vpop.eup %1818  ;;  %v1708_v8 = vld [vmem:[#allocation4 + $0x18] sm:$0xff] }
 0x339   : > { %v798_v33 = vsel %vm671_vm6, %v1819_v31, 0.0  ;;  %967 = vmatpush.bf16.msrb.mxu1 %v1708_v8  ;;  %v1714_v8 = vld [vmem:[#allocation6 + $0x4] sm:$0xf0] }
 0x33a   : > { %v749_v17 = vpop.permute.xlu0 %748  ;;  %v683_v18 = vpack.c.bf16 %v682_v15, %v682_v15 }
 0x33b   : > { %v754_v20 = vsel %vm687_vm5, %v749_v17, 0 }
 0x33c   : > { %763 = vmatpush.bf16.msrb.mxu0 %v754_v20  ;;  %1512 = vmatmul.msk.bf16.vlgmr.msrb.gmra.mxu3 %vm671_vm6, %v683_v18 }
 0x348   : > { %v828_v21 = vpop.permute.xlu1 %827 }
 0x349   : > { %v833_v22 = vsel %vm651_vm4, %v828_v21, 0 }
 0x34a   : > { %842 = vmatpush.bf16.xpose.msrb.mxu3 %v833_v22 }
 0x34c   : > { %1513 = vmatmul.msk.bf16.vlgmr.msra.gmra.mxu3 %vm651_vm4, %v708_v55 }
 0x35c   : > { %1517 = vmatmul.msk.bf16.vlgmr.msrb.gmra.mxu3 %vm651_vm4, %v826_v23 }
 0x3bf   : > { %v2152_v24 = vpop.f32.mrf.mxu3 }
 0x3c7   : > { %v702_v25 = vpop.f32.mrf.mxu3 }
 0x3cf   : > { %v729_v28 = vpop.f32.mrf.mxu3 }
 0x3d0   : > { %v730_v29 = vadd.f32 %v1806_v59, %v729_v28  ;;  %v1728_v28 = vld [vmem:[#allocation6 + $0x74] sm:$0xf0] }
 0x3d2   : > { %v733_v30 = vsel %vm671_vm6, %v730_v29, -inf }
 0x3d3   : > { %734 = vmax.xlane.f32.xlu2 %v733_v30  ;;  %v1610_v30 = vor.u32 %v1728_v28, %v1609_v27  ;;  %v1741_v27 = vld [vmem:[#allocation7 + $0x60] sm:$0xff] }
 0x3d7   : > { %v731_v32 = vpop.f32.mrf.mxu3 }
 0x3db   : > { %799 = vadd.xlane.f32.xlu2 %v798_v33 }
 0x3df   : > { %v844_v34 = vpop.f32.mrf.mxu3 }
 0x3e0   : > { %v845_v35 = vadd.f32 %v1806_v59, %v844_v34 }
 0x3e2   : > { %v848_v36 = vsel %vm671_vm6, %v845_v35, -inf }
 0x3e3   : > { %849 = vmax.xlane.f32.xlu1 %v848_v36  ;;  %v1726_v36 = vld [vmem:[#allocation6 + $0x64] sm:$0xf0] }
 0x3e7   : > { %v846_v37 = vpop.f32.mrf.mxu3 }
 0x3e8   : > { %v1725_v37 = vld [vmem:[#allocation6 + $0x64] sm:$0xf] }
 0x446   : > { %v735_v38 = vpop.xlane.xlu2 %734 }
 0x447   : > { %v736_v39 = vsub.f32 %v730_v29, %v735_v38  ;;  %v1727_v29 = vld [vmem:[#allocation6 + $0x74] sm:$0xf] }
 0x449   : > { %v737_v40 = vmul.f32 1.442695, %v736_v39  ;;  %v1603_v39 = vld [vmem:[#allocation6 + $0x68] sm:$0xf0] }
 0x44b   : > { %1820 = vpow2.f32 %v737_v40  ;;  %v1606_v40 = vor.u32 %v1725_v37, %v1603_v39  ;;  %v1808_v39 = vld [vmem:[%s2206_s2 + $0x3] ss:$0 sm:$0xff] }
 0x44e   : > { %v800_v47 = vpop.xlane.xlu2 %799 }
 0x451   : > { %v1821_v41 = vpop.eup %1820 }
 0x452   : > { %v739_v42 = vsel %vm671_vm6, %v1821_v41, 0.0 }
 0x453   : > { %740 = vadd.xlane.f32.xlu2 %v739_v42  ;;  %v1724_v42 = vld [vmem:[#allocation6 + $0x54] sm:$0xf0] }
 0x456   : > { %v850_v43 = vpop.xlane.xlu1 %849 }
 0x457   : > { %v851_v44 = vsub.f32 %v845_v35, %v850_v43  ;;  %v1601_v35 = vld [vmem:[#allocation6 + $0x60] sm:$0xf]  ;;  %v1723_v43 = vld [vmem:[#allocation6 + $0x54] sm:$0xf] }
 0x458   : > { %v1602_v38 = vor.u32 %v1726_v36, %v1601_v35  ;;  %v1807_v36 = vld [vmem:[%s2206_s2 + $0x2] ss:$0 sm:$0xff] }
 0x459   : > { %v852_v19 = vmul.f32 1.442695, %v851_v44 }
 0x45b   : > { %1822 = vpow2.f32 %v852_v19  ;;  %v1595_v19 = vld [vmem:[#allocation6 + $0x58] sm:$0xf0] }
 0x45c   : > { %1824 = vrcp.f32 %v800_v47  ;;  %v1722_v47 = vld [vmem:[#allocation6 + $0x44] sm:$0xf0] }
 0x461   : > { %v1823_v45 = vpop.eup %1822 }
 0x462   : > { %v854_v46 = vsel %vm671_vm6, %v1823_v45, 0.0  ;;  %v1825_v49 = vpop.eup %1824 }
 0x463   : > { %855 = vadd.xlane.f32.xlu1 %v854_v46  ;;  %v802_v51 = vmul.f32 %v1825_v49, %v1819_v31  ;;  %v1611_v31 = vld [vmem:[#allocation6 + $0x78] sm:$0xf0]  ;;  %v1585_v46 = vld [vmem:[#allocation6 + $0x40] sm:$0xf] }
 0x464   : > { %v1614_v32 = vor.u32 %v1727_v29, %v1611_v31  ;;  %v1586_v49 = vor.u32 %v1722_v47, %v1585_v46 }
 0x465   : > { %v803_v56 = vpack.c.bf16 %v802_v51, %v802_v51 }
 0x466   : > { %1119 = vmatpush.bf16.msra.mxu3 %v1614_v32 }
 0x46a   : > { %1120 = vmatpush.bf16.msra.mxu3 %v1606_v40 }
 0x46b   : > { %804 = vrot.lane.b32.xlu2 %v747_v11, %s1983_s11 }
 0x47c   : > { %860 = vrot.lane.b32.xlu1 %v747_v11, %s1985_s17  ;;  %v1707_v11 = vld [vmem:[#allocation4 + $0x10] sm:$0xff] }
 0x47d   : > { %968 = vmatpush.bf16.msrb.mxu1 %v1707_v11  ;;  %v1555_v11 = vld [vmem:[#allocation6 + $0x8] sm:$0xf0] }
 0x481   : > { %969 = vmatpush.bf16.msrb.mxu1 %v1706_v12 }
 0x485   : > { %970 = vmatpush.bf16.msrb.mxu1 %v1705_v13  ;;  %v1736_v13 = vld [vmem:[#allocation7 + $0x38] sm:$0xff] }
 0x4c6   : > { %v741_v48 = vpop.xlane.xlu2 %740 }
 0x4c7   : > { %1826 = vrcp.f32 %v741_v48  ;;  %v1721_v48 = vld [vmem:[#allocation6 + $0x44] sm:$0xf] }
 0x4cd   : > { %v1827_v50 = vpop.eup %1826 }
 0x4ce   : > { %v743_v52 = vmul.f32 %v1827_v50, %v1821_v41  ;;  %v805_v53 = vpop.permute.xlu2 %804  ;;  %v1593_v41 = vld [vmem:[#allocation6 + $0x50] sm:$0xf]  ;;  %v1587_v50 = vld [vmem:[#allocation6 + $0x48] sm:$0xf0] }
 0x4cf   : > { %v810_v54 = vsel %vm687_vm5, %v805_v53, 0  ;;  %v1594_v44 = vor.u32 %v1724_v42, %v1593_v41  ;;  %v1590_v51 = vor.u32 %v1721_v48, %v1587_v50  ;;  %v1720_v53 = vld [vmem:[#allocation6 + $0x34] sm:$0xf0] }
 0x4d0   : > { %819 = vmatpush.bf16.msra.mxu2 %v810_v54  ;;  %v744_v55 = vpack.c.bf16 %v743_v52, %v743_v52  ;;  %v1577_v52 = vld [vmem:[#allocation6 + $0x30] sm:$0xf]  ;;  %v1719_v54 = vld [vmem:[#allocation6 + $0x34] sm:$0xf] }
 0x4d2   : > { %1514 = vmatmul.msk.bf16.vlgmr.msrb.gmra.mxu0 %vm671_vm6, %v744_v55  ;;  %v1578_v55 = vor.u32 %v1720_v53, %v1577_v52 }
 0x4d3   : > { %1516 = vmatmul.msk.bf16.vlgmr.msra.gmra.mxu2 %vm671_vm6, %v803_v56  ;;  %v1579_v56 = vld [vmem:[#allocation6 + $0x38] sm:$0xf0] }
 0x4d4   : > { %1106 = vmatpush.bf16.msrb.mxu2 %v1610_v30  ;;  %v1732_v30 = vld [vmem:[#allocation7 + $0x18] sm:$0xff] }
 0x4d6   : > { %v856_v57 = vpop.xlane.xlu1 %855 }
 0x4d7   : > { %1828 = vrcp.f32 %v856_v57  ;;  %v1582_v57 = vor.u32 %v1719_v54, %v1579_v56 }
 0x4d8   : > { %1107 = vmatpush.bf16.msrb.mxu2 %v1602_v38 }
 0x4dc   : > { %1108 = vmatpush.bf16.msrb.mxu2 %v1594_v44  ;;  %v1738_v44 = vld [vmem:[#allocation7 + $0x48] sm:$0xff] }
 0x4dd   : > { %v1829_v58 = vpop.eup %1828 }
 0x4de   : > { %v858_v59 = vmul.f32 %v1829_v58, %v1823_v45  ;;  %v1598_v45 = vor.u32 %v1723_v43, %v1595_v19  ;;  %v1569_v58 = vld [vmem:[#allocation6 + $0x20] sm:$0xf]  ;;  %v1730_v43 = vld [vmem:[#allocation7 + $0x8] sm:$0xff] }
 0x4df   : > { %v1729_v19 = vld [vmem:[#allocation7] sm:$0xff] }
 0x4e0   : > { %v859_v62 = vpack.c.bf16 %v858_v59, %v858_v59  ;;  %1121 = vmatpush.bf16.msra.mxu3 %v1598_v45  ;;  %1109 = vmatpush.bf16.msrb.mxu2 %v1586_v49  ;;  %v1718_v59 = vld [vmem:[#allocation6 + $0x24] sm:$0xf0]  ;;  %v1737_v45 = vld [vmem:[#allocation7 + $0x40] sm:$0xff] }
 0x4e4   : > { %1122 = vmatpush.bf16.msra.mxu3 %v1590_v51  ;;  %1110 = vmatpush.bf16.msrb.mxu2 %v1578_v55 }
 0x4e8   : > { %1123 = vmatpush.bf16.msra.mxu3 %v1582_v57 }
 0x4ee   : > { %v861_v60 = vpop.permute.xlu1 %860 }
 0x4ef   : > { %v866_v61 = vsel %vm687_vm5, %v861_v60, 0  ;;  %v1717_v60 = vld [vmem:[#allocation6 + $0x24] sm:$0xf] }
 0x4f0   : > { %875 = vmatpush.bf16.msra.mxu0 %v866_v61  ;;  %v1570_v61 = vor.u32 %v1718_v59, %v1569_v58 }
 0x4f2   : > { %1111 = vmatpush.bf16.msrb.mxu2 %v1570_v61  ;;  %v1809_v61 = vld [vmem:[%s2212_s8] ss:$0 sm:$0xff] }
 0x4f3   : > { %1518 = vmatmul.msk.bf16.vlgmr.msra.gmra.mxu0 %vm671_vm6, %v859_v62  ;;  %v1571_v62 = vld [vmem:[#allocation6 + $0x28] sm:$0xf0] }
 0x4f4   : > { %1264 = vmatpush.bf16.msrb.mxu0 %v1736_v13 }
 0x54f   : > { %v765_v63 = vpop.f32.mrf.mxu0 }
 0x550   : > { %882 = vrot.lane.b32.xlu0 %v765_v63, %s1985_s17  ;;  %v1574_v63 = vor.u32 %v1717_v60, %v1571_v62 }
 0x552   : > { %1124 = vmatpush.bf16.msra.mxu3 %v1574_v63 }
 0x556   : > { %v821_v1 = vpop.f32.mrf.mxu2 }
 0x557   : > { %v767_v2 = vpop.f32.mrf.mxu0 }
 0x558   : > { %886 = vrot.lane.b32.xlu0 %v821_v1, %s1983_s11  ;;  %v1561_v1 = vld [vmem:[#allocation6 + $0x10] sm:$0xf]  ;;  %v1716_v2 = vld [vmem:[#allocation6 + $0x14] sm:$0xf0] }
 0x559   : > { %v1562_v4 = vor.u32 %v1716_v2, %v1561_v1 }
 0x55b   : > { %1112 = vmatpush.bf16.msrb.mxu2 %v1562_v4 }
 0x55e   : > { %v823_v5 = vpop.f32.mrf.mxu2 }
 0x55f   : > { %v1563_v5 = vld [vmem:[#allocation6 + $0x18] sm:$0xf0] }
 0x560   : > { %v1566_v6 = vor.u32 %v1715_v3, %v1563_v5 }
 0x562   : > { %1125 = vmatpush.bf16.msra.mxu3 %v1566_v6 }
 0x570   : > { %v877_v9 = vpop.f32.mrf.mxu0 }
 0x571   : > { %890 = vrot.lane.b32.xlu2 %v877_v9, %s1984_s15  ;;  %v1713_v9 = vld [vmem:[#allocation6 + $0x4] sm:$0xf] }
 0x572   : > { %v1558_v12 = vor.u32 %v1713_v9, %v1555_v11 }
 0x574   : > { %1126 = vmatpush.bf16.msra.mxu3 %v1558_v12 }
 0x578   : > { %v879_v10 = vpop.f32.mrf.mxu0 }
 0x579   : > { %v1554_v10 = vor.u32 %v1714_v8, %v1553_v7 }
 0x57b   : > { %1113 = vmatpush.bf16.msrb.mxu2 %v1554_v10 }
 0x5c2   : > { %v883_v14 = vpop.permute.xlu0 %882 }
 0x5c3   : > { %v893_v15 = vsel %vm651_vm4, %v2152_v24, %v883_v14  ;;  %v1744_v14 = vld [vmem:[#allocation7 + $0x78] sm:$0xff] }
 0x5c4   : > { %1277 = vmatpush.bf16.msra.mxu1 %v1744_v14 }
 0x5ca   : > { %v887_v17 = vpop.permute.xlu0 %886 }
 0x5cb   : > { %v895_v18 = vsel %vm894_vm7, %v893_v15, %v887_v17  ;;  %v891_v20 = vpop.permute.xlu2 %890 }
 0x5cc   : > { %v897_v21 = vsel %vm896_vm8, %v895_v18, %v891_v20  ;;  %v1735_v18 = vld [vmem:[#allocation7 + $0x30] sm:$0xff] }
 0x5cd   : > { %v898_v22 = vpack.c.bf16 %v897_v21, %v897_v21  ;;  %v1743_v20 = vld [vmem:[#allocation7 + $0x70] sm:$0xff]  ;;  %1265 = vmatpush.bf16.msrb.mxu0 %v1735_v18 }
 0x5ce   : > { %1278 = vmatpush.bf16.msra.mxu1 %v1743_v20 }
 0x5cf   : > { %971 = vmatmul.bf16.vlgmr.msrb.gmra.mxu1 %v898_v22  ;;  %v1734_v22 = vld [vmem:[#allocation7 + $0x28] sm:$0xff] }
 0x5d1   : > { %1266 = vmatpush.bf16.msrb.mxu0 %v1734_v22 }
 0x64c   : > { %v972_v23 = vpop.f32.mrf.mxu1 }
 0x64d   : > { %v2172_v25 = vadd.f32 %v972_v23, %v2107_v0  ;;  %v1742_v23 = vld [vmem:[#allocation7 + $0x68] sm:$0xff] }
 0x64e   : > { %1279 = vmatpush.bf16.msra.mxu1 %v1742_v23 }
 0x64f   : > { %979 = vadd.xlane.f32.xlu0 %v2172_v25 }
 0x652   : > { %1280 = vmatpush.bf16.msra.mxu1 %v1741_v27 }
 0x654   : > { %v974_v26 = vpop.f32.mrf.mxu1 }
 0x655   : > { %v1733_v26 = vld [vmem:[#allocation7 + $0x20] sm:$0xff] }
 0x656   : > { %1267 = vmatpush.bf16.msrb.mxu0 %v1733_v26 }
 0x65a   : > { %1268 = vmatpush.bf16.msrb.mxu0 %v1732_v30 }
 0x6c2   : > { %v980_v24 = vpop.xlane.xlu0 %979 }
 0x6c3   : > { %v981_v33 = vmul.f32 %v980_v24, %v2110_v16  ;;  %v1731_v24 = vld [vmem:[#allocation7 + $0x10] sm:$0xff] }
 0x6c4   : > { %1269 = vmatpush.bf16.msrb.mxu0 %v1731_v24 }
 0x6c5   : > { %v2177_v34 = vsub.f32 %v2172_v25, %v981_v33  ;;  %v1739_v33 = vld [vmem:[#allocation7 + $0x50] sm:$0xff] }
 0x6c7   : > { %v983_v0 = vmul.f32 %v2177_v34, %v2177_v34 }
 0x6c8   : > { %1270 = vmatpush.bf16.msrb.mxu0 %v1730_v43 }
 0x6c9   : > { %984 = vadd.xlane.f32.xlu1 %v983_v0 }
 0x6cc   : > { %1271 = vmatpush.bf16.msrb.mxu0 %v1729_v19 }
 0x73c   : > { %v985_v15 = vpop.xlane.xlu1 %984 }
 0x73d   : > { %v986_v17 = vmul.f32 %v985_v15, %v2110_v16  ;;  %v1740_v16 = vld [vmem:[#allocation7 + $0x58] sm:$0xff] }
 0x73e   : > { %1281 = vmatpush.bf16.msra.mxu1 %v1740_v16 }
 0x73f   : > { %v987_v21 = vadd.f32 1e-06, %v986_v17 }
 0x741   : > { %1830 = vrsqrt.f32 %v987_v21  ;;  %vm994_vm10 = vweird.f32 %v987_v21 }
 0x742   : > { %1282 = vmatpush.bf16.msra.mxu1 %v1739_v33 }
 0x746   : > { %1283 = vmatpush.bf16.msra.mxu1 %v1738_v44 }
 0x747   : > { %v1831_v28 = vpop.eup %1830 }
 0x748   : > { %v989_v29 = vmul.f32 %v1831_v28, %v987_v21  ;;  %vm995_vm9 = vweird.f32 %v1831_v28 }
 0x749   : > { %vm996_vm11 = vmor %vm994_vm10, %vm995_vm9 }
 0x74a   : > { %v990_v31 = vmul.f32 %v1831_v28, %v989_v29  ;;  %1284 = vmatpush.bf16.msra.mxu1 %v1737_v45 }
 0x74c   : > { %v991_v32 = vmul.f32 0.5, %v990_v31 }
 0x74e   : > { %v992_v0 = vsub.f32 1.5, %v991_v32 }
 0x750   : > { %v993_v35 = vmul.f32 %v1831_v28, %v992_v0 }
 0x752   : > { %v997_v37 = vsel %vm996_vm11, %v1831_v28, %v993_v35 }
 0x753   : > { %v998_v38 = vmul.f32 %v997_v37, %v2177_v34  ;;  %v1020_v34 = vld [vmem:[%s2210_s6] sm:$0x3] }
 0x754   : > { %v1022_v46 = vperm.slane %v1020_v34, 0  ;;  %v1023_v47 = vperm.slane %v1020_v34, 1 }
 0x755   : > { %v1000_v40 = vmul.f32 %v1807_v36, %v998_v38 }
 0x757   : > { %v1002_v41 = vadd.f32 %v1808_v39, %v1000_v40 }
 0x759   : > { %v1003_v42 = vpack.c.bf16 %v1002_v41, %v1002_v41 }
 0x75b   : > { %1114 = vmatmul.bf16.vlgmr.msrb.gmra.mxu2 %v1003_v42  ;;  %1127 = vmatmul.bf16.vlgmr.msra.gmra.mxu3 %v1003_v42 }
 0x7de   : > { %v1115_v48 = vpop.f32.mrf.mxu2  ;;  %v1128_v49 = vpop.f32.mrf.mxu3 }
 0x7df   : > { %v1116_v50 = vadd.f32 %v1115_v48, %v1022_v46  ;;  %v1129_v51 = vadd.f32 %v1128_v49, %v1023_v47 }
 0x7e1   : > { %v1132_v52 = vmax.f32 %v1116_v50, 0.0  ;;  %v1133_v53 = vmax.f32 %v1129_v51, 0.0 }
 0x7e3   : > { %v1134_v54 = vpack.c.bf16 %v1132_v52, %v1132_v52  ;;  %v1135_v55 = vpack.c.bf16 %v1133_v53, %v1133_v53 }
 0x7e5   : > { %1272 = vmatmul.bf16.vlgmr.msrb.gmra.mxu0 %v1134_v54  ;;  %1285 = vmatmul.bf16.vlgmr.msra.gmra.mxu1 %v1135_v55 }
 0x7e6   : > { %v1117_v56 = vpop.f32.mrf.mxu2  ;;  %v1130_v57 = vpop.f32.mrf.mxu3 }
 0x862   : > { %v1273_v58 = vpop.f32.mrf.mxu0  ;;  %v1286_v59 = vpop.f32.mrf.mxu1 }
 0x863   : > { %v1287_v60 = vadd.f32 %v1286_v59, %v1273_v58 }
 0x865   : > { %v1290_v62 = vadd.f32 %v1287_v60, %v2172_v25 }
 0x867   : > { %v1295_v63 = vadd.f32 %v1809_v61, %v1290_v62 }
 0x869   : > { %1296 = vst [vmem:[%s408_s28] sm:$0xff] %v1295_v63 }
 0x86a   : > { %v1275_v1 = vpop.f32.mrf.mxu0  ;;  %v1288_v2 = vpop.f32.mrf.mxu1 }
 0x86b PF: > { %s22_s30 = sadd.s32 1, %s1970_s30  }
 0x86c   : > { %p19_p7 = scmp.ge.s32.totalorder %s22_s30, 4  }
 0x86e   :  { %21 = sbr.rel (!%p19_p7) target bundleno = 3 (0x3), region = 106 }
 0x873   :  { %1316 = vsyncpa [#allocation3], 1 }
 0x874   :  { %1318 = vsyncpa [#allocation3 + $0x1], 1 }
 0x875   :  { %1319 = vsyncpa [#allocation5], 1 }
 0x876   :  { %1320 = vsyncpa [#allocation8], 1 }

// kernel: body.9
= control target key start
LH: loop header
LB: loop body
LE: loop exit
PB: predicated region body
PF: predicated region fallthrough
CT: control target
= control target key end

     0   :  { %s6303_s0 = inlined_call_operand.<no memory space> [shape: s32[1], index: 0, kind: input, shape index: {}]   ;;  %s6304_s1 = inlined_call_operand.vmem [shape: f32[2,1,128], index: 1, kind: input, shape index: {}]   ;;  %s6305_s2 = inlined_call_operand.vmem [shape: f32[2,1,8], index: 2, kind: input, shape index: {}]   ;;  %s6306_s3 = inlined_call_operand.vmem [shape: bf16[2,2,8,256], index: 3, kind: input, shape index: {}]   ;;  %s6307_s4 = inlined_call_operand.vmem [shape: bf16[2,2,20,256], index: 4, kind: input, shape index: {}, may-alias: {4,16}]   ;;  %s6308_s5 = inlined_call_operand.vmem [shape: f32[2,6,128], index: 5, kind: input, shape index: {}]   ;;  %s6309_s6 = inlined_call_operand.hbm [shape: bf16[2,128,384], index: 6, kind: input, shape index: {}]   ;;  %s6310_s7 = inlined_call_operand.vmem [shape: bf16[2,128,128], index: 7, kind: input, shape index: {}]   ;;  %s6311_s8 = inlined_call_operand.vmem [shape: bf16[2,128,128], index: 8, kind: input, shape index: {}]   ;;  %s6312_s9 = inlined_call_operand.vmem [shape: bf16[2,128,128], index: 9, kind: input, shape index: {}]   ;;  %s6313_s10 = inlined_call_operand.hbm [shape: bf16[2,128,256], index: 10, kind: input, shape index: {}]   ;;  %s6314_s11 = inlined_call_operand.vmem [shape: f32[2,1,256], index: 11, kind: input, shape index: {}]   ;;  %s6315_s12 = inlined_call_operand.hbm [shape: bf16[2,256,128], index: 12, kind: input, shape index: {}]   ;;  %s6316_s13 = inlined_call_operand.vmem [shape: f32[2,1,128], index: 13, kind: input, shape index: {}]   ;;  %s6317_s14 = inlined_call_operand.vmem [shape: f32[2,128], index: 14, kind: input, shape index: {}]   ;;  %s6318_s15 = inlined_call_operand.hbm [shape: bf16[128,512], index: 15, kind: input, shape index: {}]   ;;  %s6319_s16 = inlined_call_operand.vmem [shape: bf16[2,2,20,256], index: 16, kind: output, shape index: {0}, may-alias: {4,16}]   ;;  %s6320_s17 = inlined_call_operand.vmem [shape: s32[2,1,128], index: 17, kind: output, shape index: {1}]  }
   0x1   :  { %6328 = sst [smem:[#allocation19_spill]] %s6303_s0 }
   0x2   :  { %6329 = sst [smem:[#allocation20_spill]] %s6304_s1 }
   0x3   :  { %6330 = sst [smem:[#allocation21_spill]] %s6309_s6 }
   0x4   :  { %6331 = sst [smem:[#allocation22_spill]] %s6312_s9 }
   0x5   :  { %6332 = sst [smem:[#allocation23_spill]] %s6313_s10 }
   0x6   :  { %6333 = sst [smem:[#allocation24_spill]] %s6314_s11 }
   0x7   :  { %6334 = sst [smem:[#allocation25_spill]] %s6316_s13 }
   0x8   :  { %6335 = sst [smem:[#allocation26_spill]] %s6317_s14 }
   0x9   :  { %6336 = sst [smem:[#allocation27_spill]] %s6319_s16 }
   0xa   :  { %6337 = sst [smem:[#allocation28_spill]] %s6320_s17 }
   0xb   :  { %s6338_s26 = sld [smem:[#allocation19_spill]] }
  0x11   :  { %23 = sst [smem:[#allocation2]] %s6338_s26 }
  0x12   :  { %24 = vsyncpa [#allocation6], 0 }
  0x13   :  { %25 = vsyncpa [#allocation8], 0 }
  0x14   :  { %26 = vsyncpa [#allocation11], 0  ;;  %s5559_s27 = smov 0   ;;  %s5561_s28 = smov 0  }
  0x15   :  { %s5563_s29 = smov 0  }
  0x16 LB: > { %s5575_s0 = sadd.s32 4294967295, %s5447_s29   ;;  %s5578_s30 = sadd.s32 1, %s5447_s29   ;;  %s5447_s29 = sphi %s5563_s29, %s6356_s29   ;;  %s5443_s28 = sphi %s5561_s28, %s6359_s28   ;;  %s5439_s27 = sphi %s5559_s27, %s6358_s27  }
  0x17   : > { %6339 = sst [smem:[#allocation16_spill]] %s5578_s30  ;;  %s109_s18 = ssub.s32 %s5447_s29, %s5578_s30 }
  0x18   : > { %s112_s19 = sadd.s32 1, %s5443_s28  ;;  %p110_p0 = scmp.eq.s32.totalorder %s109_s18, 0 }
  0x19   : > { %p119_p1 = scmp.ne.s32.totalorder %s5443_s28, %s5439_s27  ;;  %p120_p2 = scmp.eq.s32.totalorder %s5447_s29, 0 }
  0x1a   : > { %p406_p3 = scmp.eq.s32.totalorder %s5575_s0, 1  ;;  %p4054_p6 = scmp.ge.s32.totalorder %s5447_s29, 1 }
  0x1b   : > { %s5588_s1 = scalar_select %p110_p0, %s5443_s28, %s112_s19  }
  0x1c   : > { %p5590_p4 = por %p120_p2, %p119_p1  ;;  %p5594_p5 = por %p406_p3, %p119_p1 }
  0x1d   : > { %6340 = sst [smem:[#allocation17_spill]] %s5588_s1  ;;  %p445_p7 = scmp.lt.s32.totalorder %s5447_s29, 3 }
  0x1e   : > { %s6342_s21 = scalar_select %p5594_p5, 1, 0 }
  0x1f   : > { %p5163_p8 = scmp.eq.s32.totalorder %s5575_s0, 0  ;;  %p5601_p9 = pnand %p4054_p6, %p445_p7 }
  0x20   : > { %6343 = sst [smem:[#allocation18_spill]] %s6342_s21  ;;  %s5449_s26 = smov [#allocation7]  }
  0x21   : > { %s6345_s10 = sld [smem:[#allocation23_spill]]  ;;  %p5150_p10 = pneg %p5601_p9 }
  0x22   : > { %s487_s18 = sshll.u32 %s5449_s26, 4  ;;  %s6347_s6 = sld [smem:[#allocation21_spill]]  ;;  %s488_s18 = int_to_ptr.vmem [resolvable:$true] %s487_s18 }
  0x23   : > { %p5612_p11 = pnand %p5163_p8, %p5150_p10  ;;  %s5450_s23 = smov 128  }
  0x24   : > { %s5451_s24 = smov 8   ;;  %s5453_s21 = smov 192  }
  0x25   : > { %s5454_s17 = smov 12   ;;  %s502_s30 = sshll.u32 %s6315_s12, 4  ;;  %s503_s30 = int_to_ptr.hbm [resolvable:$true] %s502_s30 }
  0x26   : > { %s5455_s1 = smov [#allocation9]   ;;  %s5460_s13 = smov 16  }
  0x27   : > { %s485_s25 = sshll.u32 %s6345_s10, 4  ;;  %s5452_s10 = smov [#allocation5]   ;;  %s486_s25 = int_to_ptr.hbm [resolvable:$true] %s485_s25 }
  0x28   : > { %s462_s16 = sshll.u32 %s6347_s6, 4  ;;  %s464_s26 = sshll.u32 %s5452_s10, 4  ;;  %s463_s16 = int_to_ptr.hbm [resolvable:$true] %s462_s16  ;;  %s465_s26 = int_to_ptr.vmem [resolvable:$true] %s464_s26 }
  0x29   : > { %5156 = dma.hbm_to_vmem [thread:$0]  (!%p5612_p11), %s486_s25, 4096, %s488_s18, [#allocation8], %s5450_s23, %s5450_s23, %s5451_s24  }
  0x2a   : > { %5153 = dma.hbm_to_vmem [thread:$0]  (!%p5612_p11), %s463_s16, 6144, %s465_s26, [#allocation6], %s5453_s21, %s5453_s21, %s5454_s17  }
  0x2b   : > { %s504_s6 = sshll.u32 %s5455_s1, 4  ;;  %s522_s25 = sshll.u32 %s6318_s15, 4  ;;  %s505_s6 = int_to_ptr.vmem [resolvable:$true] %s504_s6  ;;  %s523_s25 = int_to_ptr.hbm [resolvable:$true] %s522_s25 }
  0x2c   : > { %s5456_s18 = smov 64   ;;  %s5457_s10 = smov 4  }
  0x2d   : > { %5159 = dma.hbm_to_vmem [thread:$0]  (!%p5612_p11), %s503_s30, 4096, %s505_s6, [#allocation8], %s5456_s18, %s5456_s18, %s5457_s10  }
  0x2e   : > { %s5458_s23 = smov [#allocation10]   ;;  %s5459_s17 = smov 256  }
  0x2f   : > { %s524_s16 = sshll.u32 %s5458_s23, 4  ;;  %p4059_p12 = scmp.ge.s32.totalorder %s5447_s29, 2  ;;  %s525_s16 = int_to_ptr.vmem [resolvable:$true] %s524_s16 }
  0x30   : > { %5162 = dma.hbm_to_vmem [thread:$0]  (!%p5612_p11), %s523_s25, 4096, %s525_s16, [#allocation11], %s5459_s17, %s5459_s17, %s5460_s13  }
  0x31   : > { %534 = sbr.rel (%p4059_p12) target bundleno = 71 (0x47), region = 64 }
  0x36   : > { %549 = sbr.rel (!%p5590_p4) target bundleno = 60 (0x3c), region = 76  ;;  %s551_s9 = sand.u32 (%p5590_p4), 1, %s5443_s28  }
  0x37   : > { %s4937_s11 = sshll.u32 (%p5590_p4), %s5447_s29, 3  ;;  %s4060_s14 = sshll.u32 (%p5590_p4), %s551_s9, 4 }
  0x38   : > { %s556_s24 = scalar_lea.vmem (%p5590_p4), %s6306_s3, %s4937_s11  ;;  %s553_s26 = scalar_lea.vmem (%p5590_p4), [#allocation3], %s4060_s14 }
  0x39   : > { %v587_v0 = vld [vmem:[%s556_s24] sm:$0xff] (%p5590_p4)  ;;  %v589_v1 = vld [vmem:[%s556_s24 + $0x10] sm:$0xff] (%p5590_p4) }
  0x3a   : > { %588 = vst [vmem:[%s553_s26] sm:$0xff] (%p5590_p4), %v587_v0 }
  0x3b   : > { %590 = vst [vmem:[%s553_s26 + $0x8] sm:$0xff] %v589_v1 }
  0x3c PF: > { %596 = sbr.rel (!%p5590_p4) target bundleno = 71 (0x47), region = 114  ;;  %s598_s19 = sand.u32 (%p5590_p4), 1, %s5443_s28  }
  0x3d   : > { %s5131_s30 = smul.u32 (%p5590_p4), 24, %s5447_s29 }
  0x3e   : > { %s5130_s1 = smul.u32 (%p5590_p4), 48, %s598_s19 }
  0x3f   : > { %s603_s10 = scalar_lea.vmem (%p5590_p4), %s6307_s4, %s5131_s30 }
  0x40   : > { %v642_v2 = vld [vmem:[%s603_s10] sm:$0xff] (%p5590_p4)  ;;  %v644_v3 = vld [vmem:[%s603_s10 + $0x8] sm:$0xff] (%p5590_p4)  ;;  %v646_v4 = vld [vmem:[%s603_s10 + $0x10] sm:$0xff] (%p5590_p4)  ;;  %s600_s23 = scalar_lea.vmem (%p5590_p4), [#allocation4], %s5130_s1 }
  0x41   : > { %643 = vst [vmem:[%s600_s23] sm:$0xff] %v642_v2  ;;  %v648_v5 = vld [vmem:[%s603_s10 + $0x30] sm:$0xff]  ;;  %v650_v6 = vld [vmem:[%s603_s10 + $0x38] sm:$0xff]  ;;  %v652_v7 = vld [vmem:[%s603_s10 + $0x40] sm:$0xff] }
  0x42   : > { %645 = vst [vmem:[%s600_s23 + $0x8] sm:$0xff] %v644_v3 }
  0x43   : > { %647 = vst [vmem:[%s600_s23 + $0x10] sm:$0xff] %v646_v4 }
  0x44   : > { %649 = vst [vmem:[%s600_s23 + $0x18] sm:$0xff] %v648_v5 }
  0x45   : > { %651 = vst [vmem:[%s600_s23 + $0x20] sm:$0xff] %v650_v6 }
  0x46   : > { %653 = vst [vmem:[%s600_s23 + $0x28] sm:$0xff] %v652_v7 }
  0x47 PF: > { %662 = sbr.rel (%p5601_p9) target bundleno = 7481 (0x1d39), region = 152  ;;  %s665_s29 = sand.u32 (!%p5601_p9), 1, %s5439_s27  }
  0x48   : > { %s4065_s20 = sshll.u32 (!%p5601_p9), %s665_s29, 4  ;;  %s5651_s16 = smul.u32 (!%p5601_p9), 48, %s665_s29 }
  0x49   : > { %s5653_s17 = scalar_lea.vmem (!%p5601_p9), [#allocation3], %s4065_s20 }
  0x4a   : > { %s5656_s13 = scalar_lea.vmem (!%p5601_p9), [#allocation4], %s5651_s16 }
  0x4c   : > { %5426 = dma.done.wait (%p5163_p8), [#allocation6], 6144  }
  0x4d   : > { %5428 = vsyncadd (%p5163_p8), [#allocation6], 4294961152 }
  0x4e   : > { %5430 = dma.done.wait (%p5163_p8), [#allocation8], 8192  }
  0x4f   : > { %5432 = vsyncadd (%p5163_p8), [#allocation8], 4294959104 }
  0x50   : > { %5434 = dma.done.wait (%p5163_p8), [#allocation11], 4096  }
  0x51   : > { %5436 = vsyncadd (%p5163_p8), [#allocation11], 4294963200  ;;  %p755_p13 = scmp.lt.s32.totalorder %s5575_s0, 1  ;;  %s6348_s11 = sld [smem:[#allocation20_spill]]  ;;  %vm782_vm0 = vcmask 1040384   ;;  %v5461_v10 = vmov 128.0  }
  0x52   : > { %5212 = vrcp.f32 %v5461_v10  ;;  %v4156_v11 = vld [vmem:[#allocation5 + $0xa8] sm:$0xf]  ;;  %v4960_v12 = vld [vmem:[#allocation5 + $0xb0] sm:$0xf0]  ;;  %v4959_v13 = vld [vmem:[#allocation5 + $0xac] sm:$0xf] }
  0x53   : > { %s5672_s27 = scalar_select %p755_p13, %s5575_s0, 1  ;;  %v4157_v14 = vor.u32 %v4960_v12, %v4156_v11  ;;  %v4158_v15 = vld [vmem:[#allocation5 + $0xb4] sm:$0xf0]  ;;  %v4164_v16 = vld [vmem:[#allocation5 + $0xb0] sm:$0xf]  ;;  %vm1052_vm8 = vcmask 261120  }
  0x54   : > { %v4961_v17 = vld [vmem:[#allocation5 + $0xb8] sm:$0xf0]  ;;  %v4161_v18 = vor.u32 %v4959_v13, %v4158_v15  ;;  %v4144_v31 = vld [vmem:[#allocation5 + $0x90] sm:$0xf]  ;;  %v4956_v33 = vld [vmem:[#allocation5 + $0x94] sm:$0xf] }
  0x55   : > { %v4165_v19 = vor.u32 %v4961_v17, %v4164_v16  ;;  %975 = vmatpush.bf16.msra.mxu0 %v4157_v14  ;;  %v4957_v32 = vld [vmem:[#allocation5 + $0x98] sm:$0xf0]  ;;  %v4146_v35 = vld [vmem:[#allocation5 + $0x9c] sm:$0xf0]  ;;  %v4152_v36 = vld [vmem:[#allocation5 + $0x98] sm:$0xf]  ;;  %s5903_s21 = scalar_lea.vmem %s6305_s2, %s5672_s27 }
  0x56   : > { %988 = vmatpush.bf16.msra.mxu1 %v4161_v18  ;;  %v4145_v34 = vor.u32 %v4957_v32, %v4144_v31  ;;  %v4958_v37 = vld [vmem:[#allocation5 + $0xa0] sm:$0xf0]  ;;  %v4149_v38 = vor.u32 %v4956_v33, %v4146_v35  ;;  %v4132_v40 = vld [vmem:[#allocation5 + $0x78] sm:$0xf]  ;;  %v4953_v42 = vld [vmem:[#allocation5 + $0x7c] sm:$0xf] }
  0x57   : > { %s757_s14 = scalar_lea.vmem %s6348_s11, %s5672_s27  ;;  %1001 = vmatpush.bf16.msra.mxu2 %v4165_v19  ;;  %v4153_v39 = vor.u32 %v4958_v37, %v4152_v36  ;;  %v4954_v41 = vld [vmem:[#allocation5 + $0x80] sm:$0xf0]  ;;  %v4134_v44 = vld [vmem:[#allocation5 + $0x84] sm:$0xf0]  ;;  %v4140_v45 = vld [vmem:[#allocation5 + $0x80] sm:$0xf] }
  0x58   : > { %v5678_v8 = vld [vmem:[%s757_s14] sm:$0x1]  ;;  %v5213_v20 = vpop.eup %5212  ;;  %v4133_v43 = vor.u32 %v4954_v41, %v4132_v40  ;;  %v4955_v46 = vld [vmem:[#allocation5 + $0x88] sm:$0xf0]  ;;  %v4137_v47 = vor.u32 %v4953_v42, %v4134_v44  ;;  %v4950_v51 = vld [vmem:[#allocation5 + $0x64] sm:$0xf] }
  0x59   : > { %v783_v9 = vsel %vm782_vm0, %v5678_v8, 0.0  ;;  %v787_v21 = vmul.f32 128.0, %v5213_v20  ;;  %vm791_vm1 = vweird.f32 %v5213_v20  ;;  %976 = vmatpush.bf16.msra.mxu0 %v4145_v34  ;;  %v4141_v48 = vor.u32 %v4955_v46, %v4140_v45  ;;  %v4120_v49 = vld [vmem:[#allocation5 + $0x60] sm:$0xf]  ;;  %v4951_v50 = vld [vmem:[#allocation5 + $0x68] sm:$0xf0] }
  0x5a   : > { %784 = vadd.xlane.f32.xlu0 %v783_v9  ;;  %989 = vmatpush.bf16.msra.mxu1 %v4149_v38  ;;  %v4121_v52 = vor.u32 %v4951_v50, %v4120_v49  ;;  %v4122_v53 = vld [vmem:[#allocation5 + $0x6c] sm:$0xf0]  ;;  %v4128_v54 = vld [vmem:[#allocation5 + $0x68] sm:$0xf]  ;;  %v4952_v55 = vld [vmem:[#allocation5 + $0x70] sm:$0xf0]  ;;  %v767_v49 = vlaneseq }
  0x5b   : > { %v788_v22 = vsub.f32 1.0, %v787_v21  ;;  %1002 = vmatpush.bf16.msra.mxu2 %v4153_v39  ;;  %v4125_v56 = vor.u32 %v4950_v51, %v4122_v53  ;;  %v4129_v57 = vor.u32 %v4952_v55, %v4128_v54  ;;  %v4108_v58 = vld [vmem:[#allocation5 + $0x48] sm:$0xf]  ;;  %v4948_v59 = vld [vmem:[#allocation5 + $0x50] sm:$0xf0]  ;;  %s765_s19 = sld [smem:[#allocation2]] }
  0x5c   : > { %v4947_v60 = vld [vmem:[#allocation5 + $0x4c] sm:$0xf]  ;;  %v4109_v61 = vor.u32 %v4948_v59, %v4108_v58  ;;  %v4110_v62 = vld [vmem:[#allocation5 + $0x54] sm:$0xf0]  ;;  %v4116_v63 = vld [vmem:[#allocation5 + $0x50] sm:$0xf] }
  0x5d   : > { %v789_v23 = vmul.f32 %v5213_v20, %v788_v22  ;;  %977 = vmatpush.bf16.msra.mxu0 %v4133_v43  ;;  %v4949_v0 = vld [vmem:[#allocation5 + $0x58] sm:$0xf0]  ;;  %v4113_v1 = vor.u32 %v4947_v60, %v4110_v62  ;;  %v4096_v3 = vld [vmem:[#allocation5 + $0x30] sm:$0xf]  ;;  %v4944_v5 = vld [vmem:[#allocation5 + $0x34] sm:$0xf] }
  0x5e   : > { %990 = vmatpush.bf16.msra.mxu1 %v4137_v47  ;;  %v4117_v2 = vor.u32 %v4949_v0, %v4116_v63  ;;  %v4945_v4 = vld [vmem:[#allocation5 + $0x38] sm:$0xf0]  ;;  %v4098_v7 = vld [vmem:[#allocation5 + $0x3c] sm:$0xf0]  ;;  %v4104_v9 = vld [vmem:[#allocation5 + $0x38] sm:$0xf] }
  0x5f   : > { %v790_v24 = vadd.f32 %v5213_v20, %v789_v23  ;;  %1003 = vmatpush.bf16.msra.mxu2 %v4141_v48  ;;  %v4097_v6 = vor.u32 %v4945_v4, %v4096_v3  ;;  %v4946_v10 = vld [vmem:[#allocation5 + $0x40] sm:$0xf0]  ;;  %v4101_v11 = vor.u32 %v4944_v5, %v4098_v7  ;;  %v4084_v13 = vld [vmem:[#allocation5 + $0x18] sm:$0xf]  ;;  %v4941_v15 = vld [vmem:[#allocation5 + $0x1c] sm:$0xf] }
  0x60   : > { %v4105_v12 = vor.u32 %v4946_v10, %v4104_v9  ;;  %v4942_v14 = vld [vmem:[#allocation5 + $0x20] sm:$0xf0]  ;;  %v4086_v17 = vld [vmem:[#allocation5 + $0x24] sm:$0xf0]  ;;  %v4092_v18 = vld [vmem:[#allocation5 + $0x20] sm:$0xf] }
  0x61   : > { %v5682_v25 = vsel %vm791_vm1, %v5213_v20, %v790_v24  ;;  %978 = vmatpush.bf16.msra.mxu0 %v4121_v52  ;;  %v4085_v16 = vor.u32 %v4942_v14, %v4084_v13  ;;  %v4943_v19 = vld [vmem:[#allocation5 + $0x28] sm:$0xf0]  ;;  %v4089_v20 = vor.u32 %v4941_v15, %v4086_v17  ;;  %v4072_v22 = vld [vmem:[#allocation5] sm:$0xf]  ;;  %v4938_v24 = vld [vmem:[#allocation5 + $0x4] sm:$0xf]  ;;  %v5703_v53 = vstv %s765_s19 }
  0x62   : > { %991 = vmatpush.bf16.msra.mxu1 %v4125_v56  ;;  %v4093_v21 = vor.u32 %v4943_v19, %v4092_v18  ;;  %v4939_v23 = vld [vmem:[#allocation5 + $0x8] sm:$0xf0]  ;;  %v780_v43 = vld [vmem:[%s6308_s5] sm:$0x1]  ;;  %v781_v45 = vld [vmem:[%s6308_s5 + $0x1] sm:$0x1] }
  0x63   : > { %1004 = vmatpush.bf16.msra.mxu2 %v4129_v57  ;;  %v5700_v50 = vshrl.u32 %v767_v49, 7  ;;  %v1015_v55 = vld [vmem:[%s5656_s13 + $0x8] sm:$0xff]  ;;  %v1016_v56 = vld [vmem:[%s5656_s13 + $0x10] sm:$0x33]  ;;  %s5738_s30 = scalar_lea.vmem [#allocation12], %s5651_s16  ;;  %s5462_s1 = smov 96  }
  0x64   : > { %v1019_v59 = vunpack.c.l.bf16 %v1015_v55  ;;  %v1021_v60 = vunpack.c.l.bf16 %v1016_v56  ;;  %v1020_v63 = vunpack.c.h.bf16 %v1015_v55  ;;  %v1022_v0 = vunpack.c.h.bf16 %v1016_v56  ;;  %s5463_s25 = smov 64   ;;  %s5464_s18 = smov 32  }
  0x65   : > { %979 = vmatpush.bf16.msra.mxu0 %v4109_v61  ;;  %v5706_v54 = vadd.s32 8, %v5700_v50  ;;  %v5711_v57 = vadd.s32 16, %v5700_v50  ;;  %vm777_vm5 = vcmp.eq.s32.totalorder %v5700_v50, %v5703_v53  ;;  %vm1098_vm9 = vcmask 1041408   ;;  %s6349_s19 = sld [smem:[#allocation22_spill]]  ;;  %s5133_s9 = smul.u32 (%p5594_p5), 24, %s5575_s0 }
  0x66   : > { %992 = vmatpush.bf16.msra.mxu1 %v4113_v1  ;;  %vm1075_vm11 = vcmask 155648   ;;  %vm1094_vm12 = vcmask 162816   ;;  %vm1323_vm13 = vcmask 523264   ;;  %vm1325_vm14 = vcmask 785408   ;;  %s6350_s14 = sld [smem:[#allocation24_spill]] }
  0x67   : > { %1005 = vmatpush.bf16.msra.mxu2 %v4117_v2  ;;  %vm778_vm6 = vcmp.eq.s32.totalorder %v5706_v54, %v5703_v53  ;;  %vm779_vm7 = vcmp.eq.s32.totalorder %v5711_v57, %v5703_v53  ;;  %s6351_s26 = sld [smem:[#allocation25_spill]] }
  0x68   : > { %s6352_s23 = sld [smem:[#allocation26_spill]] }
  0x69   : > { %980 = vmatpush.bf16.msra.mxu0 %v4097_v6  ;;  %s6353_s22 = sld [smem:[#allocation28_spill]] }
  0x6a   : > { %993 = vmatpush.bf16.msra.mxu1 %v4101_v11  ;;  %s6355_s6 = sld [smem:[#allocation27_spill]] (%p5594_p5) }
  0x6b   : > { %1006 = vmatpush.bf16.msra.mxu2 %v4105_v12 }
  0x6d   : > { %981 = vmatpush.bf16.msra.mxu0 %v4085_v16 }
  0x6e   : > { %994 = vmatpush.bf16.msra.mxu1 %v4089_v20 }
  0x6f   : > { %1007 = vmatpush.bf16.msra.mxu2 %v4093_v21 }
  0xcd   : > { %v785_v26 = vpop.xlane.xlu0 %784 }
  0xce   : > { %v793_v27 = vmul.f32 %v5682_v25, %v785_v26  ;;  %v4073_v26 = vor.u32 %v4939_v23, %v4072_v22 }
  0xd0   : > { %v5686_v28 = vsub.f32 %v5678_v8, %v793_v27  ;;  %v4074_v27 = vld [vmem:[#allocation5 + $0xc] sm:$0xf0]  ;;  %982 = vmatpush.bf16.msra.mxu0 %v4073_v26 }
  0xd1   : > { %v4077_v31 = vor.u32 %v4938_v24, %v4074_v27 }
  0xd2   : > { %v795_v29 = vmul.f32 %v5686_v28, %v5686_v28 }
  0xd3   : > { %995 = vmatpush.bf16.msra.mxu1 %v4077_v31 }
  0xd4   : > { %v796_v30 = vsel %vm782_vm0, %v795_v29, 0.0  ;;  %v4080_v29 = vld [vmem:[#allocation5 + $0x8] sm:$0xf] }
  0xd5   : > { %797 = vadd.xlane.f32.xlu0 %v796_v30  ;;  %v4940_v30 = vld [vmem:[#allocation5 + $0x10] sm:$0xf0] }
  0xd6   : > { %v4081_v32 = vor.u32 %v4940_v30, %v4080_v29 }
  0xd8   : > { %1008 = vmatpush.bf16.msra.mxu2 %v4081_v32 }
 0x148   : > { %v798_v33 = vpop.xlane.xlu0 %797 }
 0x149   : > { %v799_v34 = vmul.f32 %v798_v33, %v5682_v25 }
 0x14b   : > { %v800_v35 = vadd.f32 1e-06, %v799_v34 }
 0x14d   : > { %5214 = vrsqrt.f32 %v800_v35  ;;  %vm807_vm3 = vweird.f32 %v800_v35 }
 0x153   : > { %v5215_v36 = vpop.eup %5214 }
 0x154   : > { %v802_v37 = vmul.f32 %v5215_v36, %v800_v35  ;;  %vm808_vm2 = vweird.f32 %v5215_v36 }
 0x155   : > { %vm809_vm4 = vmor %vm807_vm3, %vm808_vm2  ;;  %vm1532_vm3 = vcmask 57344  }
 0x156   : > { %v803_v38 = vmul.f32 %v5215_v36, %v802_v37 }
 0x158   : > { %v804_v39 = vmul.f32 0.5, %v803_v38 }
 0x15a   : > { %v805_v40 = vsub.f32 1.5, %v804_v39 }
 0x15c   : > { %v806_v41 = vmul.f32 %v5215_v36, %v805_v40 }
 0x15e   : > { %v810_v42 = vsel %vm809_vm4, %v5215_v36, %v806_v41  ;;  %vm1549_vm4 = vcmask 1043456  }
 0x15f   : > { %v811_v44 = vmul.f32 %v810_v42, %v5686_v28  ;;  %v1014_v28 = vld [vmem:[%s5656_s13] sm:$0xff] }
 0x160   : > { %v1017_v58 = vunpack.c.l.bf16 %v1014_v28  ;;  %v1018_v62 = vunpack.c.h.bf16 %v1014_v28 }
 0x161   : > { %v812_v46 = vmul.f32 %v811_v44, %v780_v43 }
 0x163   : > { %v813_v47 = vadd.f32 %v812_v46, %v781_v45  ;;  %v5773_v46 = vand.u32 127, %v767_v49 }
 0x165   : > { %v814_v48 = vpack.c.bf16 %v813_v47, %v813_v47  ;;  %vm770_vm10 = vcmp.gt.s32.totalorder %v5773_v46, %v5703_v53 }
 0x167   : > { %983 = vmatmul.bf16.vlgmr.msra.gmra.mxu0 %v814_v48  ;;  %996 = vmatmul.bf16.vlgmr.msra.gmra.mxu1 %v814_v48 }
 0x168   : > { %1009 = vmatmul.bf16.vlgmr.msra.gmra.mxu2 %v814_v48  ;;  %v5465_v48 = vmov 0.0  }
 0x1e4   : > { %v984_v51 = vpop.f32.mrf.mxu0  ;;  %v997_v52 = vpop.f32.mrf.mxu1 }
 0x1e5   : > { %v1029_v61 = vperm.slane %v997_v52, 0  ;;  %v1043_v24 = vpack.c.bf16 %v984_v51, %v984_v51  ;;  %v5778_v51 = vsel %vm770_vm10, -1e+09, %v5465_v48  ;;  %vm1545_vm10 = vcmask 64512  }
 0x1e7   : > { %v1031_v5 = vsel %vm777_vm5, %v1029_v61, %v1017_v58  ;;  %v1033_v6 = vsel %vm778_vm6, %v1029_v61, %v1019_v59  ;;  %v1035_v7 = vsel %vm779_vm7, %v1029_v61, %v1021_v60  ;;  %v1116_v31 = vunpack.c.l.b16 %v1043_v24 }
 0x1e9   : > { %v1117_v33 = vpack.c.b16 %v1116_v31, %v1116_v31 }
 0x1eb   : > { %v1010_v1 = vpop.f32.mrf.mxu2 }
 0x1ec   : > { %v1030_v2 = vperm.slane %v1010_v1, 0  ;;  %v986_v3 = vpop.f32.mrf.mxu0  ;;  %v999_v4 = vpop.f32.mrf.mxu1 }
 0x1ee   : > { %v1032_v9 = vsel %vm777_vm5, %v1030_v2, %v1018_v62  ;;  %v1034_v10 = vsel %vm778_vm6, %v1030_v2, %v1020_v63  ;;  %v1036_v11 = vsel %vm779_vm7, %v1030_v2, %v1022_v0 }
 0x1ef   : > { %v1037_v12 = vpack.c.bf16 %v1032_v9, %v1031_v5  ;;  %v1038_v13 = vpack.c.bf16 %v1034_v10, %v1033_v6  ;;  %v1039_v14 = vpack.c.bf16 %v1036_v11, %v1035_v7 }
 0x1f1   : > { %1040 = vst [vmem:[%s5738_s30] sm:$0xff] %v1037_v12  ;;  %v1049_v15 = vunpack.c.l.b16 %v1039_v14  ;;  %v1047_v16 = vunpack.c.l.b16 %v1037_v12  ;;  %v1048_v17 = vunpack.c.l.b16 %v1038_v13  ;;  %v1090_v22 = vunpack.c.h.b16 %v1039_v14 }
 0x1f2   : > { %1041 = vst [vmem:[%s5738_s30 + $0x8] sm:$0xff] %v1038_v13  ;;  %v1088_v27 = vunpack.c.h.b16 %v1037_v12  ;;  %v1089_v29 = vunpack.c.h.b16 %v1038_v13 }
 0x1f3   : > { %1042 = vst [vmem:[%s5738_s30 + $0x10] sm:$0x33] %v1039_v14  ;;  %v1012_v18 = vpop.f32.mrf.mxu2  ;;  %v1051_v19 = vpack.c.b16 %v1049_v15, %v1049_v15  ;;  %v5743_v20 = vpack.c.b16 %v1048_v17, %v1047_v16  ;;  %v5749_v23 = vpack.c.b16 %v1090_v22, %v1090_v22 }
 0x1f4   : > { %v5758_v32 = vpack.c.b16 %v1089_v29, %v1088_v27 }
 0x1f5   : > { %1122 = vrot.lane.b32.xlu2 %v1051_v19, %s5462_s1  ;;  %1120 = vrot.lane.b32.xlu0 %v5743_v20, %s5462_s1  ;;  %v1060_v21 = vsel %vm1052_vm8, %v1051_v19, 0  ;;  %v1057_v26 = vsel %vm1052_vm8, %v5743_v20, 0  ;;  %v1100_v30 = vsel %vm1098_vm9, %v5749_v23, 0 }
 0x1f6   : > { %1068 = vmatpush.bf16.xpose.msra.mxu3 %v1060_v21 }
 0x1fd   : > { %1186 = vrot.lane.b32.xlu2 %v1051_v19, %s5463_s25  ;;  %1248 = vrot.lane.b32.xlu0 %v5743_v20, %s5464_s18 }
 0x1fe   : > { %1069 = vmatpush.bf16.xpose.msra.mxu3 %v1057_v26 }
 0x205   : > { %1118 = vrot.lane.b32.xlu2 %v1117_v33, %s5462_s1  ;;  %4166 = vmatmul.msk.bf16.vlgmr.msra.gmra.mxu3 %vm1052_vm8, %v1043_v24 }
 0x206   : > { %1108 = vmatpush.bf16.msrb.mxu3 %v1100_v30 }
 0x20a   : > { %1109 = vmatpush.bf16.msrb.mxu3 %v5758_v32 }
 0x20d   : > { %1250 = vrot.lane.b32.xlu2 %v1051_v19, %s5464_s18 }
 0x215   : > { %1182 = vrot.lane.b32.xlu2 %v1117_v33, %s5463_s25 }
 0x21d   : > { %1246 = vrot.lane.b32.xlu2 %v1117_v33, %s5464_s18 }
 0x24f   : > { %v1123_v34 = vpop.permute.xlu2 %1122 }
 0x250   : > { %v1131_v35 = vsel %vm1052_vm8, %v1123_v34, 0 }
 0x251   : > { %1139 = vmatpush.bf16.xpose.msrb.mxu0 %v1131_v35 }
 0x257   : > { %v1187_v36 = vpop.permute.xlu2 %1186 }
 0x258   : > { %v1195_v37 = vsel %vm1052_vm8, %v1187_v36, 0 }
 0x259   : > { %1203 = vmatpush.bf16.xpose.msra.mxu3 %v1195_v37 }
 0x25f   : > { %v1119_v38 = vpop.permute.xlu2 %1118 }
 0x267   : > { %v1251_v39 = vpop.permute.xlu2 %1250  ;;  %v1121_v40 = vpop.permute.xlu0 %1120 }
 0x268   : > { %v1259_v41 = vsel %vm1052_vm8, %v1251_v39, 0  ;;  %v1128_v42 = vsel %vm1052_vm8, %v1121_v40, 0 }
 0x269   : > { %1140 = vmatpush.bf16.xpose.msrb.mxu0 %v1128_v42 }
 0x26f   : > { %v1249_v43 = vpop.permute.xlu0 %1248  ;;  %v1183_v45 = vpop.permute.xlu2 %1182 }
 0x270   : > { %v1256_v44 = vsel %vm1052_vm8, %v1249_v43, 0  ;;  %4168 = vmatmul.msk.bf16.vlgmr.msrb.gmra.mxu0 %vm1052_vm8, %v1119_v38 }
 0x271   : > { %1267 = vmatpush.bf16.xpose.msra.mxu0 %v1259_v41 }
 0x277   : > { %v1247_v47 = vpop.permute.xlu2 %1246 }
 0x279   : > { %1268 = vmatpush.bf16.xpose.msra.mxu0 %v1256_v44 }
 0x280   : > { %4172 = vmatmul.msk.bf16.vlgmr.msra.gmra.mxu0 %vm1052_vm8, %v1247_v47 }
 0x288   : > { %v1071_v52 = vpop.f32.mrf.mxu3 }
 0x289   : > { %v1072_v28 = vadd.f32 %v1071_v52, %v5778_v51 }
 0x28b   : > { %v1076_v55 = vsel %vm1075_vm11, %v1072_v28, -inf }
 0x28c   : > { %1077 = vmax.xlane.f32.xlu1 %v1076_v55 }
 0x290   : > { %v1073_v56 = vpop.f32.mrf.mxu3 }
 0x2ed   : > { %v1142_v58 = vpop.f32.mrf.mxu0 }
 0x2ee   : > { %v1143_v4 = vadd.f32 %v1142_v58, %v5778_v51 }
 0x2f0   : > { %v1146_v5 = vsel %vm1075_vm11, %v1143_v4, -inf }
 0x2f5   : > { %v1144_v49 = vpop.f32.mrf.mxu0 }
 0x2fd   : > { %v1270_v59 = vpop.f32.mrf.mxu0 }
 0x2fe   : > { %v1271_v60 = vadd.f32 %v1270_v59, %v5778_v51 }
 0x2ff   : > { %v1078_v61 = vpop.xlane.xlu1 %1077 }
 0x300   : > { %v1079_v62 = vsub.f32 %v1072_v28, %v1078_v61  ;;  %v1274_v63 = vsel %vm1075_vm11, %v1271_v60, -inf }
 0x301   : > { %1275 = vmax.xlane.f32.xlu2 %v1274_v63 }
 0x302   : > { %v1080_v0 = vmul.f32 1.442695, %v1079_v62 }
 0x304   : > { %5216 = vpow2.f32 %v1080_v0  ;;  %v4969_v0 = vld [vmem:[%s6310_s7 + $0x38] sm:$0xff] }
 0x305   : > { %v1272_v1 = vpop.f32.mrf.mxu0  ;;  %1392 = vmatpush.bf16.msrb.mxu2 %v4969_v0 }
 0x306   : > { %v4968_v1 = vld [vmem:[%s6310_s7 + $0x30] sm:$0xff] }
 0x309   : > { %1393 = vmatpush.bf16.msrb.mxu2 %v4968_v1 }
 0x30a   : > { %v5217_v2 = vpop.eup %5216 }
 0x30b   : > { %v1082_v3 = vsel %vm1075_vm11, %v5217_v2, 0.0 }
 0x30c   : > { %1083 = vadd.xlane.f32.xlu1 %v1082_v3  ;;  %v4966_v3 = vld [vmem:[%s6310_s7 + $0x20] sm:$0xff] }
 0x319   : > { %1158 = vrot.lane.b32.xlu2 %v5758_v32, %s5462_s1 }
 0x321   : > { %1222 = vrot.lane.b32.xlu2 %v5758_v32, %s5463_s25 }
 0x325   : > { %1184 = vrot.lane.b32.xlu1 %v5743_v20, %s5463_s25 }
 0x329   : > { %1288 = vrot.lane.b32.xlu2 %v5749_v23, %s5464_s18 }
 0x34f   : > { %1147 = vmax.xlane.f32.xlu1 %v1146_v5 }
 0x374   : > { %v1276_v26 = vpop.xlane.xlu2 %1275 }
 0x375   : > { %v1277_v29 = vsub.f32 %v1271_v60, %v1276_v26 }
 0x377   : > { %v1278_v31 = vmul.f32 1.442695, %v1277_v29 }
 0x37c   : > { %v1159_v30 = vpop.permute.xlu2 %1158 }
 0x37f   : > { %v1084_v6 = vpop.xlane.xlu1 %1083 }
 0x380   : > { %5218 = vrcp.f32 %v1084_v6 }
 0x384   : > { %v1223_v35 = vpop.permute.xlu2 %1222 }
 0x386   : > { %v5219_v7 = vpop.eup %5218 }
 0x387   : > { %v1086_v9 = vmul.f32 %v5219_v7, %v5217_v2  ;;  %v4967_v2 = vld [vmem:[%s6310_s7 + $0x28] sm:$0xff] }
 0x388   : > { %1394 = vmatpush.bf16.msrb.mxu2 %v4967_v2 }
 0x389   : > { %v1087_v10 = vpack.c.bf16 %v1086_v9, %v1086_v9  ;;  %v4965_v9 = vld [vmem:[%s6310_s7 + $0x18] sm:$0xff] }
 0x38b   : > { %4167 = vmatmul.msk.bf16.vlgmr.msrb.gmra.mxu3 %vm1094_vm12, %v1087_v10  ;;  %v4964_v10 = vld [vmem:[%s6310_s7 + $0x10] sm:$0xff] }
 0x38c   : > { %1395 = vmatpush.bf16.msrb.mxu2 %v4966_v3 }
 0x390   : > { %1396 = vmatpush.bf16.msrb.mxu2 %v4965_v9 }
 0x394   : > { %1397 = vmatpush.bf16.msrb.mxu2 %v4964_v10 }
 0x397   : > { %v1185_v11 = vpop.permute.xlu1 %1184 }
 0x398   : > { %v1192_v12 = vsel %vm1052_vm8, %v1185_v11, 0  ;;  %v4963_v11 = vld [vmem:[%s6310_s7 + $0x8] sm:$0xff] }
 0x399   : > { %1204 = vmatpush.bf16.xpose.msra.mxu3 %v1192_v12  ;;  %1398 = vmatpush.bf16.msrb.mxu2 %v4963_v11  ;;  %v4962_v12 = vld [vmem:[%s6310_s7] sm:$0xff] }
 0x39a   : > { %v772_v11 = vld [vmem:[%s5903_s21] sm:$0x1] }
 0x39d   : > { %1399 = vmatpush.bf16.msrb.mxu2 %v4962_v12 }
 0x3a0   : > { %4170 = vmatmul.msk.bf16.vlgmr.msra.gmra.mxu3 %vm1052_vm8, %v1183_v45  ;;  %v1289_v45 = vpop.permute.xlu2 %1288 }
 0x3a1   : > { %v1295_v48 = vsel %vm1098_vm9, %v1289_v45, 0 }
 0x3c2   : > { %v1148_v13 = vpop.xlane.xlu1 %1147 }
 0x3c3   : > { %v1149_v14 = vsub.f32 %v1143_v4, %v1148_v13 }
 0x3c5   : > { %v1150_v15 = vmul.f32 1.442695, %v1149_v14 }
 0x3c7   : > { %5220 = vpow2.f32 %v1150_v15 }
 0x3c8   : > { %5222 = vpow2.f32 %v1278_v31 }
 0x3cd   : > { %v5221_v16 = vpop.eup %5220 }
 0x3ce   : > { %v1152_v17 = vsel %vm1075_vm11, %v5221_v16, 0.0  ;;  %v5223_v36 = vpop.eup %5222 }
 0x3cf   : > { %1153 = vadd.xlane.f32.xlu1 %v1152_v17  ;;  %v1280_v37 = vsel %vm1075_vm11, %v5223_v36, 0.0 }
 0x3e8   : > { %1224 = vrot.lane.b32.xlu1 %v5749_v23, %s5463_s25 }
 0x40e   : > { %v5801_v18 = vpop.f32.mrf.mxu3 }
 0x416   : > { %v1113_v19 = vpop.f32.mrf.mxu3 }
 0x423   : > { %v1206_v20 = vpop.f32.mrf.mxu3 }
 0x424   : > { %v1207_v21 = vadd.f32 %v1206_v20, %v5778_v51 }
 0x426   : > { %v1210_v22 = vsel %vm1075_vm11, %v1207_v21, -inf }
 0x427   : > { %1211 = vmax.xlane.f32.xlu0 %v1210_v22 }
 0x42b   : > { %v1208_v24 = vpop.f32.mrf.mxu3 }
 0x43b   : > { %1160 = vrot.lane.b32.xlu0 %v5749_v23, %s5462_s1 }
 0x442   : > { %v1154_v27 = vpop.xlane.xlu1 %1153 }
 0x45a   : > { %v1225_v33 = vpop.permute.xlu1 %1224 }
 0x45b   : > { %v1231_v34 = vsel %vm1098_vm9, %v1225_v33, 0 }
 0x45c   : > { %1239 = vmatpush.bf16.msrb.mxu3 %v1231_v34  ;;  %v4975_v34 = vld [vmem:[%s6311_s8 + $0x28] sm:$0xff] }
 0x460   : > { %1240 = vmatpush.bf16.msrb.mxu3 %v1223_v35  ;;  %v4974_v35 = vld [vmem:[%s6311_s8 + $0x20] sm:$0xff] }
 0x465   : > { %1281 = vadd.xlane.f32.xlu0 %v1280_v37  ;;  %v4972_v37 = vld [vmem:[%s6311_s8 + $0x10] sm:$0xff] }
 0x49a   : > { %v1212_v38 = vpop.xlane.xlu0 %1211 }
 0x49b   : > { %v1213_v39 = vsub.f32 %v1207_v21, %v1212_v38  ;;  %v4971_v38 = vld [vmem:[%s6311_s8 + $0x8] sm:$0xff] }
 0x49d   : > { %v1214_v40 = vmul.f32 1.442695, %v1213_v39  ;;  %v4970_v39 = vld [vmem:[%s6311_s8] sm:$0xff] }
 0x49f   : > { %5224 = vpow2.f32 %v1214_v40  ;;  %v1510_v40 = vld [vmem:[%s5653_s17] sm:$0xf] }
 0x4a0   : > { %5226 = vrcp.f32 %v1154_v27 }
 0x4a5   : > { %v5225_v23 = vpop.eup %5224 }
 0x4a6   : > { %v1216_v41 = vsel %vm1075_vm11, %v5225_v23, 0.0  ;;  %v5227_v42 = vpop.eup %5226 }
 0x4a7   : > { %1217 = vadd.xlane.f32.xlu1 %v1216_v41  ;;  %v1156_v47 = vmul.f32 %v5227_v42, %v5221_v16  ;;  %v1572_v41 = vunpack.c.l.b16 %v1510_v40  ;;  %v1517_v42 = vsel %vm1052_vm8, %v1510_v40, 0  ;;  %v1511_v40 = vld [vmem:[%s5653_s17 + $0x4] sm:$0xf] }
 0x4a8   : > { %1526 = vmatpush.bf16.xpose.msrb.mxu0 %v1517_v42 }
 0x4a9   : > { %v1157_v52 = vpack.c.bf16 %v1156_v47, %v1156_v47 }
 0x4ad   : > { %v1161_v43 = vpop.permute.xlu0 %1160 }
 0x4ae   : > { %v1167_v44 = vsel %vm1098_vm9, %v1161_v43, 0 }
 0x4af   : > { %1175 = vmatpush.bf16.msrb.mxu1 %v1167_v44  ;;  %v1573_v44 = vpack.c.b16 %v1572_v41, %v1572_v41 }
 0x4b1   : > { %1574 = vrot.lane.b32.xlu0 %v1573_v44, %s5462_s1 }
 0x4b3   : > { %1176 = vmatpush.bf16.msrb.mxu1 %v1159_v30 }
 0x4b6   : > { %4169 = vmatmul.msk.bf16.vlgmr.msrb.gmra.mxu1 %vm1094_vm12, %v1157_v52 }
 0x4b7   : > { %1303 = vmatpush.bf16.msra.mxu1 %v1295_v48 }
 0x4b9   : > { %1633 = vrot.lane.b32.xlu0 %v1573_v44, %s5463_s25 }
 0x4c0   : > { %1286 = vrot.lane.b32.xlu1 %v5758_v32, %s5464_s18 }
 0x4d8   : > { %v1282_v58 = vpop.xlane.xlu0 %1281 }
 0x51a   : > { %v1218_v28 = vpop.xlane.xlu1 %1217 }
 0x51b   : > { %5228 = vrcp.f32 %v1218_v28 }
 0x51c   : > { %5230 = vrcp.f32 %v1282_v58 }
 0x521   : > { %v5229_v55 = vpop.eup %5228 }
 0x522   : > { %v1220_v56 = vmul.f32 %v5229_v55, %v5225_v23  ;;  %v5231_v59 = vpop.eup %5230 }
 0x523   : > { %v1284_v60 = vmul.f32 %v5231_v59, %v5223_v36  ;;  %v4973_v36 = vld [vmem:[%s6311_s8 + $0x18] sm:$0xff] }
 0x524   : > { %v1221_v49 = vpack.c.bf16 %v1220_v56, %v1220_v56 }
 0x525   : > { %v1285_v63 = vpack.c.bf16 %v1284_v60, %v1284_v60  ;;  %v1407_v60 = vld [vmem:[%s6308_s5 + $0x3] sm:$0x1] }
 0x526   : > { %4171 = vmatmul.msk.bf16.vlgmr.msrb.gmra.mxu3 %vm1094_vm12, %v1221_v49  ;;  %v1406_v49 = vld [vmem:[%s6308_s5 + $0x2] sm:$0x1] }
 0x532   : > { %v1287_v61 = vpop.permute.xlu1 %1286 }
 0x533   : > { %v1178_v62 = vpop.f32.mrf.mxu1  ;;  %1304 = vmatpush.bf16.msra.mxu1 %v1287_v61 }
 0x534   : > { %1311 = vrot.lane.b32.xlu2 %v1178_v62, %s5464_s18 }
 0x536   : > { %4173 = vmatmul.msk.bf16.vlgmr.msra.gmra.mxu1 %vm1094_vm12, %v1285_v63 }
 0x53b   : > { %v1180_v32 = vpop.f32.mrf.mxu1 }
 0x58e   : > { %v1312_v13 = vpop.permute.xlu2 %1311 }
 0x58f   : > { %v1322_v14 = vsel %vm1052_vm8, %v5801_v18, %v1312_v13  ;;  %v4977_v18 = vld [vmem:[%s6311_s8 + $0x38] sm:$0xff] }
 0x590   : > { %1497 = vmatpush.bf16.msra.mxu3 %v4977_v18 }
 0x5a9   : > { %v1242_v4 = vpop.f32.mrf.mxu3 }
 0x5aa   : > { %1315 = vrot.lane.b32.xlu1 %v1242_v4, %s5463_s25  ;;  %v1575_v4 = vpop.permute.xlu0 %1574 }
 0x5b1   : > { %v1244_v5 = vpop.f32.mrf.mxu3 }
 0x5b2   : > { %v1580_v5 = vsel %vm1052_vm8, %v1575_v4, 0 }
 0x5b3   : > { %v1306_v6 = vpop.f32.mrf.mxu1  ;;  %1589 = vmatpush.bf16.xpose.msra.mxu0 %v1580_v5 }
 0x5b4   : > { %1319 = vrot.lane.b32.xlu2 %v1306_v6, %s5462_s1  ;;  %v1634_v6 = vpop.permute.xlu0 %1633 }
 0x5bb   : > { %v1308_v7 = vpop.f32.mrf.mxu1 }
 0x5bc   : > { %v1639_v7 = vsel %vm1052_vm8, %v1634_v6, 0 }
 0x5bd   : > { %1648 = vmatpush.bf16.xpose.msra.mxu2 %v1639_v7 }
 0x60e   : > { %v1320_v16 = vpop.permute.xlu2 %1319 }
 0x61c   : > { %v1316_v15 = vpop.permute.xlu1 %1315 }
 0x61d   : > { %v1324_v17 = vsel %vm1323_vm13, %v1322_v14, %v1316_v15 }
 0x61e   : > { %v1326_v19 = vsel %vm1325_vm14, %v1324_v17, %v1320_v16 }
 0x61f   : > { %v1327_v20 = vpack.c.bf16 %v1326_v19, %v1326_v19 }
 0x621   : > { %1400 = vmatmul.bf16.vlgmr.msrb.gmra.mxu2 %v1327_v20 }
 0x6a4   : > { %v1401_v21 = vpop.f32.mrf.mxu2 }
 0x6a5   : > { %v5849_v22 = vadd.f32 %v1401_v21, %v5678_v8  ;;  %v4976_v8 = vld [vmem:[%s6311_s8 + $0x30] sm:$0xff] }
 0x6a6   : > { %1498 = vmatpush.bf16.msra.mxu3 %v4976_v8 }
 0x6a7   : > { %v1408_v24 = vsel %vm782_vm0, %v5849_v22, 0.0 }
 0x6a8   : > { %1409 = vadd.xlane.f32.xlu1 %v1408_v24 }
 0x6aa   : > { %1499 = vmatpush.bf16.msra.mxu3 %v4975_v34 }
 0x6ac   : > { %v1403_v26 = vpop.f32.mrf.mxu2 }
 0x6ae   : > { %1500 = vmatpush.bf16.msra.mxu3 %v4974_v35 }
 0x6b2   : > { %1501 = vmatpush.bf16.msra.mxu3 %v4973_v36 }
 0x6b6   : > { %1502 = vmatpush.bf16.msra.mxu3 %v4972_v37 }
 0x6ba   : > { %1503 = vmatpush.bf16.msra.mxu3 %v4971_v38 }
 0x6be   : > { %1504 = vmatpush.bf16.msra.mxu3 %v4970_v39 }
 0x71b   : > { %v1410_v27 = vpop.xlane.xlu1 %1409 }
 0x71c   : > { %v1411_v29 = vmul.f32 %v1410_v27, %v5682_v25 }
 0x71e   : > { %v1412_v30 = vsub.f32 %v5849_v22, %v1411_v29 }
 0x720   : > { %v1413_v31 = vmul.f32 %v1412_v30, %v1412_v30 }
 0x722   : > { %v1414_v33 = vsel %vm782_vm0, %v1413_v31, 0.0 }
 0x723   : > { %1415 = vadd.xlane.f32.xlu2 %v1414_v33 }
 0x796   : > { %v1416_v23 = vpop.xlane.xlu2 %1415 }
 0x797   : > { %v1417_v43 = vmul.f32 %v1416_v23, %v5682_v25  ;;  %v1608_v23 = vunpack.c.l.b16 %v1511_v40 }
 0x799   : > { %v1418_v45 = vadd.f32 1e-06, %v1417_v43  ;;  %v1609_v41 = vpack.c.b16 %v1608_v23, %v1608_v23 }
 0x79b   : > { %5232 = vrsqrt.f32 %v1418_v45  ;;  %vm1425_vm1 = vweird.f32 %v1418_v45 }
 0x7a1   : > { %v5233_v47 = vpop.eup %5232 }
 0x7a2   : > { %v1420_v48 = vmul.f32 %v5233_v47, %v1418_v45  ;;  %vm1426_vm15 = vweird.f32 %v5233_v47 }
 0x7a3   : > { %vm1427_vm2 = vmor %vm1425_vm1, %vm1426_vm15 }
 0x7a4   : > { %v1421_v52 = vmul.f32 %v5233_v47, %v1420_v48 }
 0x7a6   : > { %v1422_v28 = vmul.f32 0.5, %v1421_v52 }
 0x7a8   : > { %v1423_v55 = vsub.f32 1.5, %v1422_v28 }
 0x7aa   : > { %v1424_v56 = vmul.f32 %v5233_v47, %v1423_v55 }
 0x7ac   : > { %v1428_v58 = vsel %vm1427_vm2, %v5233_v47, %v1424_v56 }
 0x7ad   : > { %v1429_v59 = vmul.f32 %v1428_v58, %v1412_v30 }
 0x7af   : > { %v1430_v61 = vmul.f32 %v1429_v59, %v1406_v49 }
 0x7b1   : > { %v1431_v62 = vadd.f32 %v1430_v61, %v1407_v60 }
 0x7b3   : > { %v1432_v63 = vpack.c.bf16 %v1431_v62, %v1431_v62 }
 0x7b5   : > { %1505 = vmatmul.bf16.vlgmr.msra.gmra.mxu3 %v1432_v63 }
 0x838   : > { %v1506_v32 = vpop.f32.mrf.mxu3 }
 0x839   : > { %v1512_v0 = vpack.c.bf16 %v1506_v32, %v1506_v32 }
 0x83b   : > { %v1567_v1 = vunpack.c.l.b16 %v1512_v0  ;;  %4238 = vmatmul.msk.bf16.vlgmr.msrb.gmra.mxu0 %vm1052_vm8, %v1512_v0 }
 0x83d   : > { %v1568_v2 = vpack.c.b16 %v1567_v1, %v1567_v1 }
 0x83f   : > { %1687 = vrot.lane.b32.xlu2 %v1568_v2, %s5464_s18  ;;  %1631 = vrot.lane.b32.xlu1 %v1568_v2, %s5463_s25 }
 0x840   : > { %1569 = vrot.lane.b32.xlu0 %v1568_v2, %s5462_s1  ;;  %v1508_v3 = vpop.f32.mrf.mxu3 }
 0x848   : > { %1689 = vrot.lane.b32.xlu0 %v1573_v44, %s5464_s18  ;;  %v1551_v44 = vsel %vm1549_vm4, %v1511_v40, 0  ;;  %v4978_v40 = vld [vmem:[%s6349_s19] sm:$0xff] }
 0x849   : > { %1560 = vmatpush.bf16.msrb.mxu1 %v1551_v44 }
 0x899   : > { %v1688_v19 = vpop.permute.xlu2 %1687 }
 0x8b1   : > { %v1632_v9 = vpop.permute.xlu1 %1631 }
 0x8b2   : > { %v1570_v10 = vpop.permute.xlu0 %1569  ;;  %4242 = vmatmul.msk.bf16.vlgmr.msra.gmra.mxu2 %vm1052_vm8, %v1632_v9 }
 0x8b3   : > { %4240 = vmatmul.msk.bf16.vlgmr.msra.gmra.mxu0 %vm1052_vm8, %v1570_v10 }
 0x8b8   : > { %v1528_v12 = vpop.f32.mrf.mxu0 }
 0x8b9   : > { %v1529_v13 = vadd.f32 %v1528_v12, %v772_v11 }
 0x8ba   : > { %v1690_v14 = vpop.permute.xlu0 %1689 }
 0x8bb   : > { %v1695_v15 = vsel %vm1052_vm8, %v1690_v14, 0  ;;  %v1533_v16 = vsel %vm1532_vm3, %v1529_v13, -inf }
 0x8bc   : > { %1704 = vmatpush.bf16.xpose.msrb.mxu0 %v1695_v15  ;;  %1534 = vmax.xlane.f32.xlu0 %v1533_v16 }
 0x8c0   : > { %v1530_v17 = vpop.f32.mrf.mxu0 }
 0x8c3   : > { %4244 = vmatmul.msk.bf16.vlgmr.msrb.gmra.mxu0 %vm1052_vm8, %v1688_v19 }
 0x92f   : > { %v1535_v27 = vpop.xlane.xlu0 %1534 }
 0x930   : > { %v1591_v20 = vpop.f32.mrf.mxu0  ;;  %v1536_v31 = vsub.f32 %v1529_v13, %v1535_v27 }
 0x931   : > { %v1592_v21 = vadd.f32 %v1591_v20, %v772_v11 }
 0x932   : > { %v1537_v8 = vmul.f32 1.442695, %v1536_v31 }
 0x933   : > { %v1595_v24 = vsel %vm1532_vm3, %v1592_v21, -inf }
 0x934   : > { %1596 = vmax.xlane.f32.xlu1 %v1595_v24  ;;  %5234 = vpow2.f32 %v1537_v8  ;;  %v4982_v8 = vld [vmem:[%s6349_s19 + $0x20] sm:$0xff] }
 0x935   : > { %v1650_v26 = vpop.f32.mrf.mxu2 }
 0x936   : > { %v1651_v18 = vadd.f32 %v1650_v26, %v772_v11 }
 0x938   : > { %v1593_v29 = vpop.f32.mrf.mxu0  ;;  %v1654_v30 = vsel %vm1532_vm3, %v1651_v18, -inf }
 0x939   : > { %1655 = vmax.xlane.f32.xlu2 %v1654_v30  ;;  %v4985_v29 = vld [vmem:[%s6349_s19 + $0x38] sm:$0xff]  ;;  %v4984_v30 = vld [vmem:[%s6349_s19 + $0x30] sm:$0xff] }
 0x93a   : > { %v5235_v37 = vpop.eup %5234  ;;  %1823 = vmatpush.bf16.msrb.mxu2 %v4985_v29 }
 0x93b   : > { %v1539_v39 = vsel %vm1532_vm3, %v5235_v37, 0.0 }
 0x93d   : > { %v1652_v33 = vpop.f32.mrf.mxu2 }
 0x93e   : > { %1824 = vmatpush.bf16.msrb.mxu2 %v4984_v30  ;;  %v4983_v33 = vld [vmem:[%s6349_s19 + $0x28] sm:$0xff]  ;;  %v4296_v30 = vld [vmem:[#allocation7 + $0x20] sm:$0xf] }
 0x940   : > { %v1706_v34 = vpop.f32.mrf.mxu0 }
 0x941   : > { %v1707_v35 = vadd.f32 %v1706_v34, %v772_v11 }
 0x942   : > { %1825 = vmatpush.bf16.msrb.mxu2 %v4983_v33  ;;  %v4990_v33 = vld [vmem:[#allocation7 + $0x24] sm:$0xf] }
 0x943   : > { %v1710_v36 = vsel %vm1532_vm3, %v1707_v35, -inf }
 0x944   : > { %1711 = vmax.xlane.f32.xlu0 %v1710_v36 }
 0x946   : > { %1826 = vmatpush.bf16.msrb.mxu2 %v4982_v8 }
 0x948   : > { %v1708_v38 = vpop.f32.mrf.mxu0 }
 0x949   : > { %v4980_v38 = vld [vmem:[%s6349_s19 + $0x10] sm:$0xff] }
 0x94c   : > { %1540 = vadd.xlane.f32.xlu0 %v1539_v39  ;;  %v4979_v39 = vld [vmem:[%s6349_s19 + $0x8] sm:$0xff] }
 0x960   : > { %1610 = vrot.lane.b32.xlu0 %v1609_v41, %s5462_s1 }
 0x9a7   : > { %v1597_v42 = vpop.xlane.xlu1 %1596 }
 0x9a8   : > { %v1598_v43 = vsub.f32 %v1592_v21, %v1597_v42 }
 0x9aa   : > { %v1599_v45 = vmul.f32 1.442695, %v1598_v43 }
 0x9ac   : > { %5236 = vpow2.f32 %v1599_v45  ;;  %v1656_v47 = vpop.xlane.xlu2 %1655 }
 0x9ad   : > { %v1657_v48 = vsub.f32 %v1651_v18, %v1656_v47 }
 0x9af   : > { %v1658_v52 = vmul.f32 1.442695, %v1657_v48 }
 0x9b1   : > { %5238 = vpow2.f32 %v1658_v52 }
 0x9b2   : > { %v5237_v28 = vpop.eup %5236 }
 0x9b3   : > { %v1601_v55 = vsel %vm1532_vm3, %v5237_v28, 0.0 }
 0x9b4   : > { %1602 = vadd.xlane.f32.xlu1 %v1601_v55 }
 0x9b7   : > { %v5239_v56 = vpop.eup %5238  ;;  %v1712_v58 = vpop.xlane.xlu0 %1711 }
 0x9b8   : > { %v1713_v49 = vsub.f32 %v1707_v35, %v1712_v58  ;;  %v1660_v59 = vsel %vm1532_vm3, %v5239_v56, 0.0  ;;  %v5001_v58 = vld [vmem:[#allocation7 + $0x74] sm:$0xf0] }
 0x9b9   : > { %1661 = vadd.xlane.f32.xlu2 %v1660_v59 }
 0x9ba   : > { %v1714_v60 = vmul.f32 1.442695, %v1713_v49  ;;  %v5000_v49 = vld [vmem:[#allocation7 + $0x74] sm:$0xf] }
 0x9bc   : > { %5240 = vpow2.f32 %v1714_v60  ;;  %v4338_v60 = vld [vmem:[#allocation7 + $0x78] sm:$0xf0] }
 0x9bf   : > { %v1541_v61 = vpop.xlane.xlu0 %1540 }
 0x9c0   : > { %5242 = vrcp.f32 %v1541_v61  ;;  %v4341_v61 = vor.u32 %v5000_v49, %v4338_v60  ;;  %v5008_v49 = vld [vmem:[#allocation9 + $0x30] sm:$0xff]  ;;  %v5015_v60 = vld [vmem:[#allocation9 + $0x68] sm:$0xff] }
 0x9c2   : > { %v5241_v62 = vpop.eup %5240  ;;  %1979 = vmatpush.bf16.msra.mxu0 %v4341_v61  ;;  %v5007_v61 = vld [vmem:[#allocation9 + $0x28] sm:$0xff] }
 0x9c3   : > { %v1716_v63 = vsel %vm1532_vm3, %v5241_v62, 0.0 }
 0x9c4   : > { %1717 = vadd.xlane.f32.xlu1 %v1716_v63 }
 0x9c6   : > { %v5243_v32 = vpop.eup %5242 }
 0x9c7   : > { %v1543_v0 = vmul.f32 %v5243_v32, %v5235_v37  ;;  %v4981_v37 = vld [vmem:[%s6349_s19 + $0x18] sm:$0xff] }
 0x9c8   : > { %1827 = vmatpush.bf16.msrb.mxu2 %v4981_v37  ;;  %v4989_v37 = vld [vmem:[#allocation7 + $0x14] sm:$0xf0] }
 0x9c9   : > { %v1544_v1 = vpack.c.bf16 %v1543_v0, %v1543_v0 }
 0x9cb   : > { %4239 = vmatmul.msk.bf16.vlgmr.msrb.gmra.mxu1 %vm1545_vm10, %v1544_v1  ;;  %v4328_v1 = vld [vmem:[#allocation7 + $0x60] sm:$0xf] }
 0x9cc   : > { %1828 = vmatpush.bf16.msrb.mxu2 %v4980_v38  ;;  %v4988_v38 = vld [vmem:[#allocation7 + $0x14] sm:$0xf] }
 0x9d0   : > { %1829 = vmatpush.bf16.msrb.mxu2 %v4979_v39 }
 0x9d1   : > { %1666 = vrot.lane.b32.xlu2 %v1609_v41, %s5463_s25 }
 0x9d2   : > { %v1611_v2 = vpop.permute.xlu0 %1610 }
 0x9d3   : > { %v1616_v3 = vsel %vm1549_vm4, %v1611_v2, 0  ;;  %v4999_v2 = vld [vmem:[#allocation7 + $0x64] sm:$0xf0] }
 0x9d4   : > { %1625 = vmatpush.bf16.msra.mxu1 %v1616_v3  ;;  %1830 = vmatpush.bf16.msrb.mxu2 %v4978_v40  ;;  %v4998_v3 = vld [vmem:[#allocation7 + $0x64] sm:$0xf]  ;;  %v4290_v40 = vld [vmem:[#allocation7 + $0x18] sm:$0xf0] }
 0x9dd   : > { %1722 = vrot.lane.b32.xlu1 %v1609_v41, %s5464_s18 }
 0xa27   : > { %v1603_v4 = vpop.xlane.xlu1 %1602 }
 0xa28   : > { %5244 = vrcp.f32 %v1603_v4  ;;  %v4329_v4 = vor.u32 %v4999_v2, %v4328_v1  ;;  %v5013_v1 = vld [vmem:[#allocation9 + $0x58] sm:$0xff] }
 0xa29   : > { %v5005_v2 = vld [vmem:[#allocation9 + $0x18] sm:$0xff] }
 0xa2c   : > { %v1662_v5 = vpop.xlane.xlu2 %1661 }
 0xa2d   : > { %5246 = vrcp.f32 %v1662_v5  ;;  %v4330_v5 = vld [vmem:[#allocation7 + $0x68] sm:$0xf0] }
 0xa2e   : > { %v5245_v6 = vpop.eup %5244 }
 0xa2f   : > { %v1605_v7 = vmul.f32 %v5245_v6, %v5237_v28  ;;  %v4333_v6 = vor.u32 %v4998_v3, %v4330_v5  ;;  %v5012_v5 = vld [vmem:[#allocation9 + $0x50] sm:$0xff] }
 0xa31   : > { %v1606_v9 = vpack.c.bf16 %v1605_v7, %v1605_v7  ;;  %1980 = vmatpush.bf16.msra.mxu0 %v4333_v6  ;;  %v4320_v7 = vld [vmem:[#allocation7 + $0x50] sm:$0xf] }
 0xa33   : > { %v5247_v10 = vpop.eup %5246  ;;  %4241 = vmatmul.msk.bf16.vlgmr.msra.gmra.mxu1 %vm1545_vm10, %v1606_v9  ;;  %v4997_v9 = vld [vmem:[#allocation7 + $0x54] sm:$0xf0] }
 0xa34   : > { %v1664_v11 = vmul.f32 %v5247_v10, %v5239_v56  ;;  %v1667_v12 = vpop.permute.xlu2 %1666  ;;  %v4336_v56 = vld [vmem:[#allocation7 + $0x70] sm:$0xf]  ;;  %v4996_v10 = vld [vmem:[#allocation7 + $0x54] sm:$0xf] }
 0xa35   : > { %v1672_v13 = vsel %vm1549_vm4, %v1667_v12, 0  ;;  %v4337_v59 = vor.u32 %v5001_v58, %v4336_v56  ;;  %v4322_v12 = vld [vmem:[#allocation7 + $0x58] sm:$0xf0]  ;;  %v5016_v58 = vld [vmem:[#allocation9 + $0x70] sm:$0xff] }
 0xa36   : > { %v1665_v14 = vpack.c.bf16 %v1664_v11, %v1664_v11  ;;  %1681 = vmatpush.bf16.msrb.mxu3 %v1672_v13  ;;  %v4321_v11 = vor.u32 %v4997_v9, %v4320_v7  ;;  %v4325_v13 = vor.u32 %v4996_v10, %v4322_v12  ;;  %v1837_v10 = vld [vmem:[%s6308_s5 + $0x4] sm:$0x1]  ;;  %v1838_v12 = vld [vmem:[%s6308_s5 + $0x5] sm:$0x1] }
 0xa37   : > { %v1718_v15 = vpop.xlane.xlu1 %1717 }
 0xa38   : > { %5248 = vrcp.f32 %v1718_v15  ;;  %1981 = vmatpush.bf16.msra.mxu0 %v4325_v13  ;;  %v4995_v15 = vld [vmem:[#allocation7 + $0x44] sm:$0xf0] }
 0xa39   : > { %4243 = vmatmul.msk.bf16.vlgmr.msrb.gmra.mxu3 %vm1545_vm10, %v1665_v14  ;;  %v4312_v14 = vld [vmem:[#allocation7 + $0x40] sm:$0xf] }
 0xa3a   : > { %1966 = vmatpush.bf16.msra.mxu3 %v4337_v59 }
 0xa3e   : > { %v5249_v17 = vpop.eup %5248  ;;  %1967 = vmatpush.bf16.msra.mxu3 %v4329_v4 }
 0xa3f   : > { %v1720_v19 = vmul.f32 %v5249_v17, %v5241_v62  ;;  %v4313_v17 = vor.u32 %v4995_v15, %v4312_v14 }
 0xa41   : > { %v1721_v26 = vpack.c.bf16 %v1720_v19, %v1720_v19  ;;  %v4314_v19 = vld [vmem:[#allocation7 + $0x48] sm:$0xf0] }
 0xa42   : > { %1968 = vmatpush.bf16.msra.mxu3 %v4321_v11 }
 0xa46   : > { %1969 = vmatpush.bf16.msra.mxu3 %v4313_v17  ;;  %v5004_v17 = vld [vmem:[#allocation9 + $0x10] sm:$0xff] }
 0xa48   : > { %v1562_v16 = vpop.f32.mrf.mxu1 }
 0xa4f   : > { %v1723_v20 = vpop.permute.xlu1 %1722 }
 0xa50   : > { %v1728_v21 = vsel %vm1549_vm4, %v1723_v20, 0  ;;  %v1564_v24 = vpop.f32.mrf.mxu1 }
 0xa51   : > { %1737 = vmatpush.bf16.msrb.mxu1 %v1728_v21  ;;  %v4304_v21 = vld [vmem:[#allocation7 + $0x30] sm:$0xf]  ;;  %v4993_v24 = vld [vmem:[#allocation7 + $0x34] sm:$0xf0] }
 0xa54   : > { %4245 = vmatmul.msk.bf16.vlgmr.msrb.gmra.mxu1 %vm1545_vm10, %v1721_v26  ;;  %v4992_v26 = vld [vmem:[#allocation7 + $0x34] sm:$0xf] }
 0xab0   : > { %v1627_v18 = vpop.f32.mrf.mxu1 }
 0xab1   : > { %1744 = vrot.lane.b32.xlu0 %v1627_v18, %s5464_s18  ;;  %v4305_v18 = vor.u32 %v4993_v24, %v4304_v21  ;;  %v5002_v21 = vld [vmem:[#allocation9] sm:$0xff] }
 0xab3   : > { %1970 = vmatpush.bf16.msra.mxu3 %v4305_v18 }
 0xab8   : > { %v1629_v27 = vpop.f32.mrf.mxu1 }
 0xab9   : > { %v4306_v27 = vld [vmem:[#allocation7 + $0x38] sm:$0xf0] }
 0xaba   : > { %v4309_v29 = vor.u32 %v4992_v26, %v4306_v27 }
 0xabc   : > { %v1683_v31 = vpop.f32.mrf.mxu3 }
 0xabd   : > { %1748 = vrot.lane.b32.xlu0 %v1683_v31, %s5463_s25  ;;  %v4991_v31 = vld [vmem:[#allocation7 + $0x24] sm:$0xf0] }
 0xabe   : > { %v4297_v8 = vor.u32 %v4991_v31, %v4296_v30 }
 0xac0   : > { %1971 = vmatpush.bf16.msra.mxu3 %v4297_v8 }
 0xac4   : > { %v1685_v34 = vpop.f32.mrf.mxu3 }
 0xac5   : > { %v4298_v34 = vld [vmem:[#allocation7 + $0x28] sm:$0xf0] }
 0xad1   : > { %v1739_v35 = vpop.f32.mrf.mxu1 }
 0xad2   : > { %1752 = vrot.lane.b32.xlu2 %v1739_v35, %s5462_s1  ;;  %v4301_v35 = vor.u32 %v4990_v33, %v4298_v34 }
 0xad9   : > { %v1741_v36 = vpop.f32.mrf.mxu1 }
 0xada   : > { %v4288_v36 = vld [vmem:[#allocation7 + $0x10] sm:$0xf] }
 0xadb   : > { %v4289_v39 = vor.u32 %v4989_v37, %v4288_v36 }
 0xadd   : > { %1972 = vmatpush.bf16.msra.mxu3 %v4289_v39 }
 0xb23   : > { %v1745_v23 = vpop.permute.xlu0 %1744 }
 0xb24   : > { %v1755_v41 = vsel %vm1052_vm8, %v1562_v16, %v1745_v23  ;;  %v4994_v16 = vld [vmem:[#allocation7 + $0x44] sm:$0xf]  ;;  %v4280_v23 = vld [vmem:[#allocation7] sm:$0xf] }
 0xb25   : > { %v4317_v20 = vor.u32 %v4994_v16, %v4314_v19  ;;  %v5011_v16 = vld [vmem:[#allocation9 + $0x48] sm:$0xff]  ;;  %v5010_v19 = vld [vmem:[#allocation9 + $0x40] sm:$0xff] }
 0xb27   : > { %1982 = vmatpush.bf16.msra.mxu0 %v4317_v20  ;;  %v5003_v20 = vld [vmem:[#allocation9 + $0x8] sm:$0xff] }
 0xb2b   : > { %1983 = vmatpush.bf16.msra.mxu0 %v4309_v29 }
 0xb2c   : > { %v1753_v43 = vpop.permute.xlu2 %1752 }
 0xb2f   : > { %v1749_v42 = vpop.permute.xlu0 %1748  ;;  %1984 = vmatpush.bf16.msra.mxu0 %v4301_v35 }
 0xb30   : > { %v1756_v44 = vsel %vm1323_vm13, %v1755_v41, %v1749_v42  ;;  %v4987_v41 = vld [vmem:[#allocation7 + $0x4] sm:$0xf0]  ;;  %v4293_v42 = vor.u32 %v4988_v38, %v4290_v40  ;;  %v2151_v40 = vld [vmem:[%s6351_s26] sm:$0x1] }
 0xb31   : > { %v1757_v45 = vsel %vm1325_vm14, %v1756_v44, %v1753_v43  ;;  %v4986_v43 = vld [vmem:[#allocation7 + $0x4] sm:$0xf]  ;;  %v4282_v44 = vld [vmem:[#allocation7 + $0x8] sm:$0xf0] }
 0xb32   : > { %v1758_v47 = vpack.c.bf16 %v1757_v45, %v1757_v45  ;;  %v4281_v45 = vor.u32 %v4987_v41, %v4280_v23 }
 0xb33   : > { %1985 = vmatpush.bf16.msra.mxu0 %v4293_v42 }
 0xb34   : > { %1831 = vmatmul.bf16.vlgmr.msrb.gmra.mxu2 %v1758_v47  ;;  %v4285_v47 = vor.u32 %v4986_v43, %v4282_v44  ;;  %1973 = vmatpush.bf16.msra.mxu3 %v4281_v45  ;;  %v4494_v45 = vld [vmem:[#allocation5 + $0x168] sm:$0xf] }
 0xb37   : > { %1986 = vmatpush.bf16.msra.mxu0 %v4285_v47  ;;  %v5040_v47 = vld [vmem:[#allocation5 + $0x170] sm:$0xf0] }
 0xbb7   : > { %v1832_v48 = vpop.f32.mrf.mxu2 }
 0xbb8   : > { %v5960_v52 = vadd.f32 %v1832_v48, %v5849_v22  ;;  %v5017_v48 = vld [vmem:[#allocation9 + $0x78] sm:$0xff] }
 0xbb9   : > { %2137 = vmatpush.bf16.msra.mxu2 %v5017_v48  ;;  %v5039_v48 = vld [vmem:[#allocation5 + $0x16c] sm:$0xf] }
 0xbba   : > { %v1839_v28 = vsel %vm782_vm0, %v5960_v52, 0.0 }
 0xbbb   : > { %1840 = vadd.xlane.f32.xlu0 %v1839_v28  ;;  %v5009_v28 = vld [vmem:[#allocation9 + $0x38] sm:$0xff] }
 0xbbc   : > { %2124 = vmatpush.bf16.msra.mxu1 %v5009_v28  ;;  %v4495_v28 = vor.u32 %v5040_v47, %v4494_v45  ;;  %v5026_v45 = vld [vmem:[#allocation5 + $0x100] sm:$0xf0] }
 0xbbd   : > { %2138 = vmatpush.bf16.msra.mxu2 %v5016_v58  ;;  %v5041_v58 = vld [vmem:[#allocation5 + $0x178] sm:$0xf0] }
 0xbbe   : > { %2342 = vmatpush.bf16.msrb.mxu3 %v4495_v28  ;;  %v4422_v28 = vld [vmem:[#allocation5 + $0xd8] sm:$0xf] }
 0xbbf   : > { %v1834_v55 = vpop.f32.mrf.mxu2 }
 0xbc0   : > { %2125 = vmatpush.bf16.msra.mxu1 %v5008_v49 }
 0xbc1   : > { %2139 = vmatpush.bf16.msra.mxu2 %v5015_v60 }
 0xbc4   : > { %2126 = vmatpush.bf16.msra.mxu1 %v5007_v61 }
 0xc2e   : > { %v1841_v62 = vpop.xlane.xlu0 %1840 }
 0xc2f   : > { %v1842_v63 = vmul.f32 %v1841_v62, %v5682_v25  ;;  %v5014_v62 = vld [vmem:[#allocation9 + $0x60] sm:$0xff] }
 0xc30   : > { %2140 = vmatpush.bf16.msra.mxu2 %v5014_v62 }
 0xc31   : > { %v5966_v32 = vsub.f32 %v5960_v52, %v1842_v63  ;;  %v5006_v63 = vld [vmem:[#allocation9 + $0x20] sm:$0xff] }
 0xc32   : > { %2127 = vmatpush.bf16.msra.mxu1 %v5006_v63 }
 0xc33   : > { %v1844_v22 = vmul.f32 %v5966_v32, %v5966_v32 }
 0xc34   : > { %2141 = vmatpush.bf16.msra.mxu2 %v5013_v1  ;;  %v5036_v1 = vld [vmem:[#allocation5 + $0x154] sm:$0xf] }
 0xc35   : > { %v1845_v0 = vsel %vm782_vm0, %v1844_v22, 0.0 }
 0xc36   : > { %1846 = vadd.xlane.f32.xlu1 %v1845_v0  ;;  %2128 = vmatpush.bf16.msra.mxu1 %v5005_v2 }
 0xc38   : > { %2142 = vmatpush.bf16.msra.mxu2 %v5012_v5  ;;  %v5038_v5 = vld [vmem:[#allocation5 + $0x160] sm:$0xf0] }
 0xc3a   : > { %2129 = vmatpush.bf16.msra.mxu1 %v5004_v17 }
 0xc3c   : > { %2143 = vmatpush.bf16.msra.mxu2 %v5011_v16 }
 0xc3e   : > { %2130 = vmatpush.bf16.msra.mxu1 %v5003_v20  ;;  %v5031_v20 = vld [vmem:[#allocation5 + $0x128] sm:$0xf0] }
 0xc40   : > { %2144 = vmatpush.bf16.msra.mxu2 %v5010_v19  ;;  %v4458_v19 = vld [vmem:[#allocation5 + $0x120] sm:$0xf] }
 0xc42   : > { %2131 = vmatpush.bf16.msra.mxu1 %v5002_v21  ;;  %v5030_v21 = vld [vmem:[#allocation5 + $0x124] sm:$0xf] }
 0xca9   : > { %v1847_v55 = vpop.xlane.xlu1 %1846 }
 0xcaa   : > { %v1848_v56 = vmul.f32 %v1847_v55, %v5682_v25  ;;  %v4496_v55 = vld [vmem:[#allocation5 + $0x174] sm:$0xf0] }
 0xcab   : > { %v4499_v49 = vor.u32 %v5039_v48, %v4496_v55  ;;  %v5022_v55 = vld [vmem:[#allocation5 + $0xe0] sm:$0xf0] }
 0xcac   : > { %v1849_v59 = vadd.f32 1e-06, %v1848_v56  ;;  %v4502_v56 = vld [vmem:[#allocation5 + $0x170] sm:$0xf] }
 0xcad   : > { %2355 = vmatpush.bf16.msrb.mxu0 %v4499_v49  ;;  %v4424_v49 = vld [vmem:[#allocation5 + $0xe4] sm:$0xf0] }
 0xcae   : > { %5250 = vrsqrt.f32 %v1849_v59  ;;  %vm1856_vm1 = vweird.f32 %v1849_v59 }
 0xcb4   : > { %v5251_v22 = vpop.eup %5250 }
 0xcb5   : > { %v1851_v0 = vmul.f32 %v5251_v22, %v1849_v59  ;;  %vm1857_vm15 = vweird.f32 %v5251_v22  ;;  %v4503_v59 = vor.u32 %v5041_v58, %v4502_v56  ;;  %v5021_v56 = vld [vmem:[#allocation5 + $0xdc] sm:$0xf]  ;;  %v4423_v58 = vor.u32 %v5022_v55, %v4422_v28 }
 0xcb6   : > { %vm1858_vm2 = vmor %vm1856_vm1, %vm1857_vm15 }
 0xcb7   : > { %v1852_v3 = vmul.f32 %v5251_v22, %v1851_v0  ;;  %2368 = vmatpush.bf16.msrb.mxu1 %v4503_v59  ;;  %v5037_v0 = vld [vmem:[#allocation5 + $0x158] sm:$0xf0]  ;;  %v4430_v59 = vld [vmem:[#allocation5 + $0xe0] sm:$0xf] }
 0xcb9   : > { %v1853_v4 = vmul.f32 0.5, %v1852_v3  ;;  %v4484_v3 = vld [vmem:[#allocation5 + $0x15c] sm:$0xf0] }
 0xcbb   : > { %v1854_v6 = vsub.f32 1.5, %v1853_v4  ;;  %v4490_v4 = vld [vmem:[#allocation5 + $0x158] sm:$0xf] }
 0xcbd   : > { %v1855_v7 = vmul.f32 %v5251_v22, %v1854_v6  ;;  %v4487_v6 = vor.u32 %v5036_v1, %v4484_v3  ;;  %v4418_v3 = vld [vmem:[#allocation5 + $0xc8] sm:$0xf] }
 0xcbf   : > { %v1859_v9 = vsel %vm1858_vm2, %v5251_v22, %v1855_v7  ;;  %v4482_v22 = vld [vmem:[#allocation5 + $0x150] sm:$0xf]  ;;  %v4491_v7 = vor.u32 %v5038_v5, %v4490_v4  ;;  %2356 = vmatpush.bf16.msrb.mxu0 %v4487_v6  ;;  %v5020_v4 = vld [vmem:[#allocation5 + $0xd0] sm:$0xf0] }
 0xcc0   : > { %v1860_v11 = vmul.f32 %v1859_v9, %v5966_v32  ;;  %v1880_v32 = vld [vmem:[%s6350_s14] sm:$0x3]  ;;  %v4483_v2 = vor.u32 %v5037_v0, %v4482_v22  ;;  %v4470_v9 = vld [vmem:[#allocation5 + $0x138] sm:$0xf]  ;;  %v5019_v22 = vld [vmem:[#allocation5 + $0xc8] sm:$0xf0]  ;;  %v4419_v6 = vor.u32 %v5020_v4, %v4418_v3 }
 0xcc1   : > { %v1963_v24 = vperm.slane %v1880_v32, 1  ;;  %v1962_v29 = vperm.slane %v1880_v32, 0  ;;  %2369 = vmatpush.bf16.msrb.mxu1 %v4491_v7  ;;  %v4459_v32 = vor.u32 %v5031_v20, %v4458_v19  ;;  %v5018_v0 = vld [vmem:[#allocation5 + $0xc4] sm:$0xf]  ;;  %v4406_v19 = vld [vmem:[%s6308_s5 + $0x8] sm:$0x1] }
 0xcc2   : > { %v1861_v13 = vmul.f32 %v1860_v11, %v1837_v10  ;;  %2343 = vmatpush.bf16.msrb.mxu3 %v4483_v2  ;;  %v5034_v10 = vld [vmem:[#allocation5 + $0x140] sm:$0xf0]  ;;  %v5033_v11 = vld [vmem:[#allocation5 + $0x13c] sm:$0xf]  ;;  %v4412_v2 = vld [vmem:[#allocation5 + $0xcc] sm:$0xf0] }
 0xcc3   : > { %v4415_v5 = vor.u32 %v5018_v0, %v4412_v2 }
 0xcc4   : > { %v1862_v14 = vadd.f32 %v1861_v13, %v1838_v12  ;;  %v4471_v12 = vor.u32 %v5034_v10, %v4470_v9  ;;  %v4472_v13 = vld [vmem:[#allocation5 + $0x144] sm:$0xf0] }
 0xcc5   : > { %v4475_v16 = vor.u32 %v5033_v11, %v4472_v13 }
 0xcc6   : > { %v1863_v15 = vpack.c.bf16 %v1862_v14, %v1862_v14  ;;  %v4478_v14 = vld [vmem:[#allocation5 + $0x140] sm:$0xf]  ;;  %2344 = vmatpush.bf16.msrb.mxu3 %v4471_v12 }
 0xcc7   : > { %2357 = vmatpush.bf16.msrb.mxu0 %v4475_v16 }
 0xcc8   : > { %1974 = vmatmul.bf16.vlgmr.msra.gmra.mxu3 %v1863_v15  ;;  %1987 = vmatmul.bf16.vlgmr.msra.gmra.mxu0 %v1863_v15  ;;  %v5035_v15 = vld [vmem:[#allocation5 + $0x148] sm:$0xf0] }
 0xcc9   : > { %v4479_v17 = vor.u32 %v5035_v15, %v4478_v14 }
 0xcca   : > { %2345 = vmatpush.bf16.msrb.mxu3 %v4459_v32 }
 0xccb   : > { %2370 = vmatpush.bf16.msrb.mxu1 %v4479_v17 }
 0xd45   : > { %v1988_v26 = vpop.f32.mrf.mxu0 }
 0xd46   : > { %v1989_v18 = vadd.f32 %v1988_v26, %v1963_v24  ;;  %v4460_v24 = vld [vmem:[#allocation5 + $0x12c] sm:$0xf0]  ;;  %v4466_v26 = vld [vmem:[#allocation5 + $0x128] sm:$0xf] }
 0xd48   : > { %v1993_v27 = vmax.f32 %v1989_v18, 0.0  ;;  %v5032_v18 = vld [vmem:[#allocation5 + $0x130] sm:$0xf0] }
 0xd4a   : > { %v1995_v30 = vpack.c.bf16 %v1993_v27, %v1993_v27  ;;  %v4463_v27 = vor.u32 %v5030_v21, %v4460_v24  ;;  %v4407_v21 = vld [vmem:[%s6308_s5 + $0x9] sm:$0x1] }
 0xd4b   : > { %v1975_v31 = vpop.f32.mrf.mxu3 }
 0xd4c   : > { %v1976_v33 = vadd.f32 %v1975_v31, %v1962_v29  ;;  %2145 = vmatmul.bf16.vlgmr.msra.gmra.mxu2 %v1995_v30  ;;  %v4467_v29 = vor.u32 %v5032_v18, %v4466_v26  ;;  %2358 = vmatpush.bf16.msrb.mxu0 %v4463_v27  ;;  %v4446_v30 = vld [vmem:[#allocation5 + $0x108] sm:$0xf]  ;;  %v5028_v31 = vld [vmem:[#allocation5 + $0x110] sm:$0xf0] }
 0xd4d   : > { %v1990_v8 = vpop.f32.mrf.mxu0  ;;  %v4504_v18 = vld [vmem:[%s5656_s13 + $0x18] sm:$0xff]  ;;  %v4505_v27 = vld [vmem:[%s5656_s13 + $0x20] sm:$0xff] }
 0xd4e   : > { %v1992_v34 = vmax.f32 %v1976_v33, 0.0  ;;  %2371 = vmatpush.bf16.msrb.mxu1 %v4467_v29  ;;  %v5027_v33 = vld [vmem:[#allocation5 + $0x10c] sm:$0xf]  ;;  %v4447_v8 = vor.u32 %v5028_v31, %v4446_v30  ;;  %v2385_v30 = vunpack.c.l.bf16 %v4504_v18  ;;  %v2387_v31 = vunpack.c.l.bf16 %v4505_v27 }
 0xd4f   : > { %v4506_v29 = vld [vmem:[%s5656_s13 + $0x28] sm:$0x33] }
 0xd50   : > { %v1994_v35 = vpack.c.bf16 %v1992_v34, %v1992_v34  ;;  %v4448_v34 = vld [vmem:[#allocation5 + $0x114] sm:$0xf0]  ;;  %2346 = vmatpush.bf16.msrb.mxu3 %v4447_v8 }
 0xd52   : > { %2132 = vmatmul.bf16.vlgmr.msra.gmra.mxu1 %v1994_v35  ;;  %v4454_v35 = vld [vmem:[#allocation5 + $0x110] sm:$0xf] }
 0xd53   : > { %v1977_v36 = vpop.f32.mrf.mxu3 }
 0xd54   : > { %v5029_v36 = vld [vmem:[#allocation5 + $0x118] sm:$0xf0] }
 0xdcf   : > { %v2133_v37 = vpop.f32.mrf.mxu1  ;;  %v2146_v38 = vpop.f32.mrf.mxu2 }
 0xdd0   : > { %v2147_v39 = vadd.f32 %v2146_v38, %v2133_v37  ;;  %v4451_v37 = vor.u32 %v5027_v33, %v4448_v34  ;;  %v4455_v38 = vor.u32 %v5029_v36, %v4454_v35  ;;  %v2389_v33 = vunpack.c.l.bf16 %v4506_v29 }
 0xdd1   : > { %v2386_v34 = vunpack.c.h.bf16 %v4504_v18  ;;  %v2390_v35 = vunpack.c.h.bf16 %v4506_v29 }
 0xdd2   : > { %v2150_v23 = vadd.f32 %v2147_v39, %v5960_v52  ;;  %2359 = vmatpush.bf16.msrb.mxu0 %v4451_v37  ;;  %2372 = vmatpush.bf16.msrb.mxu1 %v4455_v38  ;;  %v4434_v39 = vld [vmem:[#allocation5 + $0xf0] sm:$0xf] }
 0xdd4   : > { %v5986_v41 = vadd.f32 %v2151_v40, %v2150_v23  ;;  %v5025_v40 = vld [vmem:[#allocation5 + $0xf8] sm:$0xf0]  ;;  %v5024_v23 = vld [vmem:[#allocation5 + $0xf4] sm:$0xf] }
 0xdd6   : > { %v2156_v42 = vsel %vm782_vm0, %v5986_v41, 0.0 }
 0xdd7   : > { %v2135_v43 = vpop.f32.mrf.mxu1  ;;  %v2148_v44 = vpop.f32.mrf.mxu2  ;;  %2157 = vadd.xlane.f32.xlu2 %v2156_v42  ;;  %v4435_v42 = vor.u32 %v5025_v40, %v4434_v39 }
 0xdd8   : > { %v4436_v43 = vld [vmem:[#allocation5 + $0xfc] sm:$0xf0]  ;;  %v4442_v44 = vld [vmem:[#allocation5 + $0xf8] sm:$0xf] }
 0xdd9   : > { %v4439_v47 = vor.u32 %v5024_v23, %v4436_v43  ;;  %v4443_v48 = vor.u32 %v5026_v45, %v4442_v44  ;;  %2347 = vmatpush.bf16.msrb.mxu3 %v4435_v42 }
 0xddb   : > { %2360 = vmatpush.bf16.msrb.mxu0 %v4439_v47  ;;  %2373 = vmatpush.bf16.msrb.mxu1 %v4443_v48 }
 0xddd   : > { %2348 = vmatpush.bf16.msrb.mxu3 %v4423_v58 }
 0xe4a   : > { %v2158_v52 = vpop.xlane.xlu2 %2157 }
 0xe4b   : > { %v2159_v60 = vmul.f32 %v2158_v52, %v5682_v25  ;;  %v5023_v52 = vld [vmem:[#allocation5 + $0xe8] sm:$0xf0] }
 0xe4d   : > { %v5992_v61 = vsub.f32 %v5986_v41, %v2159_v60  ;;  %v4427_v60 = vor.u32 %v5021_v56, %v4424_v49 }
 0xe4f   : > { %v2161_v62 = vmul.f32 %v5992_v61, %v5992_v61  ;;  %2361 = vmatpush.bf16.msrb.mxu0 %v4427_v60 }
 0xe51   : > { %v2162_v63 = vsel %vm782_vm0, %v2161_v62, 0.0  ;;  %v4431_v62 = vor.u32 %v5023_v52, %v4430_v59 }
 0xe52   : > { %2163 = vadd.xlane.f32.xlu0 %v2162_v63  ;;  %v4410_v63 = vld [vmem:[#allocation5 + $0xc0] sm:$0xf] }
 0xe53   : > { %v4411_v1 = vor.u32 %v5019_v22, %v4410_v63  ;;  %2374 = vmatpush.bf16.msrb.mxu1 %v4431_v62  ;;  %2362 = vmatpush.bf16.msrb.mxu0 %v4415_v5 }
 0xe55   : > { %2349 = vmatpush.bf16.msrb.mxu3 %v4411_v1 }
 0xe57   : > { %2375 = vmatpush.bf16.msrb.mxu1 %v4419_v6 }
 0xec5   : > { %v2164_v7 = vpop.xlane.xlu0 %2163 }
 0xec6   : > { %v2165_v9 = vmul.f32 %v2164_v7, %v5682_v25 }
 0xec8   : > { %v2166_v10 = vadd.f32 1e-06, %v2165_v9 }
 0xeca   : > { %5252 = vrsqrt.f32 %v2166_v10  ;;  %vm2173_vm1 = vweird.f32 %v2166_v10 }
 0xed0   : > { %v5253_v11 = vpop.eup %5252 }
 0xed1   : > { %v2168_v12 = vmul.f32 %v5253_v11, %v2166_v10  ;;  %vm2174_vm15 = vweird.f32 %v5253_v11 }
 0xed2   : > { %vm2175_vm2 = vmor %vm2173_vm1, %vm2174_vm15 }
 0xed3   : > { %v2169_v13 = vmul.f32 %v5253_v11, %v2168_v12 }
 0xed5   : > { %v2170_v14 = vmul.f32 0.5, %v2169_v13 }
 0xed7   : > { %v2171_v15 = vsub.f32 1.5, %v2170_v14 }
 0xed9   : > { %v2172_v16 = vmul.f32 %v5253_v11, %v2171_v15 }
 0xedb   : > { %v2176_v17 = vsel %vm2175_vm2, %v5253_v11, %v2172_v16 }
 0xedc   : > { %v2177_v20 = vmul.f32 %v2176_v17, %v5992_v61  ;;  %v2388_v61 = vunpack.c.h.bf16 %v4505_v27 }
 0xede   : > { %v2178_v32 = vmul.f32 %v4406_v19, %v2177_v20 }
 0xee0   : > { %v2179_v24 = vadd.f32 %v4407_v21, %v2178_v32 }
 0xee2   : > { %v2180_v26 = vpack.c.bf16 %v2179_v24, %v2179_v24 }
 0xee4   : > { %2350 = vmatmul.bf16.vlgmr.msrb.gmra.mxu3 %v2180_v26  ;;  %2363 = vmatmul.bf16.vlgmr.msrb.gmra.mxu0 %v2180_v26 }
 0xee5   : > { %2376 = vmatmul.bf16.vlgmr.msrb.gmra.mxu1 %v2180_v26 }
 0xf61   : > { %v2364_v8 = vpop.f32.mrf.mxu0 }
 0xf62   : > { %v2391_v36 = vperm.slane %v2364_v8, 0  ;;  %v2377_v37 = vpop.f32.mrf.mxu1 }
 0xf63   : > { %v2392_v38 = vperm.slane %v2377_v37, 0 }
 0xf64   : > { %v2393_v39 = vsel %vm777_vm5, %v2391_v36, %v2385_v30  ;;  %v2395_v40 = vsel %vm778_vm6, %v2391_v36, %v2387_v31  ;;  %v2397_v23 = vsel %vm779_vm7, %v2391_v36, %v2389_v33 }
 0xf65   : > { %v2394_v42 = vsel %vm777_vm5, %v2392_v38, %v2386_v34  ;;  %v2396_v43 = vsel %vm778_vm6, %v2392_v38, %v2388_v61  ;;  %v2398_v44 = vsel %vm779_vm7, %v2392_v38, %v2390_v35 }
 0xf66   : > { %v2399_v45 = vpack.c.bf16 %v2394_v42, %v2393_v39  ;;  %v2400_v47 = vpack.c.bf16 %v2396_v43, %v2395_v40  ;;  %v2401_v48 = vpack.c.bf16 %v2398_v44, %v2397_v23 }
 0xf67   : > { %v2351_v28 = vpop.f32.mrf.mxu3 }
 0xf68   : > { %4507 = vst [vmem:[%s5738_s30 + $0x18] sm:$0xff] %v2399_v45  ;;  %v2451_v55 = vunpack.c.h.b16 %v2401_v48  ;;  %v2412_v56 = vunpack.c.l.b16 %v2401_v48  ;;  %v2410_v58 = vunpack.c.l.b16 %v2399_v45  ;;  %v2411_v50 = vunpack.c.l.b16 %v2400_v47 }
 0xf69   : > { %4508 = vst [vmem:[%s5738_s30 + $0x20] sm:$0xff] %v2400_v47  ;;  %v2366_v49 = vpop.f32.mrf.mxu0  ;;  %v2406_v54 = vpack.c.bf16 %v2351_v28, %v2351_v28  ;;  %v2449_v63 = vunpack.c.h.b16 %v2399_v45  ;;  %v2450_v22 = vunpack.c.h.b16 %v2400_v47 }
 0xf6a   : > { %4509 = vst [vmem:[%s5738_s30 + $0x28] sm:$0x33] %v2401_v48  ;;  %v6029_v59 = vpack.c.b16 %v2451_v55, %v2451_v55  ;;  %v2379_v52 = vpop.f32.mrf.mxu1  ;;  %v2414_v60 = vpack.c.b16 %v2412_v56, %v2412_v56  ;;  %v2413_v62 = vpack.c.b16 %v2411_v50, %v2410_v58 }
 0xf6b   : > { %v2475_v0 = vunpack.c.l.b16 %v2406_v54  ;;  %v6037_v2 = vpack.c.b16 %v2450_v22, %v2449_v63 }
 0xf6c   : > { %2545 = vrot.lane.b32.xlu2 %v2414_v60, %s5463_s25  ;;  %2481 = vrot.lane.b32.xlu1 %v2414_v60, %s5462_s1  ;;  %v2422_v53 = vsel %vm1052_vm8, %v2414_v60, 0  ;;  %v2459_v57 = vsel %vm1098_vm9, %v6029_v59, 0  ;;  %v2419_v4 = vsel %vm1052_vm8, %v2413_v62, 0 }
 0xf6d   : > { %2479 = vrot.lane.b32.xlu0 %v2413_v62, %s5462_s1  ;;  %2430 = vmatpush.bf16.xpose.msrb.mxu2 %v2422_v53  ;;  %v2476_v3 = vpack.c.b16 %v2475_v0, %v2475_v0 }
 0xf6e   : > { %2467 = vmatpush.bf16.msra.mxu3 %v2459_v57 }
 0xf6f   : > { %v2353_v1 = vpop.f32.mrf.mxu3 }
 0xf72   : > { %2468 = vmatpush.bf16.msra.mxu3 %v6037_v2 }
 0xf74   : > { %2609 = vrot.lane.b32.xlu1 %v2414_v60, %s5464_s18  ;;  %2477 = vrot.lane.b32.xlu2 %v2476_v3, %s5462_s1 }
 0xf75   : > { %2543 = vrot.lane.b32.xlu0 %v2413_v62, %s5463_s25  ;;  %2431 = vmatpush.bf16.xpose.msrb.mxu2 %v2419_v4 }
 0xf7c   : > { %2605 = vrot.lane.b32.xlu1 %v2476_v3, %s5464_s18  ;;  %2607 = vrot.lane.b32.xlu2 %v2413_v62, %s5464_s18 }
 0xf7d   : > { %2541 = vrot.lane.b32.xlu0 %v2476_v3, %s5463_s25  ;;  %4510 = vmatmul.msk.bf16.vlgmr.msrb.gmra.mxu2 %vm1052_vm8, %v2406_v54 }
 0xfc6   : > { %v2546_v5 = vpop.permute.xlu2 %2545 }
 0xfc7   : > { %v2554_v6 = vsel %vm1052_vm8, %v2546_v5, 0 }
 0xfc8   : > { %2562 = vmatpush.bf16.xpose.msra.mxu2 %v2554_v6 }
 0xfce   : > { %v2478_v11 = vpop.permute.xlu2 %2477 }
 0xfd6   : > { %v2608_v17 = vpop.permute.xlu2 %2607 }
 0xfd7   : > { %v2615_v20 = vsel %vm1052_vm8, %v2608_v17, 0 }
 0xfde   : > { %v2482_v7 = vpop.permute.xlu1 %2481 }
 0xfdf   : > { %v2490_v9 = vsel %vm1052_vm8, %v2482_v7, 0  ;;  %v2480_v10 = vpop.permute.xlu0 %2479 }
 0xfe0   : > { %2498 = vmatpush.bf16.xpose.msra.mxu0 %v2490_v9  ;;  %v2487_v13 = vsel %vm1052_vm8, %v2480_v10, 0 }
 0xfe6   : > { %v2610_v12 = vpop.permute.xlu1 %2609 }
 0xfe7   : > { %v2618_v14 = vsel %vm1052_vm8, %v2610_v12, 0  ;;  %v2544_v15 = vpop.permute.xlu0 %2543 }
 0xfe8   : > { %v2551_v16 = vsel %vm1052_vm8, %v2544_v15, 0  ;;  %2499 = vmatpush.bf16.xpose.msra.mxu0 %v2487_v13 }
 0xfe9   : > { %2563 = vmatpush.bf16.xpose.msra.mxu2 %v2551_v16 }
 0xfee   : > { %v2606_v21 = vpop.permute.xlu1 %2605 }
 0xfef   : > { %v2542_v19 = vpop.permute.xlu0 %2541  ;;  %4512 = vmatmul.msk.bf16.vlgmr.msra.gmra.mxu0 %vm1052_vm8, %v2478_v11 }
 0xff0   : > { %2626 = vmatpush.bf16.xpose.msrb.mxu0 %v2618_v14  ;;  %4514 = vmatmul.msk.bf16.vlgmr.msra.gmra.mxu2 %vm1052_vm8, %v2542_v19 }
 0xff8   : > { %2627 = vmatpush.bf16.xpose.msrb.mxu0 %v2615_v20 }
 0xfff   : > { %4516 = vmatmul.msk.bf16.vlgmr.msrb.gmra.mxu0 %vm1052_vm8, %v2606_v21 }
0x1000   : > { %v2433_v32 = vpop.f32.mrf.mxu2 }
0x1001   : > { %v2434_v24 = vadd.f32 %v2433_v32, %v5778_v51 }
0x1003   : > { %v2437_v26 = vsel %vm1075_vm11, %v2434_v24, -inf }
0x1004   : > { %2438 = vmax.xlane.f32.xlu0 %v2437_v26 }
0x1008   : > { %v2435_v18 = vpop.f32.mrf.mxu2 }
0x106c   : > { %v2501_v27 = vpop.f32.mrf.mxu0 }
0x106d   : > { %v2502_v29 = vadd.f32 %v2501_v27, %v5778_v51 }
0x106f   : > { %v2505_v30 = vsel %vm1075_vm11, %v2502_v29, -inf }
0x1070   : > { %2506 = vmax.xlane.f32.xlu2 %v2505_v30 }
0x1073   : > { %v2565_v31 = vpop.f32.mrf.mxu2 }
0x1074   : > { %v2566_v33 = vadd.f32 %v2565_v31, %v5778_v51  ;;  %v2503_v8 = vpop.f32.mrf.mxu0 }
0x1075   : > { %v5048_v8 = vld [vmem:[%s6310_s7 + $0x70] sm:$0xff] }
0x1076   : > { %v2569_v34 = vsel %vm1075_vm11, %v2566_v33, -inf }
0x1077   : > { %2570 = vmax.xlane.f32.xlu1 %v2569_v34  ;;  %v2439_v61 = vpop.xlane.xlu0 %2438  ;;  %v5047_v34 = vld [vmem:[%s6310_s7 + $0x68] sm:$0xff] }
0x1078   : > { %v2440_v35 = vsub.f32 %v2434_v24, %v2439_v61  ;;  %v5046_v61 = vld [vmem:[%s6310_s7 + $0x60] sm:$0xff] }
0x107a   : > { %v2441_v36 = vmul.f32 1.442695, %v2440_v35  ;;  %v5045_v35 = vld [vmem:[%s6310_s7 + $0x58] sm:$0xff] }
0x107b   : > { %v2567_v37 = vpop.f32.mrf.mxu2 }
0x107c   : > { %5254 = vpow2.f32 %v2441_v36  ;;  %v2629_v38 = vpop.f32.mrf.mxu0  ;;  %v5044_v36 = vld [vmem:[%s6310_s7 + $0x50] sm:$0xff]  ;;  %v5043_v37 = vld [vmem:[%s6310_s7 + $0x48] sm:$0xff] }
0x107d   : > { %v2630_v39 = vadd.f32 %v2629_v38, %v5778_v51  ;;  %v5042_v38 = vld [vmem:[%s6310_s7 + $0x40] sm:$0xff] }
0x107f   : > { %v2633_v40 = vsel %vm1075_vm11, %v2630_v39, -inf }
0x1080   : > { %2634 = vmax.xlane.f32.xlu2 %v2633_v40 }
0x1082   : > { %v5255_v23 = vpop.eup %5254 }
0x1083   : > { %v2443_v42 = vsel %vm1075_vm11, %v5255_v23, 0.0 }
0x1084   : > { %2444 = vadd.xlane.f32.xlu0 %v2443_v42  ;;  %v2631_v43 = vpop.f32.mrf.mxu0 }
0x1090   : > { %2583 = vrot.lane.b32.xlu1 %v6029_v59, %s5463_s25 }
0x1098   : > { %2517 = vrot.lane.b32.xlu0 %v6037_v2, %s5462_s1  ;;  %2519 = vrot.lane.b32.xlu2 %v6029_v59, %s5462_s1 }
0x10a0   : > { %2581 = vrot.lane.b32.xlu2 %v6037_v2, %s5463_s25 }
0x10a8   : > { %2647 = vrot.lane.b32.xlu2 %v6029_v59, %s5464_s18 }
0x10e3   : > { %v2507_v51 = vpop.xlane.xlu2 %2506 }
0x10e4   : > { %v2508_v44 = vsub.f32 %v2502_v29, %v2507_v51 }
0x10e6   : > { %v2509_v45 = vmul.f32 1.442695, %v2508_v44 }
0x10e8   : > { %5256 = vpow2.f32 %v2509_v45 }
0x10ea   : > { %v2571_v47 = vpop.xlane.xlu1 %2570 }
0x10eb   : > { %v2572_v48 = vsub.f32 %v2566_v33, %v2571_v47  ;;  %v5049_v33 = vld [vmem:[%s6310_s7 + $0x78] sm:$0xff] }
0x10ec   : > { %2750 = vmatpush.bf16.msrb.mxu2 %v5049_v33 }
0x10ed   : > { %v2573_v28 = vmul.f32 1.442695, %v2572_v48 }
0x10ee   : > { %v5257_v55 = vpop.eup %5256 }
0x10ef   : > { %5258 = vpow2.f32 %v2573_v28  ;;  %v2511_v56 = vsel %vm1075_vm11, %v5257_v55, 0.0 }
0x10f0   : > { %2512 = vadd.xlane.f32.xlu1 %v2511_v56  ;;  %2751 = vmatpush.bf16.msrb.mxu2 %v5048_v8 }
0x10f3   : > { %v2635_v58 = vpop.xlane.xlu2 %2634 }
0x10f4   : > { %v2636_v49 = vsub.f32 %v2630_v39, %v2635_v58  ;;  %2752 = vmatpush.bf16.msrb.mxu2 %v5047_v34 }
0x10f5   : > { %v5259_v50 = vpop.eup %5258 }
0x10f6   : > { %v2637_v54 = vmul.f32 1.442695, %v2636_v49  ;;  %v2575_v60 = vsel %vm1075_vm11, %v5259_v50, 0.0 }
0x10f7   : > { %v2445_v52 = vpop.xlane.xlu0 %2444 }
0x10f8   : > { %5260 = vpow2.f32 %v2637_v54  ;;  %2576 = vadd.xlane.f32.xlu1 %v2575_v60  ;;  %2753 = vmatpush.bf16.msrb.mxu2 %v5046_v61  ;;  %v5054_v60 = vld [vmem:[%s6311_s8 + $0x60] sm:$0xff] }
0x10f9   : > { %5262 = vrcp.f32 %v2445_v52  ;;  %v5055_v52 = vld [vmem:[%s6311_s8 + $0x68] sm:$0xff] }
0x10fb   : > { %v2520_v59 = vpop.permute.xlu2 %2519 }
0x10fc   : > { %v2526_v62 = vsel %vm1098_vm9, %v2520_v59, 0  ;;  %2754 = vmatpush.bf16.msrb.mxu2 %v5045_v35  ;;  %v5053_v59 = vld [vmem:[%s6311_s8 + $0x58] sm:$0xff]  ;;  %v5292_v35 = vld [vmem:[%s5903_s21] sm:$0x1] }
0x10fd   : > { %2534 = vmatpush.bf16.msra.mxu1 %v2526_v62  ;;  %v5052_v62 = vld [vmem:[%s6311_s8 + $0x50] sm:$0xff] }
0x10fe   : > { %v5261_v53 = vpop.eup %5260 }
0x10ff   : > { %v5263_v57 = vpop.eup %5262  ;;  %v2639_v63 = vsel %vm1075_vm11, %v5261_v53, 0.0 }
0x1100   : > { %v2447_v22 = vmul.f32 %v5263_v57, %v5255_v23  ;;  %2640 = vadd.xlane.f32.xlu0 %v2639_v63  ;;  %2755 = vmatpush.bf16.msrb.mxu2 %v5044_v36  ;;  %v5050_v57 = vld [vmem:[%s6311_s8 + $0x40] sm:$0xff]  ;;  %v4616_v63 = vld [vmem:[%s5653_s17 + $0x8] sm:$0xf] }
0x1102   : > { %v2448_v0 = vpack.c.bf16 %v2447_v22, %v2447_v22  ;;  %v2584_v1 = vpop.permute.xlu1 %2583 }
0x1103   : > { %v2590_v3 = vsel %vm1098_vm9, %v2584_v1, 0  ;;  %v2582_v4 = vpop.permute.xlu2 %2581  ;;  %v2877_v1 = vsel %vm1052_vm8, %v4616_v63, 0 }
0x1104   : > { %4511 = vmatmul.msk.bf16.vlgmr.msra.gmra.mxu3 %vm1094_vm12, %v2448_v0  ;;  %2756 = vmatpush.bf16.msrb.mxu2 %v5043_v37  ;;  %v2929_v0 = vunpack.c.l.b16 %v4616_v63 }
0x1105   : > { %2598 = vmatpush.bf16.msrb.mxu3 %v2590_v3  ;;  %2886 = vmatpush.bf16.xpose.msra.mxu0 %v2877_v1 }
0x1108   : > { %2757 = vmatpush.bf16.msrb.mxu2 %v5042_v38 }
0x1109   : > { %2599 = vmatpush.bf16.msrb.mxu3 %v2582_v4  ;;  %v2930_v4 = vpack.c.b16 %v2929_v0, %v2929_v0 }
0x110a   : > { %v2518_v5 = vpop.permute.xlu0 %2517 }
0x110b   : > { %2535 = vmatpush.bf16.msra.mxu1 %v2518_v5  ;;  %v2648_v6 = vpop.permute.xlu2 %2647 }
0x110c   : > { %v2654_v7 = vsel %vm1098_vm9, %v2648_v6, 0 }
0x110f   : > { %2662 = vmatpush.bf16.msrb.mxu1 %v2654_v7 }
0x1111   : > { %2645 = vrot.lane.b32.xlu1 %v6037_v2, %s5464_s18 }
0x1114   : > { %2931 = vrot.lane.b32.xlu0 %v2930_v4, %s5462_s1 }
0x111c   : > { %2990 = vrot.lane.b32.xlu0 %v2930_v4, %s5463_s25 }
0x1163   : > { %v2513_v9 = vpop.xlane.xlu1 %2512 }
0x1164   : > { %5264 = vrcp.f32 %v2513_v9 }
0x116a   : > { %v5265_v10 = vpop.eup %5264 }
0x116b   : > { %v2515_v11 = vmul.f32 %v5265_v10, %v5257_v55  ;;  %v2577_v12 = vpop.xlane.xlu1 %2576  ;;  %v5057_v55 = vld [vmem:[%s6311_s8 + $0x78] sm:$0xff] }
0x116c   : > { %5266 = vrcp.f32 %v2577_v12  ;;  %2856 = vmatpush.bf16.msra.mxu3 %v5057_v55 }
0x116d   : > { %v2516_v13 = vpack.c.bf16 %v2515_v11, %v2515_v11 }
0x116f   : > { %4513 = vmatmul.msk.bf16.vlgmr.msra.gmra.mxu1 %vm1094_vm12, %v2516_v13 }
0x1172   : > { %v5267_v14 = vpop.eup %5266 }
0x1173   : > { %v2579_v15 = vmul.f32 %v5267_v14, %v5259_v50  ;;  %v2641_v17 = vpop.xlane.xlu0 %2640  ;;  %v4566_v14 = vld [vmem:[%s6308_s5 + $0xa] sm:$0x1] }
0x1174   : > { %5268 = vrcp.f32 %v2641_v17 }
0x1175   : > { %v2580_v16 = vpack.c.bf16 %v2579_v15, %v2579_v15 }
0x1177   : > { %4515 = vmatmul.msk.bf16.vlgmr.msrb.gmra.mxu3 %vm1094_vm12, %v2580_v16  ;;  %v4567_v16 = vld [vmem:[%s6308_s5 + $0xb] sm:$0x1] }
0x117a   : > { %v5269_v19 = vpop.eup %5268 }
0x117b   : > { %v2643_v20 = vmul.f32 %v5269_v19, %v5261_v53  ;;  %v5051_v53 = vld [vmem:[%s6311_s8 + $0x48] sm:$0xff] }
0x117d   : > { %v2644_v2 = vpack.c.bf16 %v2643_v20, %v2643_v20 }
0x1183   : > { %v2646_v21 = vpop.permute.xlu1 %2645 }
0x1184   : > { %2663 = vmatpush.bf16.msrb.mxu1 %v2646_v21 }
0x1186   : > { %v2932_v21 = vpop.permute.xlu0 %2931 }
0x1187   : > { %v2470_v32 = vpop.f32.mrf.mxu3  ;;  %4517 = vmatmul.msk.bf16.vlgmr.msrb.gmra.mxu1 %vm1094_vm12, %v2644_v2  ;;  %v2937_v2 = vsel %vm1052_vm8, %v2932_v21, 0 }
0x1188   : > { %2946 = vmatpush.bf16.xpose.msrb.mxu0 %v2937_v2 }
0x118f   : > { %v2472_v24 = vpop.f32.mrf.mxu3 }
0x11ec   : > { %v2537_v26 = vpop.f32.mrf.mxu1 }
0x11ed   : > { %2670 = vrot.lane.b32.xlu2 %v2537_v26, %s5464_s18 }
0x11f4   : > { %v2539_v18 = vpop.f32.mrf.mxu1 }
0x11fa   : > { %v2601_v27 = vpop.f32.mrf.mxu3 }
0x11fb   : > { %2674 = vrot.lane.b32.xlu1 %v2601_v27, %s5463_s25 }
0x1202   : > { %v2603_v29 = vpop.f32.mrf.mxu3 }
0x1204   : > { %v2665_v30 = vpop.f32.mrf.mxu1 }
0x1205   : > { %2678 = vrot.lane.b32.xlu2 %v2665_v30, %s5462_s1 }
0x120c   : > { %v2667_v31 = vpop.f32.mrf.mxu1 }
0x1247   : > { %v2671_v39 = vpop.permute.xlu2 %2670 }
0x1248   : > { %v2681_v40 = vsel %vm1052_vm8, %v2470_v32, %v2671_v39  ;;  %v2991_v32 = vpop.permute.xlu0 %2990 }
0x1249   : > { %v2996_v24 = vsel %vm1052_vm8, %v2991_v32, 0 }
0x124a   : > { %3005 = vmatpush.bf16.xpose.msra.mxu2 %v2996_v24 }
0x125f   : > { %v2679_v42 = vpop.permute.xlu2 %2678 }
0x126d   : > { %v2675_v23 = vpop.permute.xlu1 %2674 }
0x126e   : > { %v2682_v43 = vsel %vm1323_vm13, %v2681_v40, %v2675_v23 }
0x126f   : > { %v2683_v51 = vsel %vm1325_vm14, %v2682_v43, %v2679_v42 }
0x1270   : > { %v2684_v44 = vpack.c.bf16 %v2683_v51, %v2683_v51 }
0x1272   : > { %2758 = vmatmul.bf16.vlgmr.msrb.gmra.mxu2 %v2684_v44 }
0x12f5   : > { %v2759_v45 = vpop.f32.mrf.mxu2 }
0x12f6   : > { %v6119_v47 = vadd.f32 %v2759_v45, %v5986_v41  ;;  %v5056_v41 = vld [vmem:[%s6311_s8 + $0x70] sm:$0xff] }
0x12f7   : > { %2857 = vmatpush.bf16.msra.mxu3 %v5056_v41 }
0x12f8   : > { %v2766_v48 = vsel %vm782_vm0, %v6119_v47, 0.0 }
0x12f9   : > { %2767 = vadd.xlane.f32.xlu1 %v2766_v48 }
0x12fb   : > { %2858 = vmatpush.bf16.msra.mxu3 %v5055_v52 }
0x12fd   : > { %v2761_v28 = vpop.f32.mrf.mxu2 }
0x12ff   : > { %2859 = vmatpush.bf16.msra.mxu3 %v5054_v60 }
0x1303   : > { %2860 = vmatpush.bf16.msra.mxu3 %v5053_v59 }
0x1307   : > { %2861 = vmatpush.bf16.msra.mxu3 %v5052_v62  ;;  %v4617_v62 = vld [vmem:[%s5653_s17 + $0xc] sm:$0xf]  ;;  %s763_s17 = scalar_lea.vmem %s6353_s22, %s5672_s27 }
0x1308   : > { %v2965_v63 = vunpack.c.l.b16 %v4617_v62 }
0x130a   : > { %v2966_v0 = vpack.c.b16 %v2965_v63, %v2965_v63 }
0x130b   : > { %2862 = vmatpush.bf16.msra.mxu3 %v5051_v53  ;;  %v2908_v53 = vsel %vm1549_vm4, %v4617_v62, 0 }
0x130c   : > { %2917 = vmatpush.bf16.msra.mxu1 %v2908_v53 }
0x130f   : > { %2863 = vmatpush.bf16.msra.mxu3 %v5050_v57 }
0x136c   : > { %v2768_v56 = vpop.xlane.xlu1 %2767 }
0x136d   : > { %v2769_v58 = vmul.f32 %v2768_v56, %v5682_v25 }
0x136f   : > { %v2770_v49 = vsub.f32 %v6119_v47, %v2769_v58 }
0x1371   : > { %v2771_v50 = vmul.f32 %v2770_v49, %v2770_v49 }
0x1373   : > { %v2772_v54 = vsel %vm782_vm0, %v2771_v50, 0.0 }
0x1374   : > { %2773 = vadd.xlane.f32.xlu2 %v2772_v54 }
0x138c   : > { %3046 = vrot.lane.b32.xlu2 %v2930_v4, %s5464_s18 }
0x13e7   : > { %v2774_v22 = vpop.xlane.xlu2 %2773 }
0x13e8   : > { %v2775_v3 = vmul.f32 %v2774_v22, %v5682_v25 }
0x13ea   : > { %v2776_v5 = vadd.f32 1e-06, %v2775_v3 }
0x13ec   : > { %5270 = vrsqrt.f32 %v2776_v5  ;;  %vm2783_vm6 = vweird.f32 %v2776_v5 }
0x13ef   : > { %v3047_v31 = vpop.permute.xlu2 %3046 }
0x13f0   : > { %v3052_v33 = vsel %vm1052_vm8, %v3047_v31, 0 }
0x13f2   : > { %v5271_v6 = vpop.eup %5270 }
0x13f3   : > { %v2778_v7 = vmul.f32 %v5271_v6, %v2776_v5  ;;  %vm2784_vm5 = vweird.f32 %v5271_v6 }
0x13f4   : > { %vm2785_vm7 = vmor %vm2783_vm6, %vm2784_vm5 }
0x13f5   : > { %v2779_v9 = vmul.f32 %v5271_v6, %v2778_v7 }
0x13f7   : > { %v2780_v10 = vmul.f32 0.5, %v2779_v9 }
0x13f9   : > { %v2781_v11 = vsub.f32 1.5, %v2780_v10 }
0x13fb   : > { %v2782_v12 = vmul.f32 %v5271_v6, %v2781_v11 }
0x13fd   : > { %v2786_v13 = vsel %vm2785_vm7, %v5271_v6, %v2782_v12 }
0x13fe   : > { %v2787_v15 = vmul.f32 %v2786_v13, %v2770_v49 }
0x1400   : > { %v2788_v17 = vmul.f32 %v4566_v14, %v2787_v15 }
0x1402   : > { %v2789_v19 = vadd.f32 %v4567_v16, %v2788_v17 }
0x1404   : > { %v2790_v20 = vpack.c.bf16 %v2789_v19, %v2789_v19 }
0x1406   : > { %2864 = vmatmul.bf16.vlgmr.msra.gmra.mxu3 %v2790_v20 }
0x1489   : > { %v2865_v26 = vpop.f32.mrf.mxu3 }
0x148a   : > { %v2872_v18 = vpack.c.bf16 %v2865_v26, %v2865_v26 }
0x148c   : > { %v2924_v27 = vunpack.c.l.b16 %v2872_v18  ;;  %4618 = vmatmul.msk.bf16.vlgmr.msra.gmra.mxu0 %vm1052_vm8, %v2872_v18 }
0x148d   : > { %3061 = vmatpush.bf16.xpose.msra.mxu0 %v3052_v33 }
0x148e   : > { %v2925_v29 = vpack.c.b16 %v2924_v27, %v2924_v27 }
0x1490   : > { %2988 = vrot.lane.b32.xlu1 %v2925_v29, %s5463_s25  ;;  %2926 = vrot.lane.b32.xlu0 %v2925_v29, %s5462_s1 }
0x1491   : > { %v2867_v30 = vpop.f32.mrf.mxu3 }
0x1498   : > { %3044 = vrot.lane.b32.xlu0 %v2925_v29, %s5464_s18 }
0x1502   : > { %v2989_v8 = vpop.permute.xlu1 %2988  ;;  %v2927_v34 = vpop.permute.xlu0 %2926 }
0x1503   : > { %4620 = vmatmul.msk.bf16.vlgmr.msrb.gmra.mxu0 %vm1052_vm8, %v2927_v34  ;;  %4622 = vmatmul.msk.bf16.vlgmr.msra.gmra.mxu2 %vm1052_vm8, %v2989_v8 }
0x1509   : > { %v2888_v61 = vpop.f32.mrf.mxu0 }
0x150a   : > { %v2889_v36 = vadd.f32 %v5292_v35, %v2888_v61  ;;  %v3045_v39 = vpop.permute.xlu0 %3044 }
0x150c   : > { %v2892_v37 = vsel %vm1532_vm3, %v2889_v36, -inf }
0x150d   : > { %2893 = vmax.xlane.f32.xlu0 %v2892_v37 }
0x1511   : > { %v2890_v38 = vpop.f32.mrf.mxu0 }
0x1513   : > { %4624 = vmatmul.msk.bf16.vlgmr.msra.gmra.mxu0 %vm1052_vm8, %v3045_v39 }
0x1580   : > { %v2948_v40 = vpop.f32.mrf.mxu0  ;;  %v2894_v51 = vpop.xlane.xlu0 %2893 }
0x1581   : > { %v2949_v23 = vadd.f32 %v5292_v35, %v2948_v40  ;;  %v2895_v28 = vsub.f32 %v2889_v36, %v2894_v51 }
0x1583   : > { %v2952_v42 = vsel %vm1532_vm3, %v2949_v23, -inf  ;;  %v2896_v55 = vmul.f32 1.442695, %v2895_v28  ;;  %v5062_v28 = vld [vmem:[%s6349_s19 + $0x60] sm:$0xff] }
0x1584   : > { %2953 = vmax.xlane.f32.xlu1 %v2952_v42 }
0x1585   : > { %5272 = vpow2.f32 %v2896_v55  ;;  %v5061_v55 = vld [vmem:[%s6349_s19 + $0x58] sm:$0xff] }
0x1586   : > { %v3007_v43 = vpop.f32.mrf.mxu2 }
0x1587   : > { %v3008_v44 = vadd.f32 %v5292_v35, %v3007_v43 }
0x1588   : > { %v2950_v45 = vpop.f32.mrf.mxu0 }
0x1589   : > { %v3011_v48 = vsel %vm1532_vm3, %v3008_v44, -inf  ;;  %v5064_v45 = vld [vmem:[%s6349_s19 + $0x70] sm:$0xff] }
0x158a   : > { %3012 = vmax.xlane.f32.xlu2 %v3011_v48  ;;  %v5063_v48 = vld [vmem:[%s6349_s19 + $0x68] sm:$0xff] }
0x158b   : > { %v5273_v54 = vpop.eup %5272 }
0x158c   : > { %v2898_v52 = vsel %vm1532_vm3, %v5273_v54, 0.0 }
0x158e   : > { %v3009_v56 = vpop.f32.mrf.mxu2 }
0x158f   : > { %v5060_v56 = vld [vmem:[%s6349_s19 + $0x50] sm:$0xff] }
0x1590   : > { %v3063_v58 = vpop.f32.mrf.mxu0 }
0x1591   : > { %v3064_v49 = vadd.f32 %v5292_v35, %v3063_v58  ;;  %v5059_v58 = vld [vmem:[%s6349_s19 + $0x48] sm:$0xff] }
0x1593   : > { %v3067_v50 = vsel %vm1532_vm3, %v3064_v49, -inf }
0x1594   : > { %3068 = vmax.xlane.f32.xlu0 %v3067_v50 }
0x1598   : > { %v3065_v41 = vpop.f32.mrf.mxu0 }
0x159c   : > { %2899 = vadd.xlane.f32.xlu0 %v2898_v52 }
0x15a2   : > { %2967 = vrot.lane.b32.xlu2 %v2966_v0, %s5462_s1 }
0x15f7   : > { %v2954_v60 = vpop.xlane.xlu1 %2953 }
0x15f8   : > { %v2955_v59 = vsub.f32 %v2949_v23, %v2954_v60 }
0x15fa   : > { %v2956_v57 = vmul.f32 1.442695, %v2955_v59 }
0x15fc   : > { %5274 = vpow2.f32 %v2956_v57 }
0x15fd   : > { %v3013_v22 = vpop.xlane.xlu2 %3012 }
0x15fe   : > { %v3014_v1 = vsub.f32 %v3008_v44, %v3013_v22  ;;  %v5065_v44 = vld [vmem:[%s6349_s19 + $0x78] sm:$0xff] }
0x15ff   : > { %3181 = vmatpush.bf16.msrb.mxu2 %v5065_v44  ;;  %v5068_v44 = vld [vmem:[#allocation7 + $0x94] sm:$0xf] }
0x1600   : > { %v3015_v3 = vmul.f32 1.442695, %v3014_v1  ;;  %v5081_v1 = vld [vmem:[#allocation7 + $0xf4] sm:$0xf0] }
0x1602   : > { %v5275_v4 = vpop.eup %5274  ;;  %5276 = vpow2.f32 %v3015_v3  ;;  %v5080_v3 = vld [vmem:[#allocation7 + $0xf4] sm:$0xf] }
0x1603   : > { %v2958_v5 = vsel %vm1532_vm3, %v5275_v4, 0.0  ;;  %3182 = vmatpush.bf16.msrb.mxu2 %v5064_v45 }
0x1604   : > { %2959 = vadd.xlane.f32.xlu1 %v2958_v5  ;;  %v4737_v5 = vld [vmem:[#allocation7 + $0xf8] sm:$0xf0] }
0x1605   : > { %v2968_v19 = vpop.permute.xlu2 %2967 }
0x1606   : > { %v2973_v20 = vsel %vm1549_vm4, %v2968_v19, 0  ;;  %v4719_v19 = vld [vmem:[#allocation7 + $0xd0] sm:$0xf] }
0x1607   : > { %v3069_v6 = vpop.xlane.xlu0 %3068  ;;  %2982 = vmatpush.bf16.msrb.mxu1 %v2973_v20  ;;  %3183 = vmatpush.bf16.msrb.mxu2 %v5063_v48  ;;  %v5077_v20 = vld [vmem:[#allocation7 + $0xd4] sm:$0xf0]  ;;  %v4689_v48 = vld [vmem:[#allocation7 + $0x98] sm:$0xf0] }
0x1608   : > { %v5277_v7 = vpop.eup %5276  ;;  %v3070_v9 = vsub.f32 %v3064_v49, %v3069_v6  ;;  %v5058_v49 = vld [vmem:[%s6349_s19 + $0x40] sm:$0xff]  ;;  %v4740_v6 = vor.u32 %v5080_v3, %v4737_v5 }
0x1609   : > { %v3017_v10 = vsel %vm1532_vm3, %v5277_v7, 0.0  ;;  %v5086_v3 = vld [vmem:[#allocation9 + $0xa0] sm:$0xff] }
0x160a   : > { %v3071_v11 = vmul.f32 1.442695, %v3070_v9  ;;  %3018 = vadd.xlane.f32.xlu0 %v3017_v10  ;;  %3339 = vmatpush.bf16.msrb.mxu0 %v4740_v6  ;;  %v5093_v6 = vld [vmem:[#allocation9 + $0xd8] sm:$0xff] }
0x160b   : > { %3184 = vmatpush.bf16.msrb.mxu2 %v5062_v28  ;;  %v4692_v28 = vor.u32 %v5068_v44, %v4689_v48 }
0x160c   : > { %5278 = vpow2.f32 %v3071_v11 }
0x160f   : > { %v2900_v12 = vpop.xlane.xlu0 %2899  ;;  %3185 = vmatpush.bf16.msrb.mxu2 %v5061_v55  ;;  %v4679_v55 = vld [vmem:[#allocation7 + $0x80] sm:$0xf] }
0x1610   : > { %5280 = vrcp.f32 %v2900_v12  ;;  %v4727_v12 = vld [vmem:[#allocation7 + $0xe0] sm:$0xf] }
0x1612   : > { %v5279_v13 = vpop.eup %5278 }
0x1613   : > { %v3073_v14 = vsel %vm1532_vm3, %v5279_v13, 0.0  ;;  %3186 = vmatpush.bf16.msrb.mxu2 %v5060_v56  ;;  %v5067_v56 = vld [vmem:[#allocation7 + $0x84] sm:$0xf0] }
0x1614   : > { %3074 = vadd.xlane.f32.xlu1 %v3073_v14  ;;  %v5078_v14 = vld [vmem:[#allocation7 + $0xe4] sm:$0xf] }
0x1616   : > { %v5281_v15 = vpop.eup %5280 }
0x1617   : > { %v2902_v16 = vmul.f32 %v5281_v15, %v5273_v54  ;;  %3187 = vmatpush.bf16.msrb.mxu2 %v5059_v58  ;;  %v5066_v58 = vld [vmem:[#allocation7 + $0x84] sm:$0xf] }
0x1619   : > { %v2903_v17 = vpack.c.bf16 %v2902_v16, %v2902_v16  ;;  %v4729_v16 = vld [vmem:[#allocation7 + $0xe8] sm:$0xf0] }
0x161b   : > { %4619 = vmatmul.msk.bf16.vlgmr.msra.gmra.mxu1 %vm1545_vm10, %v2903_v17  ;;  %3188 = vmatpush.bf16.msrb.mxu2 %v5058_v49  ;;  %v4732_v17 = vor.u32 %v5078_v14, %v4729_v16  ;;  %v4680_v49 = vor.u32 %v5067_v56, %v4679_v55  ;;  %v4674_v14 = vld [vmem:[%s6308_s5 + $0xc] sm:$0x1]  ;;  %v5128_v55 = vld [vmem:[#allocation10 + $0xec] sm:$0xf0]  ;;  %v5126_v56 = vld [vmem:[#allocation10 + $0xe4] sm:$0xf] }
0x161d   : > { %3340 = vmatpush.bf16.msrb.mxu0 %v4732_v17  ;;  %v4675_v17 = vld [vmem:[%s6308_s5 + $0xd] sm:$0x1] }
0x161e   : > { %3023 = vrot.lane.b32.xlu0 %v2966_v0, %s5463_s25 }
0x162d   : > { %3079 = vrot.lane.b32.xlu1 %v2966_v0, %s5464_s18  ;;  %v4735_v0 = vld [vmem:[#allocation7 + $0xf0] sm:$0xf] }
0x1677   : > { %v2960_v21 = vpop.xlane.xlu1 %2959 }
0x1678   : > { %5282 = vrcp.f32 %v2960_v21  ;;  %v5076_v21 = vld [vmem:[#allocation7 + $0xd4] sm:$0xf] }
0x167d   : > { %v3019_v26 = vpop.xlane.xlu0 %3018 }
0x167e   : > { %v5283_v2 = vpop.eup %5282  ;;  %5284 = vrcp.f32 %v3019_v26  ;;  %v4711_v26 = vld [vmem:[#allocation7 + $0xc0] sm:$0xf] }
0x167f   : > { %v2962_v32 = vmul.f32 %v5283_v2, %v5275_v4  ;;  %v4736_v4 = vor.u32 %v5081_v1, %v4735_v0  ;;  %v4720_v2 = vor.u32 %v5077_v20, %v4719_v19  ;;  %v5087_v0 = vld [vmem:[#allocation9 + $0xa8] sm:$0xff]  ;;  %v5094_v1 = vld [vmem:[#allocation9 + $0xe0] sm:$0xff] }
0x1681   : > { %v2963_v24 = vpack.c.bf16 %v2962_v32, %v2962_v32  ;;  %v4721_v32 = vld [vmem:[#allocation7 + $0xd8] sm:$0xf0] }
0x1683   : > { %4621 = vmatmul.msk.bf16.vlgmr.msrb.gmra.mxu1 %vm1545_vm10, %v2963_v24  ;;  %v4724_v24 = vor.u32 %v5076_v21, %v4721_v32  ;;  %v5084_v32 = vld [vmem:[#allocation9 + $0x90] sm:$0xff] }
0x1684   : > { %v5285_v18 = vpop.eup %5284 }
0x1685   : > { %v3021_v27 = vmul.f32 %v5285_v18, %v5277_v7  ;;  %3341 = vmatpush.bf16.msrb.mxu0 %v4724_v24  ;;  %v5075_v18 = vld [vmem:[#allocation7 + $0xc4] sm:$0xf0]  ;;  %v5090_v24 = vld [vmem:[#allocation9 + $0xc0] sm:$0xff] }
0x1687   : > { %v3075_v31 = vpop.xlane.xlu1 %3074  ;;  %v3022_v33 = vpack.c.bf16 %v3021_v27, %v3021_v27  ;;  %v5074_v27 = vld [vmem:[#allocation7 + $0xc4] sm:$0xf] }
0x1688   : > { %5286 = vrcp.f32 %v3075_v31 }
0x168e   : > { %v5287_v34 = vpop.eup %5286 }
0x168f   : > { %v3077_v61 = vmul.f32 %v5287_v34, %v5279_v13  ;;  %v5079_v13 = vld [vmem:[#allocation7 + $0xe4] sm:$0xf0]  ;;  %v5072_v34 = vld [vmem:[#allocation7 + $0xb4] sm:$0xf] }
0x1690   : > { %v3024_v29 = vpop.permute.xlu0 %3023  ;;  %v4728_v15 = vor.u32 %v5079_v13, %v4727_v12 }
0x1691   : > { %v3029_v30 = vsel %vm1549_vm4, %v3024_v29, 0  ;;  %v3078_v38 = vpack.c.bf16 %v3077_v61, %v3077_v61  ;;  %v4712_v29 = vor.u32 %v5075_v18, %v4711_v26  ;;  %v5083_v26 = vld [vmem:[#allocation9 + $0x88] sm:$0xff]  ;;  %v5082_v18 = vld [vmem:[#allocation9 + $0x80] sm:$0xff] }
0x1692   : > { %3038 = vmatpush.bf16.msrb.mxu3 %v3029_v30  ;;  %v4713_v30 = vld [vmem:[#allocation7 + $0xc8] sm:$0xf0] }
0x1693   : > { %v4716_v31 = vor.u32 %v5074_v27, %v4713_v30 }
0x1695   : > { %4623 = vmatmul.msk.bf16.vlgmr.msrb.gmra.mxu3 %vm1545_vm10, %v3022_v33  ;;  %3342 = vmatpush.bf16.msrb.mxu0 %v4716_v31  ;;  %v4703_v33 = vld [vmem:[#allocation7 + $0xb0] sm:$0xf] }
0x1696   : > { %3326 = vmatpush.bf16.msra.mxu3 %v4736_v4 }
0x1698   : > { %v2919_v8 = vpop.f32.mrf.mxu1 }
0x169a   : > { %3327 = vmatpush.bf16.msra.mxu3 %v4728_v15 }
0x169e   : > { %3328 = vmatpush.bf16.msra.mxu3 %v4720_v2  ;;  %v5091_v2 = vld [vmem:[#allocation9 + $0xc8] sm:$0xff] }
0x169f   : > { %v3080_v35 = vpop.permute.xlu1 %3079 }
0x16a0   : > { %v3085_v36 = vsel %vm1549_vm4, %v3080_v35, 0  ;;  %v2921_v37 = vpop.f32.mrf.mxu1  ;;  %v4705_v35 = vld [vmem:[#allocation7 + $0xb8] sm:$0xf0] }
0x16a1   : > { %3094 = vmatpush.bf16.msra.mxu1 %v3085_v36  ;;  %v4708_v36 = vor.u32 %v5072_v34, %v4705_v35  ;;  %v4695_v37 = vld [vmem:[#allocation7 + $0xa0] sm:$0xf] }
0x16a2   : > { %3329 = vmatpush.bf16.msra.mxu3 %v4712_v29 }
0x16a3   : > { %3343 = vmatpush.bf16.msrb.mxu0 %v4708_v36 }
0x16a4   : > { %4625 = vmatmul.msk.bf16.vlgmr.msra.gmra.mxu1 %vm1545_vm10, %v3078_v38  ;;  %v5071_v38 = vld [vmem:[#allocation7 + $0xa4] sm:$0xf0] }
0x1700   : > { %v2984_v39 = vpop.f32.mrf.mxu1 }
0x1701   : > { %3101 = vrot.lane.b32.xlu2 %v2984_v39, %s5464_s18  ;;  %v5070_v39 = vld [vmem:[#allocation7 + $0xa4] sm:$0xf] }
0x1708   : > { %v2986_v40 = vpop.f32.mrf.mxu1 }
0x1709   : > { %v4696_v40 = vor.u32 %v5071_v38, %v4695_v37 }
0x1718   : > { %v3040_v23 = vpop.f32.mrf.mxu3 }
0x1719   : > { %3105 = vrot.lane.b32.xlu0 %v3040_v23, %s5463_s25  ;;  %v4697_v23 = vld [vmem:[#allocation7 + $0xa8] sm:$0xf0]  ;;  %s3843_s25 = scalar_lea.vmem (%p5594_p5), %s6355_s6, %s5133_s9 }
0x1720   : > { %v3042_v42 = vpop.f32.mrf.mxu3 }
0x1721   : > { %v3096_v43 = vpop.f32.mrf.mxu1  ;;  %v4700_v42 = vor.u32 %v5070_v39, %v4697_v23 }
0x1722   : > { %3109 = vrot.lane.b32.xlu2 %v3096_v43, %s5462_s1  ;;  %v4687_v43 = vld [vmem:[#allocation7 + $0x90] sm:$0xf] }
0x1723   : > { %3344 = vmatpush.bf16.msrb.mxu0 %v4700_v42  ;;  %v4805_v42 = vld [vmem:[%s6351_s26 + $0x1] sm:$0x1] }
0x1727   : > { %3345 = vmatpush.bf16.msrb.mxu0 %v4692_v28  ;;  %v4920_v28 = vld [vmem:[#allocation10 + $0xe0] sm:$0xf] }
0x1729   : > { %v3098_v51 = vpop.f32.mrf.mxu1 }
0x172a   : > { %v5069_v51 = vld [vmem:[#allocation7 + $0x94] sm:$0xf0] }
0x172b   : > { %v4688_v45 = vor.u32 %v5069_v51, %v4687_v43 }
0x175b   : > { %v3102_v50 = vpop.permute.xlu2 %3101 }
0x175c   : > { %v3112_v54 = vsel %vm1052_vm8, %v2919_v8, %v3102_v50  ;;  %v5073_v8 = vld [vmem:[#allocation7 + $0xb4] sm:$0xf0]  ;;  %v4681_v50 = vld [vmem:[#allocation7 + $0x88] sm:$0xf0] }
0x175d   : > { %v4704_v61 = vor.u32 %v5073_v8, %v4703_v33 }
0x175f   : > { %3330 = vmatpush.bf16.msra.mxu3 %v4704_v61 }
0x1763   : > { %3331 = vmatpush.bf16.msra.mxu3 %v4696_v40 }
0x1767   : > { %3332 = vmatpush.bf16.msra.mxu3 %v4688_v45 }
0x176b   : > { %3333 = vmatpush.bf16.msra.mxu3 %v4680_v49  ;;  %v4922_v49 = vld [vmem:[#allocation10 + $0xf0] sm:$0xf0] }
0x177c   : > { %v3110_v52 = vpop.permute.xlu2 %3109 }
0x178b   : > { %v3106_v41 = vpop.permute.xlu0 %3105 }
0x178c   : > { %v3113_v60 = vsel %vm1323_vm13, %v3112_v54, %v3106_v41  ;;  %v4684_v54 = vor.u32 %v5066_v58, %v4681_v50  ;;  %v5097_v41 = vld [vmem:[#allocation9 + $0xf8] sm:$0xff]  ;;  %v4921_v58 = vor.u32 %v5128_v55, %v4920_v28  ;;  %v4928_v50 = vld [vmem:[#allocation10 + $0xe8] sm:$0xf]  ;;  %v5111_v28 = vld [vmem:[#allocation10 + $0x6c] sm:$0xf] }
0x178d   : > { %v3114_v59 = vsel %vm1325_vm14, %v3113_v60, %v3110_v52  ;;  %v5089_v52 = vld [vmem:[#allocation9 + $0xb8] sm:$0xff]  ;;  %3498 = vmatpush.bf16.msra.mxu2 %v5097_v41  ;;  %v4925_v41 = vor.u32 %v5126_v56, %v4922_v49  ;;  %v5108_v49 = vld [vmem:[#allocation10 + $0x4c] sm:$0xf0] }
0x178e   : > { %v3115_v62 = vpack.c.bf16 %v3114_v59, %v3114_v59  ;;  %3346 = vmatpush.bf16.msrb.mxu0 %v4684_v54  ;;  %3485 = vmatpush.bf16.msrb.mxu1 %v5089_v52  ;;  %v5129_v54 = vld [vmem:[#allocation10 + $0xf4] sm:$0xf0]  ;;  %v4866_v55 = vld [vmem:[#allocation10 + $0x78] sm:$0xf0] }
0x178f   : > { %v4929_v52 = vor.u32 %v5129_v54, %v4928_v50  ;;  %3734 = vmatpush.bf16.msrb.mxu3 %v4921_v58  ;;  %v4869_v56 = vor.u32 %v5111_v28, %v4866_v55  ;;  %v4840_v58 = vld [vmem:[#allocation10 + $0x40] sm:$0xf]  ;;  %v5106_v50 = vld [vmem:[#allocation10 + $0x44] sm:$0xf] }
0x1790   : > { %3189 = vmatmul.bf16.vlgmr.msrb.gmra.mxu2 %v3115_v62  ;;  %v5096_v62 = vld [vmem:[#allocation9 + $0xf0] sm:$0xff]  ;;  %v4841_v54 = vor.u32 %v5108_v49, %v4840_v58 }
0x1791   : > { %3499 = vmatpush.bf16.msra.mxu2 %v5096_v62 }
0x1792   : > { %3747 = vmatpush.bf16.msra.mxu0 %v4925_v41  ;;  %v4842_v41 = vld [vmem:[#allocation10 + $0x50] sm:$0xf0] }
0x1813   : > { %v3190_v53 = vpop.f32.mrf.mxu2 }
0x1814   : > { %v6224_v57 = vadd.f32 %v3190_v53, %v6119_v47  ;;  %v5088_v53 = vld [vmem:[#allocation9 + $0xb0] sm:$0xff] }
0x1815   : > { %3486 = vmatpush.bf16.msrb.mxu1 %v5088_v53 }
0x1816   : > { %v3197_v63 = vsel %vm782_vm0, %v6224_v57, 0.0 }
0x1817   : > { %3198 = vadd.xlane.f32.xlu0 %v3197_v63 }
0x1819   : > { %3487 = vmatpush.bf16.msrb.mxu1 %v5087_v0 }
0x181b   : > { %v3192_v22 = vpop.f32.mrf.mxu2 }
0x181c   : > { %v5095_v22 = vld [vmem:[#allocation9 + $0xe8] sm:$0xff] }
0x181d   : > { %3500 = vmatpush.bf16.msra.mxu2 %v5095_v22  ;;  %3488 = vmatpush.bf16.msrb.mxu1 %v5086_v3  ;;  %v5124_v3 = vld [vmem:[#allocation10 + $0xcc] sm:$0xf0] }
0x1821   : > { %3501 = vmatpush.bf16.msra.mxu2 %v5094_v1  ;;  %v4904_v1 = vld [vmem:[#allocation10 + $0xc0] sm:$0xf] }
0x1825   : > { %3502 = vmatpush.bf16.msra.mxu2 %v5093_v6  ;;  %v4906_v6 = vld [vmem:[#allocation10 + $0xd0] sm:$0xf0] }
0x188a   : > { %v3199_v7 = vpop.xlane.xlu0 %3198 }
0x188b   : > { %v3200_v9 = vmul.f32 %v3199_v7, %v5682_v25  ;;  %v5085_v7 = vld [vmem:[#allocation9 + $0x98] sm:$0xff] }
0x188c   : > { %3489 = vmatpush.bf16.msrb.mxu1 %v5085_v7  ;;  %v4912_v7 = vld [vmem:[#allocation10 + $0xc8] sm:$0xf] }
0x188d   : > { %v6230_v10 = vsub.f32 %v6224_v57, %v3200_v9 }
0x188f   : > { %v3202_v47 = vmul.f32 %v6230_v10, %v6230_v10 }
0x1890   : > { %3490 = vmatpush.bf16.msrb.mxu1 %v5084_v32 }
0x1891   : > { %v3203_v11 = vsel %vm782_vm0, %v3202_v47, 0.0 }
0x1892   : > { %3204 = vadd.xlane.f32.xlu1 %v3203_v11  ;;  %v5092_v11 = vld [vmem:[#allocation9 + $0xd0] sm:$0xff] }
0x1893   : > { %3503 = vmatpush.bf16.msra.mxu2 %v5092_v11 }
0x1894   : > { %3491 = vmatpush.bf16.msrb.mxu1 %v5083_v26  ;;  %v5119_v26 = vld [vmem:[#allocation10 + $0xac] sm:$0xf] }
0x1897   : > { %3504 = vmatpush.bf16.msra.mxu2 %v5091_v2  ;;  %v5121_v2 = vld [vmem:[#allocation10 + $0xb4] sm:$0xf0] }
0x1898   : > { %3492 = vmatpush.bf16.msrb.mxu1 %v5082_v18  ;;  %v4898_v18 = vld [vmem:[#allocation10 + $0xb8] sm:$0xf0] }
0x189b   : > { %3505 = vmatpush.bf16.msra.mxu2 %v5090_v24 }
0x189c   : > { %3760 = vmatpush.bf16.msra.mxu1 %v4929_v52  ;;  %v4848_v52 = vld [vmem:[#allocation10 + $0x48] sm:$0xf] }
0x1905   : > { %v3205_v60 = vpop.xlane.xlu1 %3204 }
0x1906   : > { %v3206_v59 = vmul.f32 %v3205_v60, %v5682_v25  ;;  %v5127_v60 = vld [vmem:[#allocation10 + $0xec] sm:$0xf] }
0x1908   : > { %v3207_v63 = vadd.f32 1e-06, %v3206_v59  ;;  %v4930_v59 = vld [vmem:[#allocation10 + $0xf8] sm:$0xf0] }
0x1909   : > { %v4933_v62 = vor.u32 %v5127_v60, %v4930_v59  ;;  %v5109_v60 = vld [vmem:[#allocation10 + $0x54] sm:$0xf0]  ;;  %v4845_v59 = vor.u32 %v5106_v50, %v4842_v41  ;;  %v3795_v41 = vadd.s32 128, %v5773_v46 }
0x190a   : > { %5288 = vrsqrt.f32 %v3207_v63  ;;  %vm3214_vm9 = vweird.f32 %v3207_v63 }
0x190b   : > { %3773 = vmatpush.bf16.msrb.mxu2 %v4933_v62  ;;  %v4849_v62 = vor.u32 %v5109_v60, %v4848_v52  ;;  %v3796_v52 = vadd.s32 256, %v5773_v46  ;;  %v3797_v60 = vadd.s32 384, %v5773_v46 }
0x1910   : > { %v5289_v4 = vpop.eup %5288 }
0x1911   : > { %v3209_v5 = vmul.f32 %v5289_v4, %v3207_v63  ;;  %vm3215_vm8 = vweird.f32 %v5289_v4 }
0x1912   : > { %vm3216_vm11 = vmor %vm3214_vm9, %vm3215_vm8 }
0x1913   : > { %v3210_v9 = vmul.f32 %v5289_v4, %v3209_v5  ;;  %v4905_v5 = vor.u32 %v5124_v3, %v4904_v1  ;;  %v5104_v1 = vld [vmem:[#allocation10 + $0x2c] sm:$0xf0]  ;;  %v5102_v3 = vld [vmem:[#allocation10 + $0x24] sm:$0xf] }
0x1915   : > { %v3211_v47 = vmul.f32 0.5, %v3210_v9  ;;  %v5125_v9 = vld [vmem:[#allocation10 + $0xd4] sm:$0xf0]  ;;  %3735 = vmatpush.bf16.msrb.mxu3 %v4905_v5  ;;  %v4826_v5 = vld [vmem:[#allocation10 + $0x30] sm:$0xf0] }
0x1916   : > { %v4913_v11 = vor.u32 %v5125_v9, %v4912_v7  ;;  %v5105_v7 = vld [vmem:[#allocation10 + $0x34] sm:$0xf0]  ;;  %v4829_v9 = vor.u32 %v5102_v3, %v4826_v5 }
0x1917   : > { %v3212_v12 = vsub.f32 1.5, %v3211_v47 }
0x1918   : > { %3761 = vmatpush.bf16.msra.mxu1 %v4913_v11  ;;  %v5103_v11 = vld [vmem:[#allocation10 + $0x2c] sm:$0xf] }
0x1919   : > { %v3213_v13 = vmul.f32 %v5289_v4, %v3212_v12  ;;  %v5123_v12 = vld [vmem:[#allocation10 + $0xcc] sm:$0xf] }
0x191b   : > { %v3217_v15 = vsel %vm3216_vm11, %v5289_v4, %v3213_v13  ;;  %v5122_v4 = vld [vmem:[#allocation10 + $0xc4] sm:$0xf]  ;;  %v4914_v13 = vld [vmem:[#allocation10 + $0xd8] sm:$0xf0] }
0x191c   : > { %v3218_v16 = vmul.f32 %v3217_v15, %v6230_v10  ;;  %v4676_v10 = vld [vmem:[%s6350_s14 + $0x2] sm:$0x3]  ;;  %v4909_v47 = vor.u32 %v5122_v4, %v4906_v6  ;;  %v4832_v6 = vld [vmem:[#allocation10 + $0x28] sm:$0xf] }
0x191d   : > { %v3323_v27 = vperm.slane %v4676_v10, 1  ;;  %v3322_v33 = vperm.slane %v4676_v10, 0  ;;  %v4888_v15 = vld [vmem:[#allocation10 + $0xa0] sm:$0xf]  ;;  %v4901_v10 = vor.u32 %v5119_v26, %v4898_v18  ;;  %v4818_v26 = vld [vmem:[#allocation10 + $0x18] sm:$0xf0] }
0x191e   : > { %v3219_v19 = vmul.f32 %v4674_v14, %v3218_v16  ;;  %v4917_v14 = vor.u32 %v5123_v12, %v4914_v13  ;;  %3748 = vmatpush.bf16.msra.mxu0 %v4909_v47  ;;  %v5120_v16 = vld [vmem:[#allocation10 + $0xac] sm:$0xf0]  ;;  %v4833_v47 = vor.u32 %v5105_v7, %v4832_v6  ;;  %v4834_v12 = vld [vmem:[#allocation10 + $0x38] sm:$0xf0]  ;;  %v4808_v13 = vld [vmem:[#allocation10] sm:$0xf] }
0x1920   : > { %v3220_v20 = vadd.f32 %v4675_v17, %v3219_v19  ;;  %v5118_v17 = vld [vmem:[#allocation10 + $0xa4] sm:$0xf]  ;;  %3774 = vmatpush.bf16.msrb.mxu2 %v4917_v14  ;;  %v4889_v19 = vor.u32 %v5120_v16, %v4888_v15  ;;  %v4837_v14 = vor.u32 %v5103_v11, %v4834_v12  ;;  %v5100_v15 = vld [vmem:[#allocation10 + $0xc] sm:$0xf0] }
0x1921   : > { %v5098_v16 = vld [vmem:[#allocation10 + $0x4] sm:$0xf] }
0x1922   : > { %v3221_v21 = vpack.c.bf16 %v3220_v20, %v3220_v20  ;;  %v4890_v20 = vld [vmem:[#allocation10 + $0xb0] sm:$0xf0]  ;;  %3736 = vmatpush.bf16.msrb.mxu3 %v4889_v19  ;;  %v4809_v19 = vor.u32 %v5100_v15, %v4808_v13 }
0x1923   : > { %v4893_v32 = vor.u32 %v5118_v17, %v4890_v20  ;;  %v4810_v17 = vld [vmem:[#allocation10 + $0x10] sm:$0xf0] }
0x1924   : > { %3334 = vmatmul.bf16.vlgmr.msra.gmra.mxu3 %v3221_v21  ;;  %3347 = vmatmul.bf16.vlgmr.msrb.gmra.mxu0 %v3221_v21  ;;  %v4896_v21 = vld [vmem:[#allocation10 + $0xa8] sm:$0xf]  ;;  %v4813_v20 = vor.u32 %v5098_v16, %v4810_v17 }
0x1925   : > { %v4897_v24 = vor.u32 %v5121_v2, %v4896_v21  ;;  %3749 = vmatpush.bf16.msra.mxu0 %v4893_v32  ;;  %3775 = vmatpush.bf16.msrb.mxu2 %v4901_v10  ;;  %v4816_v21 = vld [vmem:[#allocation10 + $0x8] sm:$0xf]  ;;  %v5101_v2 = vld [vmem:[#allocation10 + $0x14] sm:$0xf0]  ;;  %v5099_v32 = vld [vmem:[#allocation10 + $0xc] sm:$0xf] }
0x1926   : > { %v4821_v18 = vor.u32 %v5099_v32, %v4818_v26  ;;  %v3888_v32 = vld [vmem:[%s5738_s30 + $0x18] sm:$0xff] (%p5594_p5)  ;;  %v3892_v26 = vld [vmem:[%s5738_s30 + $0x28] sm:$0xff] (%p5594_p5) }
0x1927   : > { %3762 = vmatpush.bf16.msra.mxu1 %v4897_v24  ;;  %v4817_v24 = vor.u32 %v5101_v2, %v4816_v21  ;;  %v3884_v21 = vld [vmem:[%s5738_s30 + $0x8] sm:$0xff] (%p5594_p5)  ;;  %v3886_v2 = vld [vmem:[%s5738_s30 + $0x10] sm:$0xff] (%p5594_p5)  ;;  %3889 = vst [vmem:[%s3843_s25 + $0x30] sm:$0xff] (%p5594_p5), %v3888_v32 }
0x1928   : > { %3885 = vst [vmem:[%s3843_s25 + $0x8] sm:$0xff] (%p5594_p5), %v3884_v21 }
0x1929   : > { %3887 = vst [vmem:[%s3843_s25 + $0x10] sm:$0xff] (%p5594_p5), %v3886_v2 }
0x192a   : > { %3893 = vst [vmem:[%s3843_s25 + $0x40] sm:$0xff] (%p5594_p5), %v3892_v26 }
0x19a1   : > { %v3348_v29 = vpop.f32.mrf.mxu0 }
0x19a2   : > { %v3349_v30 = vadd.f32 %v3348_v29, %v3323_v27  ;;  %v4872_v27 = vld [vmem:[#allocation10 + $0x80] sm:$0xf]  ;;  %v5116_v29 = vld [vmem:[#allocation10 + $0x8c] sm:$0xf0] }
0x19a4   : > { %v3353_v31 = vmax.f32 %v3349_v30, 0.0  ;;  %v5114_v30 = vld [vmem:[#allocation10 + $0x84] sm:$0xf] }
0x19a6   : > { %v3355_v8 = vpack.c.bf16 %v3353_v31, %v3353_v31  ;;  %v4873_v31 = vor.u32 %v5116_v29, %v4872_v27 }
0x19a7   : > { %v3335_v34 = vpop.f32.mrf.mxu3 }
0x19a8   : > { %v3336_v61 = vadd.f32 %v3335_v34, %v3322_v33  ;;  %3506 = vmatmul.bf16.vlgmr.msra.gmra.mxu2 %v3355_v8  ;;  %v4874_v33 = vld [vmem:[#allocation10 + $0x90] sm:$0xf0]  ;;  %v4880_v8 = vld [vmem:[#allocation10 + $0x88] sm:$0xf]  ;;  %v5117_v34 = vld [vmem:[#allocation10 + $0x94] sm:$0xf0]  ;;  %3737 = vmatpush.bf16.msrb.mxu3 %v4873_v31 }
0x19a9   : > { %v3350_v35 = vpop.f32.mrf.mxu0 }
0x19aa   : > { %v3352_v36 = vmax.f32 %v3336_v61, 0.0  ;;  %v4877_v61 = vor.u32 %v5114_v30, %v4874_v33  ;;  %v4881_v35 = vor.u32 %v5117_v34, %v4880_v8 }
0x19ac   : > { %v3354_v37 = vpack.c.bf16 %v3352_v36, %v3352_v36  ;;  %v5115_v36 = vld [vmem:[#allocation10 + $0x8c] sm:$0xf]  ;;  %3750 = vmatpush.bf16.msra.mxu0 %v4877_v61  ;;  %3763 = vmatpush.bf16.msra.mxu1 %v4881_v35  ;;  %v3515_v35 = vld [vmem:[%s6352_s23] sm:$0x1] }
0x19ae   : > { %3493 = vmatmul.bf16.vlgmr.msrb.gmra.mxu1 %v3354_v37  ;;  %v4882_v37 = vld [vmem:[#allocation10 + $0x98] sm:$0xf0] }
0x19af   : > { %v3337_v38 = vpop.f32.mrf.mxu3 }
0x19b0   : > { %v4885_v38 = vor.u32 %v5115_v36, %v4882_v37 }
0x19b2   : > { %3776 = vmatpush.bf16.msrb.mxu2 %v4885_v38 }
0x19b6   : > { %3777 = vmatpush.bf16.msrb.mxu2 %v4869_v56 }
0x1a2b   : > { %v3494_v39 = vpop.f32.mrf.mxu1  ;;  %v3507_v40 = vpop.f32.mrf.mxu2 }
0x1a2c   : > { %v3508_v23 = vadd.f32 %v3507_v40, %v3494_v39  ;;  %v4856_v39 = vld [vmem:[#allocation10 + $0x60] sm:$0xf]  ;;  %v5112_v40 = vld [vmem:[#allocation10 + $0x6c] sm:$0xf0] }
0x1a2e   : > { %v3511_v43 = vadd.f32 %v3508_v23, %v6224_v57  ;;  %v5110_v23 = vld [vmem:[#allocation10 + $0x64] sm:$0xf] }
0x1a30   : > { %v3514_v51 = vadd.f32 %v4805_v42, %v3511_v43  ;;  %v4857_v42 = vor.u32 %v5112_v40, %v4856_v39  ;;  %v4858_v43 = vld [vmem:[#allocation10 + $0x70] sm:$0xf0] }
0x1a32   : > { %v3517_v44 = vsel %vm782_vm0, %v3514_v51, 0.0  ;;  %3738 = vmatpush.bf16.msrb.mxu3 %v4857_v42 }
0x1a33   : > { %v3509_v45 = vpop.f32.mrf.mxu2  ;;  %3518 = vadd.xlane.f32.xlu2 %v3517_v44  ;;  %v3496_v48 = vpop.f32.mrf.mxu1  ;;  %v5113_v44 = vld [vmem:[#allocation10 + $0x74] sm:$0xf0] }
0x1a34   : > { %v4861_v45 = vor.u32 %v5110_v23, %v4858_v43 }
0x1a36   : > { %3751 = vmatpush.bf16.msra.mxu0 %v4861_v45  ;;  %3739 = vmatpush.bf16.msrb.mxu3 %v4841_v54 }
0x1a3a   : > { %3752 = vmatpush.bf16.msra.mxu0 %v4845_v59 }
0x1a3e   : > { %3753 = vmatpush.bf16.msra.mxu0 %v4829_v9 }
0x1a42   : > { %3754 = vmatpush.bf16.msra.mxu0 %v4813_v20  ;;  %v3882_v20 = vld [vmem:[%s5738_s30] sm:$0xff] (%p5594_p5) }
0x1a43   : > { %3883 = vst [vmem:[%s3843_s25] sm:$0xff] (%p5594_p5), %v3882_v20 }
0x1aa6   : > { %v3519_v57 = vpop.xlane.xlu2 %3518 }
0x1aa7   : > { %v3520_v53 = vmul.f32 %v3519_v57, %v5682_v25  ;;  %v5107_v57 = vld [vmem:[#allocation10 + $0x4c] sm:$0xf] }
0x1aa9   : > { %v6252_v63 = vsub.f32 %v3514_v51, %v3520_v53  ;;  %v4864_v51 = vld [vmem:[#allocation10 + $0x68] sm:$0xf]  ;;  %v4850_v53 = vld [vmem:[#allocation10 + $0x58] sm:$0xf0] }
0x1aaa   : > { %v4865_v48 = vor.u32 %v5113_v44, %v4864_v51 }
0x1aab   : > { %v3522_v22 = vmul.f32 %v6252_v63, %v6252_v63 }
0x1aac   : > { %3764 = vmatpush.bf16.msra.mxu1 %v4865_v48 }
0x1aad   : > { %v3523_v0 = vsel %vm782_vm0, %v3522_v22, 0.0  ;;  %v4853_v22 = vor.u32 %v5107_v57, %v4850_v53 }
0x1aae   : > { %3524 = vadd.xlane.f32.xlu0 %v3523_v0  ;;  %v4824_v0 = vld [vmem:[#allocation10 + $0x20] sm:$0xf] }
0x1aaf   : > { %3778 = vmatpush.bf16.msrb.mxu2 %v4853_v22  ;;  %v4825_v4 = vor.u32 %v5104_v1, %v4824_v0 }
0x1ab0   : > { %3765 = vmatpush.bf16.msra.mxu1 %v4849_v62 }
0x1ab1   : > { %3740 = vmatpush.bf16.msrb.mxu3 %v4825_v4 }
0x1ab3   : > { %3779 = vmatpush.bf16.msrb.mxu2 %v4837_v14 }
0x1ab4   : > { %3766 = vmatpush.bf16.msra.mxu1 %v4833_v47 }
0x1ab5   : > { %3741 = vmatpush.bf16.msrb.mxu3 %v4809_v19 }
0x1ab7   : > { %3780 = vmatpush.bf16.msrb.mxu2 %v4821_v18 }
0x1ab8   : > { %3767 = vmatpush.bf16.msra.mxu1 %v4817_v24  ;;  %v3890_v24 = vld [vmem:[%s5738_s30 + $0x20] sm:$0xff] (%p5594_p5) }
0x1ab9   : > { %3891 = vst [vmem:[%s3843_s25 + $0x38] sm:$0xff] (%p5594_p5), %v3890_v24 }
0x1b21   : > { %v3525_v10 = vpop.xlane.xlu0 %3524 }
0x1b22   : > { %v3526_v27 = vmul.f32 %v3525_v10, %v5682_v25  ;;  %v3516_v25 = vld [vmem:[%s6352_s23 + $0x1] sm:$0x1] }
0x1b24   : > { %v3527_v29 = vadd.f32 1e-06, %v3526_v27 }
0x1b26   : > { %5290 = vrsqrt.f32 %v3527_v29  ;;  %vm3534_vm13 = vweird.f32 %v3527_v29 }
0x1b2c   : > { %v5291_v30 = vpop.eup %5290 }
0x1b2d   : > { %v3529_v31 = vmul.f32 %v5291_v30, %v3527_v29  ;;  %vm3535_vm12 = vweird.f32 %v5291_v30 }
0x1b2e   : > { %vm3536_vm14 = vmor %vm3534_vm13, %vm3535_vm12 }
0x1b2f   : > { %v3530_v33 = vmul.f32 %v5291_v30, %v3529_v31 }
0x1b31   : > { %v3531_v8 = vmul.f32 0.5, %v3530_v33 }
0x1b33   : > { %v3532_v34 = vsub.f32 1.5, %v3531_v8 }
0x1b35   : > { %v3533_v61 = vmul.f32 %v5291_v30, %v3532_v34 }
0x1b37   : > { %v3537_v36 = vsel %vm3536_vm14, %v5291_v30, %v3533_v61 }
0x1b38   : > { %v3538_v37 = vmul.f32 %v3537_v36, %v6252_v63 }
0x1b3a   : > { %v3539_v38 = vmul.f32 %v3538_v37, %v3515_v35 }
0x1b3c   : > { %v3540_v39 = vadd.f32 %v3539_v38, %v3516_v25 }
0x1b3e   : > { %v3541_v40 = vpack.c.bf16 %v3540_v39, %v3540_v39 }
0x1b40   : > { %3742 = vmatmul.bf16.vlgmr.msrb.gmra.mxu3 %v3541_v40  ;;  %3755 = vmatmul.bf16.vlgmr.msra.gmra.mxu0 %v3541_v40 }
0x1b41   : > { %3768 = vmatmul.bf16.vlgmr.msra.gmra.mxu1 %v3541_v40  ;;  %3781 = vmatmul.bf16.vlgmr.msrb.gmra.mxu2 %v3541_v40 }
0x1bbd   : > { %v3756_v23 = vpop.f32.mrf.mxu0 }
0x1bbe   : > { %v3769_v42 = vpop.f32.mrf.mxu1  ;;  %v3787_v51 = vsel %vm782_vm0, %v3756_v23, -inf }
0x1bbf   : > { %v3788_v63 = vsel %vm782_vm0, %v3769_v42, -inf }
0x1bc3   : > { %v3743_v43 = vpop.f32.mrf.mxu3 }
0x1bc4   : > { %v3786_v44 = vsel %vm782_vm0, %v3743_v43, -inf  ;;  %v3782_v45 = vpop.f32.mrf.mxu2 }
0x1bc5   : > { %v3790_v48 = vmax.f32 %v3786_v44, %v3787_v51  ;;  %v3789_v28 = vsel %vm782_vm0, %v3782_v45, -inf  ;;  %v3758_v55 = vpop.f32.mrf.mxu0 }
0x1bc6   : > { %v3791_v56 = vmax.f32 %v3788_v63, %v3789_v28  ;;  %v3771_v58 = vpop.f32.mrf.mxu1 }
0x1bc8   : > { %v3792_v49 = vmax.f32 %v3790_v48, %v3791_v56 }
0x1bca   : > { %3793 = vmax.xlane.f32.xlu1 %v3792_v49 }
0x1bcb   : > { %v3745_v50 = vpop.f32.mrf.mxu3 }
0x1bcc   : > { %v3784_v54 = vpop.f32.mrf.mxu2 }
0x1c3d   : > { %v3794_v59 = vpop.xlane.xlu1 %3793 }
0x1c3e   : > { %vm3798_vm3 = vcmp.ge.f32.partialorder %v3743_v43, %v3794_v59  ;;  %vm3799_vm4 = vcmp.ge.f32.partialorder %v3756_v23, %v3794_v59  ;;  %vm3800_vm10 = vcmp.ge.f32.partialorder %v3769_v42, %v3794_v59  ;;  %vm3801_vm15 = vcmp.ge.f32.partialorder %v3782_v45, %v3794_v59 }
0x1c3f   : > { %v3802_v62 = vsel %vm3798_vm3, %v5773_v46, 512  ;;  %v3803_v57 = vsel %vm3799_vm4, %v3795_v41, 512  ;;  %v3804_v53 = vsel %vm3800_vm10, %v3796_v52, 512  ;;  %v3805_v22 = vsel %vm3801_vm15, %v3797_v60, 512 }
0x1c40   : > { %v3806_v0 = vsel %vm782_vm0, %v3802_v62, 2147483647  ;;  %v3807_v1 = vsel %vm782_vm0, %v3803_v57, 2147483647  ;;  %v3808_v3 = vsel %vm782_vm0, %v3804_v53, 2147483647 }
0x1c41   : > { %v3809_v4 = vsel %vm782_vm0, %v3805_v22, 2147483647  ;;  %vm3810_vm1 = vcmp.lt.s32.totalorder %v3806_v0, %v3807_v1 }
0x1c42   : > { %vm3812_vm2 = vcmp.lt.s32.totalorder %v3808_v3, %v3809_v4  ;;  %v3811_v5 = vsel %vm3810_vm1, %v3806_v0, %v3807_v1 }
0x1c43   : > { %v3813_v6 = vsel %vm3812_vm2, %v3808_v3, %v3809_v4 }
0x1c44   : > { %vm3814_vm5 = vcmp.lt.s32.totalorder %v3811_v5, %v3813_v6 }
0x1c45   : > { %v3815_v7 = vsel %vm3814_vm5, %v3811_v5, %v3813_v6 }
0x1c46   : > { %v3817_v9 = vshra.s32 %v3815_v7, 16  ;;  %v3816_v47 = vand.u32 65535, %v3815_v7 }
0x1c48   : > { %v3819_v46 = vcvt.s32.f32 %v3817_v9  ;;  %v3818_v12 = vcvt.s32.f32 %v3816_v47 }
0x1c4a   : > { %3820 = vmin.xlane.f32.xlu2 %v3819_v46 }
0x1cbd   : > { %v3821_v11 = vpop.xlane.xlu2 %3820 }
0x1cbe   : > { %vm3822_vm6 = vcmp.eq.f32.partialorder %v3819_v46, %v3821_v11  ;;  %v3827_v14 = vcvt.f32.s32 %v3821_v11 }
0x1cbf   : > { %v3823_v13 = vsel %vm3822_vm6, %v3818_v12, inf }
0x1cc0   : > { %3824 = vmin.xlane.f32.xlu0 %v3823_v13  ;;  %v3828_v16 = vshll.u32 %v3827_v14, 16 }
0x1d33   : > { %v3825_v15 = vpop.xlane.xlu0 %3824 }
0x1d34   : > { %v3826_v17 = vcvt.f32.s32 %v3825_v15  ;;  %3840 = sbr.rel (!%p5594_p5) target bundleno = 7481 (0x1d39), region = 180 }
0x1d36   : > { %v3829_v19 = vadd.s32 %v3828_v16, %v3826_v17 }
0x1d38   : > { %3830 = vst [vmem:[%s763_s17] sm:$0x1] %v3829_v19 }
0x1d39 PF: > { %s6356_s29 = sld [smem:[#allocation16_spill]]  ;;  %s6358_s27 = smov %s5443_s28 }
0x1d3a   : > { %s6357_s0 = sld [smem:[#allocation17_spill]] }
0x1d3f   : > { %p29_p0 = scmp.ge.s32.totalorder %s6356_s29, 4  }
0x1d40   : > { %s6359_s28 = smov %s6357_s0 }
0x1d41   :  { %31 = sbr.rel (!%p29_p0) target bundleno = 22 (0x16), region = 288 }
0x1d46   :  { %3918 = vsyncpa [#allocation6], 1 }
0x1d47   :  { %3920 = vsyncpa [#allocation6 + $0x1], 1 }
0x1d48   :  { %3921 = vsyncpa [#allocation8], 1 }
0x1d49   :  { %3922 = vsyncpa [#allocation11], 1 }

</bundles_post_ra>
